<compile_context>
chip_gen: v6e
topology: v6e:2x2x1
jax: 0.10.0
libtpu: 0.0.40
codegen_flags: <defaults>
</compile_context>

<pallas_src>
import functools

import jax
import jax.numpy as jnp
from jax.experimental import pallas as pl
from jax.experimental.pallas import tpu as pltpu

EPS = 1e-5                 # PyTorch BatchNorm2d default eps
LANE = 128                 # lane-dense channel padding
VMEM_LIMIT = 32 * 1024 * 1024


def _act(y, act):
    if act == "silu":
        return y * jax.nn.sigmoid(y)
    if act == "relu":
        return jnp.maximum(y, 0.0)
    if act == "sigmoid":
        return jax.nn.sigmoid(y)
    return y


# ----------------------------- Pallas kernels -----------------------------

def _mm_kernel(x_ref, w_ref, s_ref, b_ref, o_ref, *, act):
    # y = act((x @ w) * scale + shift); bf16 operands, f32 accumulation/epilogue.
    y = jnp.dot(x_ref[...], w_ref[...], preferred_element_type=jnp.float32)
    y = y * s_ref[...] + b_ref[...]
    o_ref[...] = _act(y, act).astype(o_ref.dtype)


def matmul_bn_act(x, w, scale, shift, act="none", tm=512):
    """M-tiled fused 1x1-conv / linear: act((x @ w) * scale + shift)."""
    M, K = x.shape
    Kw, N = w.shape
    assert K == Kw
    TM = M if M <= tm else tm
    return pl.pallas_call(
        functools.partial(_mm_kernel, act=act),
        out_shape=jax.ShapeDtypeStruct((M, N), jnp.bfloat16),
        grid=(pl.cdiv(M, TM),),
        in_specs=[
            pl.BlockSpec((TM, K), lambda i: (i, 0)),
            pl.BlockSpec((K, N), lambda i: (0, 0)),
            pl.BlockSpec((1, N), lambda i: (0, 0)),
            pl.BlockSpec((1, N), lambda i: (0, 0)),
        ],
        out_specs=pl.BlockSpec((TM, N), lambda i: (i, 0)),
        compiler_params=pltpu.CompilerParams(
            dimension_semantics=("parallel",),
            vmem_limit_bytes=VMEM_LIMIT),
    )(x, w, scale.reshape(1, N), shift.reshape(1, N))


def _dw_s1_kernel(x_ref, w_ref, s_ref, b_ref, o_ref, p_ref, *, H, W):
    # 3x3 depthwise stride 1, BN + SiLU fused, per-channel global-average-pool fused.
    x = x_ref[...].astype(jnp.float32)          # (1, H+2, W+2, C)
    w = w_ref[...]                              # (9, C) f32
    C = x.shape[-1]
    acc = jnp.zeros((1, H, W, C), jnp.float32)
    for i in range(3):
        for j in range(3):
            acc = acc + x[:, i:i + H, j:j + W, :] * w[i * 3 + j, :]
    y = acc * s_ref[...] + b_ref[...]
    y = y * jax.nn.sigmoid(y)                   # SiLU (f32 epilogue; v5e friendly)
    o_ref[...] = y.astype(o_ref.dtype)
    p_ref[...] = jnp.mean(y, axis=(1, 2), keepdims=True)


def _dw_s2_kernel(p00_ref, p01_ref, p10_ref, p11_ref, w_ref, s_ref, b_ref,
                  o_ref, pool_ref, *, Ho, Wo):
    # 3x3 depthwise stride 2 computed directly from the 4 even/odd input phases.
    x00 = p00_ref[...].astype(jnp.float32)
    x01 = p01_ref[...].astype(jnp.float32)
    x10 = p10_ref[...].astype(jnp.float32)
    x11 = p11_ref[...].astype(jnp.float32)
    ph = [[x00, x01], [x10, x11]]
    w = w_ref[...]
    C = x00.shape[-1]
    acc = jnp.zeros((1, Ho, Wo, C), jnp.float32)
    for i in range(3):
        for j in range(3):
            src = ph[i % 2][j % 2]
            acc = acc + src[:, i // 2:i // 2 + Ho, j // 2:j // 2 + Wo, :] * w[i * 3 + j, :]
    y = acc * s_ref[...] + b_ref[...]
    y = y * jax.nn.sigmoid(y)
    o_ref[...] = y.astype(o_ref.dtype)
    pool_ref[...] = jnp.mean(y, axis=(1, 2), keepdims=True)


def depthwise_conv3x3(x_nhwc, w9c, scale, shift, *, stride=1):
    """Depthwise 3x3 + BN + SiLU with the SE global-average-pool fused into the epilogue.

    Returns (y_nhwc_bf16, pooled_f32[N, C])."""
    N, H, W, C = x_nhwc.shape
    xp = jnp.pad(x_nhwc, ((0, 0), (1, 1), (1, 1), (0, 0)))
    cparams = pltpu.CompilerParams(dimension_semantics=("parallel",),
                                   vmem_limit_bytes=VMEM_LIMIT)
    if stride == 1:
        y, pooled = pl.pallas_call(
            functools.partial(_dw_s1_kernel, H=H, W=W),
            out_shape=(jax.ShapeDtypeStruct((N, H, W, C), jnp.bfloat16),
                       jax.ShapeDtypeStruct((N, 1, 1, C), jnp.float32)),
            grid=(N,),
            in_specs=[
                pl.BlockSpec((1, H + 2, W + 2, C), lambda n: (n, 0, 0, 0)),
                pl.BlockSpec((9, C), lambda n: (0, 0)),
                pl.BlockSpec((1, 1, 1, C), lambda n: (0, 0, 0, 0)),
                pl.BlockSpec((1, 1, 1, C), lambda n: (0, 0, 0, 0)),
            ],
            out_specs=(pl.BlockSpec((1, H, W, C), lambda n: (n, 0, 0, 0)),
                       pl.BlockSpec((1, 1, 1, C), lambda n: (n, 0, 0, 0))),
            compiler_params=cparams,
        )(xp, w9c, scale.reshape(1, 1, 1, C), shift.reshape(1, 1, 1, C))
        return y, pooled.reshape(N, C)

    # stride == 2: split padded input into 4 even/odd phases in XLA (one cheap strided pass),
    # then the kernel does only dense unit-stride taps over (Ho, Wo) — 4x less work/writeback.
    assert stride == 2 and H % 2 == 0 and W % 2 == 0
    Ho, Wo = H // 2, W // 2
    phases = [xp[:, a::2, b::2, :] for a in (0, 1) for b in (0, 1)]  # each (N, Ho+1, Wo+1, C)
    phase_spec = pl.BlockSpec((1, Ho + 1, Wo + 1, C), lambda n: (n, 0, 0, 0))
    y, pooled = pl.pallas_call(
        functools.partial(_dw_s2_kernel, Ho=Ho, Wo=Wo),
        out_shape=(jax.ShapeDtypeStruct((N, Ho, Wo, C), jnp.bfloat16),
                   jax.ShapeDtypeStruct((N, 1, 1, C), jnp.float32)),
        grid=(N,),
        in_specs=[phase_spec, phase_spec, phase_spec, phase_spec,
                  pl.BlockSpec((9, C), lambda n: (0, 0)),
                  pl.BlockSpec((1, 1, 1, C), lambda n: (0, 0, 0, 0)),
                  pl.BlockSpec((1, 1, 1, C), lambda n: (0, 0, 0, 0))],
        out_specs=(pl.BlockSpec((1, Ho, Wo, C), lambda n: (n, 0, 0, 0)),
                   pl.BlockSpec((1, 1, 1, C), lambda n: (n, 0, 0, 0))),
        compiler_params=cparams,
    )(*phases, w9c, scale.reshape(1, 1, 1, C), shift.reshape(1, 1, 1, C))
    return y, pooled.reshape(N, C)


def _se_gate_kernel(p_ref, wr_ref, br_ref, we_ref, be_ref, g_ref):
    # gate = sigmoid( silu(pooled @ Wr + br) @ We + be )  — whole SE branch in one kernel.
    p = p_ref[...].astype(jnp.bfloat16)
    r = jnp.dot(p, wr_ref[...], preferred_element_type=jnp.float32) + br_ref[...]
    r = r * jax.nn.sigmoid(r)                    # SiLU
    g = jnp.dot(r.astype(jnp.bfloat16), we_ref[...],
                preferred_element_type=jnp.float32) + be_ref[...]
    g_ref[...] = jax.nn.sigmoid(g)


def se_gate(pooled_nc, wr, br, we, be):
    N, Cmid = pooled_nc.shape
    Crd = wr.shape[1]
    return pl.pallas_call(
        _se_gate_kernel,
        out_shape=jax.ShapeDtypeStruct((N, Cmid), jnp.float32),
        grid=(1,),
        in_specs=[
            pl.BlockSpec((N, Cmid), lambda i: (0, 0)),
            pl.BlockSpec((Cmid, Crd), lambda i: (0, 0)),
            pl.BlockSpec((1, Crd), lambda i: (0, 0)),
            pl.BlockSpec((Crd, Cmid), lambda i: (0, 0)),
            pl.BlockSpec((1, Cmid), lambda i: (0, 0)),
        ],
        out_specs=pl.BlockSpec((N, Cmid), lambda i: (0, 0)),
        compiler_params=pltpu.CompilerParams(
            dimension_semantics=("arbitrary",), vmem_limit_bytes=VMEM_LIMIT),
    )(pooled_nc, wr, br.reshape(1, Crd), we, be.reshape(1, Cmid))


def _proj_kernel(x_ref, g_ref, w_ref, s_ref, b_ref, o_ref, *, act):
    # SE gate folded into the project matmul prologue; BN + act epilogue.
    x = x_ref[0].astype(jnp.float32)             # (TM, Cmid)
    g = g_ref[0]                                 # (1, Cmid)
    xg = (x * g).astype(jnp.bfloat16)
    y = jnp.dot(xg, w_ref[...], preferred_element_type=jnp.float32)
    y = _act(y * s_ref[...] + b_ref[...], act)
    o_ref[...] = y[None].astype(o_ref.dtype)


def _proj_res_kernel(x_ref, g_ref, w_ref, s_ref, b_ref, r_ref, o_ref, *, act):
    # Same as _proj_kernel plus the residual add fused into the epilogue.
    x = x_ref[0].astype(jnp.float32)
    g = g_ref[0]
    xg = (x * g).astype(jnp.bfloat16)
    y = jnp.dot(xg, w_ref[...], preferred_element_type=jnp.float32)
    y = _act(y * s_ref[...] + b_ref[...], act)
    y = y + r_ref[0].astype(jnp.float32)
    o_ref[...] = y[None].astype(o_ref.dtype)


def project_conv(x_nlc, gate_nc, w, scale, shift, shortcut=None, act="silu", tm=512):
    """1x1 project conv with SE channel gate (+ optional residual) fused in."""
    N, L, Cmid = x_nlc.shape
    Cout = w.shape[1]
    TM = L if L <= tm else tm
    gate = gate_nc.reshape(N, 1, Cmid)
    in_specs = [
        pl.BlockSpec((1, TM, Cmid), lambda n, m: (n, m, 0)),
        pl.BlockSpec((1, 1, Cmid), lambda n, m: (n, 0, 0)),
        pl.BlockSpec((Cmid, Cout), lambda n, m: (0, 0)),
        pl.BlockSpec((1, Cout), lambda n, m: (0, 0)),
        pl.BlockSpec((1, Cout), lambda n, m: (0, 0)),
    ]
    args = [x_nlc, gate, w, scale.reshape(1, Cout), shift.reshape(1, Cout)]
    if shortcut is not None:
        kern = functools.partial(_proj_res_kernel, act=act)
        in_specs.append(pl.BlockSpec((1, TM, Cout), lambda n, m: (n, m, 0)))
        args.append(shortcut)
    else:
        kern = functools.partial(_proj_kernel, act=act)
    return pl.pallas_call(
        kern,
        out_shape=jax.ShapeDtypeStruct((N, L, Cout), jnp.bfloat16),
        grid=(N, pl.cdiv(L, TM)),
        in_specs=in_specs,
        out_specs=pl.BlockSpec((1, TM, Cout), lambda n, m: (n, m, 0)),
        compiler_params=pltpu.CompilerParams(
            dimension_semantics=("parallel", "parallel"),
            vmem_limit_bytes=VMEM_LIMIT),
    )(*args)


def _head_pool_fc_kernel(x_ref, wh_ref, sh_ref, bh_ref, wf_ref, bf_ref, o_ref):
    # conv_head (1x1) + BN + SiLU + global-average-pool + classifier, fused per image.
    x = x_ref[0]                                              # (L, Cin) bf16
    y = jnp.dot(x, wh_ref[...], preferred_element_type=jnp.float32)
    y = y * sh_ref[...] + bh_ref[...]
    y = y * jax.nn.sigmoid(y)                                 # SiLU
    pooled = jnp.mean(y, axis=0, keepdims=True)               # (1, Cf)
    logits = jnp.dot(pooled.astype(jnp.bfloat16), wf_ref[...],
                     preferred_element_type=jnp.float32) + bf_ref[...]
    o_ref[...] = logits[None]


def head_pool_classifier(x_nlc, wh, sh, bh, wf, fcb):
    N, L, Cin = x_nlc.shape
    Cf = wh.shape[1]
    Ncls = wf.shape[1]
    return pl.pallas_call(
        _head_pool_fc_kernel,
        out_shape=jax.ShapeDtypeStruct((N, 1, Ncls), jnp.float32),
        grid=(N,),
        in_specs=[
            pl.BlockSpec((1, L, Cin), lambda n: (n, 0, 0)),
            pl.BlockSpec((Cin, Cf), lambda n: (0, 0)),
            pl.BlockSpec((1, Cf), lambda n: (0, 0)),
            pl.BlockSpec((1, Cf), lambda n: (0, 0)),
            pl.BlockSpec((Cf, Ncls), lambda n: (0, 0)),
            pl.BlockSpec((1, Ncls), lambda n: (0, 0)),
        ],
        out_specs=pl.BlockSpec((1, 1, Ncls), lambda n: (n, 0, 0)),
        compiler_params=pltpu.CompilerParams(
            dimension_semantics=("parallel",), vmem_limit_bytes=VMEM_LIMIT),
    )(x_nlc, wh, sh.reshape(1, Cf), bh.reshape(1, Cf), wf, fcb.reshape(1, Ncls))


# ----------------------------- JAX glue (layout / im2col / BN fold / padding) -----------------------------

def im2col_3x3(x_nhwc, stride):
    N, H, W, C = x_nhwc.shape
    xp = jnp.pad(x_nhwc, ((0, 0), (1, 1), (1, 1), (0, 0)))
    Ho = (H + 2 - 3) // stride + 1
    Wo = (W + 2 - 3) // stride + 1
    cols = []
    for i in range(3):
        for j in range(3):
            cols.append(xp[:, i:i + Ho * stride:stride, j:j + Wo * stride:stride, :])
    return jnp.concatenate(cols, axis=-1)  # (N, Ho, Wo, 9*C)


def bn_fold(bn):
    scale = bn["gamma"] / jnp.sqrt(bn["var"] + EPS)
    shift = bn["beta"] - bn["mean"] * scale
    return scale, shift


def _rup(n, m):
    return ((n + m - 1) // m) * m


def _pad_dim(a, axis, mult=LANE):
    t = _rup(a.shape[axis], mult)
    if t == a.shape[axis]:
        return a
    pw = [(0, 0)] * a.ndim
    pw[axis] = (0, t - a.shape[axis])
    return jnp.pad(a, pw)


def _prep_block(p):
    s1, b1 = bn_fold(p["bn1"])
    s2, b2 = bn_fold(p["bn2"])
    s3, b3 = bn_fold(p["bn3"])
    return dict(
        pw_w=_pad_dim(_pad_dim(p["pw_w"], 0), 1).astype(jnp.bfloat16),
        s1=_pad_dim(s1, 0), b1=_pad_dim(b1, 0),
        dw_w=_pad_dim(p["dw_w"], 1).astype(jnp.float32),
        s2=_pad_dim(s2, 0), b2=_pad_dim(b2, 0),
        se_rw=_pad_dim(_pad_dim(p["se_rw"], 0), 1).astype(jnp.bfloat16),
        se_rb=_pad_dim(p["se_rb"], 0),
        se_ew=_pad_dim(_pad_dim(p["se_ew"], 0), 1).astype(jnp.bfloat16),
        se_eb=_pad_dim(p["se_eb"], 0),
        pwl_w=_pad_dim(_pad_dim(p["pwl_w"], 0), 1).astype(jnp.bfloat16),
        s3=_pad_dim(s3, 0), b3=_pad_dim(b3, 0),
    )


def prepare_params(params):
    """Fold eval-mode BN into per-channel scale/shift, zero-pad all channel dims to a
    multiple of 128 (lane-dense), and cast matmul weights to bf16."""
    s_stem, b_stem = bn_fold(params["bn_stem"])
    stem_w = _pad_dim(params["stem_w"], 0, mult=8)          # K: 27 -> 32 (im2col contraction)
    pp = dict(
        stem_w=_pad_dim(stem_w, 1).astype(jnp.bfloat16),
        stem_s=_pad_dim(s_stem, 0),
        stem_b=_pad_dim(b_stem, 0),
        block0=_prep_block(params["block0"]),
        block1=_prep_block(params["block1"]),
    )
    sh, bh = bn_fold(params["bn_head"])
    pp["head_w"] = _pad_dim(_pad_dim(params["head_w"], 0), 1).astype(jnp.bfloat16)
    pp["head_s"] = _pad_dim(sh, 0)
    pp["head_b"] = _pad_dim(bh, 0)
    pp["fc_w"] = _pad_dim(_pad_dim(params["fc_w"], 0), 1).astype(jnp.bfloat16)
    pp["fc_b"] = _pad_dim(params["fc_b"], 0)
    return pp


# ----------------------------- Model blocks -----------------------------

def inverted_residual(x_nhwc, bp, *, stride, has_skip, act="silu"):
    N, H, W, C = x_nhwc.shape
    shortcut = x_nhwc
    # conv_pw (1x1 expand) + bn1 + act  (M-tiled fused matmul, bf16 MXU)
    Cmid = bp["pw_w"].shape[1]
    h = matmul_bn_act(x_nhwc.reshape(N * H * W, C), bp["pw_w"], bp["s1"], bp["b1"], act=act)
    h = h.reshape(N, H, W, Cmid)
    # conv_dw (3x3 depthwise) + bn2 + act, SE global-average-pool fused into the epilogue
    h, pooled = depthwise_conv3x3(h, bp["dw_w"], bp["s2"], bp["b2"], stride=stride)
    # SE gate: reduce + SiLU + expand + sigmoid, one small kernel
    gate = se_gate(pooled, bp["se_rw"], bp["se_rb"], bp["se_ew"], bp["se_eb"])
    # conv_pwl (1x1 project) + bn3 + act, with SE channel gate and residual add fused in
    Nh, Hh, Ww, _ = h.shape
    sc = shortcut.reshape(N, H * W, C) if has_skip else None   # drop_path_rate = 0 -> identity
    y = project_conv(h.reshape(Nh, Hh * Ww, Cmid), gate, bp["pwl_w"],
                     bp["s3"], bp["b3"], shortcut=sc, act=act)
    Cout = bp["pwl_w"].shape[1]
    return y.reshape(Nh, Hh, Ww, Cout)


def efficientnet_forward(x_nchw, params):
    pp = prepare_params(params)
    num_classes = params["fc_w"].shape[1]
    # NCHW (PyTorch) -> NHWC (kernel layout)
    x = jnp.transpose(x_nchw, (0, 2, 3, 1)).astype(jnp.float32)
    # conv_stem (3x3, stride 2, pad 1) + bn1 + SiLU via im2col + M-tiled fused matmul
    # TODO(synk): at full resolution, move the stem im2col inside the kernel
    #             (tap-accumulated dots) to avoid the 9x HBM blow-up of the input.
    cols = im2col_3x3(x, stride=2)                          # (N, Ho, Wo, 27)
    N, Ho, Wo, Kc = cols.shape
    cols = jnp.pad(cols, ((0, 0), (0, 0), (0, 0), (0, pp["stem_w"].shape[0] - Kc)))
    cols = cols.reshape(N * Ho * Wo, -1).astype(jnp.bfloat16)
    y = matmul_bn_act(cols, pp["stem_w"], pp["stem_s"], pp["stem_b"], act="silu")
    x = y.reshape(N, Ho, Wo, y.shape[1])
    # blocks
    x = inverted_residual(x, pp["block0"], stride=1, has_skip=True)
    x = inverted_residual(x, pp["block1"], stride=2, has_skip=False)
    # conv_head (1x1) + bn2 + SiLU + global avg pool + classifier — single fused kernel
    Nn, Hh, Ww, Cc = x.shape
    logits = head_pool_classifier(x.reshape(Nn, Hh * Ww, Cc),
                                  pp["head_w"], pp["head_s"], pp["head_b"],
                                  pp["fc_w"], pp["fc_b"])
    return logits.reshape(Nn, -1)[:, :num_classes]


# ----------------------------- Deterministic parameter init -----------------------------

def _nrm(key, shape, s=0.1):
    return s * jax.random.normal(key, shape, jnp.float32)


def _bn(key, c):
    k = jax.random.split(key, 4)
    return dict(
        gamma=1.0 + 0.1 * jax.random.normal(k[0], (c,), jnp.float32),
        beta=0.1 * jax.random.normal(k[1], (c,), jnp.float32),
        mean=0.1 * jax.random.normal(k[2], (c,), jnp.float32),
        var=0.5 + 0.1 * jnp.abs(jax.random.normal(k[3], (c,), jnp.float32)),
    )


def _block_params(key, in_c, mid_c, out_c, rd_c):
    ks = jax.random.split(key, 10)
    return dict(
        pw_w=_nrm(ks[0], (in_c, mid_c)),
        bn1=_bn(ks[1], mid_c),
        dw_w=_nrm(ks[2], (9, mid_c)),
        bn2=_bn(ks[3], mid_c),
        se_rw=_nrm(ks[4], (mid_c, rd_c)),
        se_rb=_nrm(ks[5], (rd_c,)),
        se_ew=_nrm(ks[6], (rd_c, mid_c)),
        se_eb=_nrm(ks[7], (mid_c,)),
        pwl_w=_nrm(ks[8], (mid_c, out_c)),
        bn3=_bn(ks[9], out_c),
    )


def make_params(key):
    # Synthetic small EfficientNet config:
    #   in_chans=3, stem_size=16 (round_channels(16)=16)
    #   stage0: 1x InvertedResidual in=16 out=16, exp_ratio=4 -> mid=64, se rd=4, stride 1
    #   stage1: 1x InvertedResidual in=16 out=24, exp_ratio=4 -> mid=64, se rd=4, stride 2
    #   head: 1x1 conv 24 -> num_features=64, classifier 64 -> num_classes=10
    ks = jax.random.split(key, 8)
    return dict(
        stem_w=_nrm(ks[0], (27, 16)),        # im2col layout (3*3*3, stem_size)
        bn_stem=_bn(ks[1], 16),
        block0=_block_params(ks[2], 16, 64, 16, 4),
        block1=_block_params(ks[3], 16, 64, 24, 4),
        head_w=_nrm(ks[4], (24, 64)),
        bn_head=_bn(ks[5], 64),
        fc_w=_nrm(ks[6], (64, 10)),
        fc_b=_nrm(ks[7], (10,)),
    )


if __name__ == "__main__":
    key = jax.random.PRNGKey(0)
    kx, kp = jax.random.split(key)
    x = jax.random.normal(kx, (2, 3, 16, 16), jnp.float32)  # NCHW, like PyTorch
    params = make_params(kp)
    fwd = jax.jit(efficientnet_forward)
    out = fwd(x, params)
    jax.block_until_ready(out)
    assert out.shape == (2, 10), out.shape
    assert bool(jnp.all(jnp.isfinite(out)))
    print("KERNEL_OK")
</pallas_src>

<mosaic_0001>
module attributes {stable_mosaic.version = 11 : i64} {
  func.func @_mm_kernel(%arg0: i32, %arg1: memref<128x32xbf16, #tpu.memory_space<vmem>>, %arg2: memref<32x128xbf16, #tpu.memory_space<vmem>>, %arg3: memref<1x128xf32, #tpu.memory_space<vmem>>, %arg4: memref<1x128xf32, #tpu.memory_space<vmem>>, %arg5: memref<128x128xbf16, #tpu.memory_space<vmem>>) attributes {dimension_semantics = [#tpu.dimension_semantics<parallel>], iteration_bounds = array<i64: 1>, scalar_prefetch = 0 : i64, scratch_operands = 0 : i64, tpu.core_type = #tpu.core_type<tc>, window_params = [{transform_indices = @transform_0, window_bounds = array<i64: 128, 32>}, {pipeline_mode = #tpu.pipeline_mode<synchronous>, transform_indices = @transform_1, window_bounds = array<i64: 32, 128>}, {pipeline_mode = #tpu.pipeline_mode<synchronous>, transform_indices = @transform_2, window_bounds = array<i64: 1, 128>}, {pipeline_mode = #tpu.pipeline_mode<synchronous>, transform_indices = @transform_3, window_bounds = array<i64: 1, 128>}, {transform_indices = @transform_4, window_bounds = array<i64: 128, 128>}]} {
    %c0 = arith.constant 0 : index
    %c0_0 = arith.constant 0 : index
    %0 = vector.load %arg1[%c0, %c0_0] : memref<128x32xbf16, #tpu.memory_space<vmem>>, vector<128x32xbf16>
    %c0_1 = arith.constant 0 : index
    %c0_2 = arith.constant 0 : index
    %1 = vector.load %arg2[%c0_1, %c0_2] : memref<32x128xbf16, #tpu.memory_space<vmem>>, vector<32x128xbf16>
    %cst = arith.constant dense<0.000000e+00> : vector<128x128xf32>
    %2 = tpu.matmul %0, %1, %cst {dimension_numbers = #tpu.dot_dimension_numbers<[1], [0], [0], [1], [0, 0, 1, 1], [], []>} : vector<128x32xbf16>, vector<32x128xbf16>, vector<128x128xf32> -> vector<128x128xf32>
    %c0_3 = arith.constant 0 : index
    %c0_4 = arith.constant 0 : index
    %3 = vector.load %arg3[%c0_3, %c0_4] : memref<1x128xf32, #tpu.memory_space<vmem>>, vector<1x128xf32>
    %4 = vector.broadcast %3 : vector<1x128xf32> to vector<128x128xf32>
    %5 = arith.mulf %2, %4 : vector<128x128xf32>
    %c0_5 = arith.constant 0 : index
    %c0_6 = arith.constant 0 : index
    %6 = vector.load %arg4[%c0_5, %c0_6] : memref<1x128xf32, #tpu.memory_space<vmem>>, vector<1x128xf32>
    %7 = vector.broadcast %6 : vector<1x128xf32> to vector<128x128xf32>
    %8 = arith.addf %5, %7 : vector<128x128xf32>
    %9 = arith.negf %8 : vector<128x128xf32>
    %10 = math.exp %9 : vector<128x128xf32>
    %cst_7 = arith.constant 1.000000e+00 : f32
    %11 = vector.broadcast %cst_7 : f32 to vector<128x128xf32>
    %12 = arith.addf %11, %10 : vector<128x128xf32>
    %13 = arith.divf %11, %12 : vector<128x128xf32>
    %14 = arith.mulf %8, %13 : vector<128x128xf32>
    %15 = arith.truncf %14 : vector<128x128xf32> to vector<128x128xbf16>
    %c0_8 = arith.constant 0 : index
    %c0_9 = arith.constant 0 : index
    %16 = vector.load %arg5[%c0_8, %c0_9] : memref<128x128xbf16, #tpu.memory_space<vmem>>, vector<128x128xbf16>
    tpu.vector_store %arg5[%c0_8, %c0_9], %15 {strides = array<i32>} : memref<128x128xbf16, #tpu.memory_space<vmem>>, vector<128x128xbf16>,
    return
  }
  func.func @transform_0(%arg0: i32) -> (i32, i32) {
    %c0_i32 = arith.constant 0 : i32
    %c0_i32_0 = arith.constant 0 : i32
    return %arg0, %c0_i32 : i32, i32
  }
  func.func @transform_1(%arg0: i32) -> (i32, i32) {
    %c0_i32 = arith.constant 0 : i32
    %c0_i32_0 = arith.constant 0 : i32
    %c0_i32_1 = arith.constant 0 : i32
    return %c0_i32, %c0_i32_0 : i32, i32
  }
  func.func @transform_2(%arg0: i32) -> (i32, i32) {
    %c0_i32 = arith.constant 0 : i32
    %c0_i32_0 = arith.constant 0 : i32
    %c0_i32_1 = arith.constant 0 : i32
    return %c0_i32, %c0_i32_0 : i32, i32
  }
  func.func @transform_3(%arg0: i32) -> (i32, i32) {
    %c0_i32 = arith.constant 0 : i32
    %c0_i32_0 = arith.constant 0 : i32
    %c0_i32_1 = arith.constant 0 : i32
    return %c0_i32, %c0_i32_0 : i32, i32
  }
  func.func @transform_4(%arg0: i32) -> (i32, i32) {
    %c0_i32 = arith.constant 0 : i32
    %c0_i32_0 = arith.constant 0 : i32
    return %arg0, %c0_i32 : i32, i32
  }
}

module attributes {stable_mosaic.version = 11 : i64} {
  func.func @_mm_kernel(%arg0: i32, %arg1: memref<128x128xbf16, #tpu.memory_space<vmem>>, %arg2: memref<128x128xbf16, #tpu.memory_space<vmem>>, %arg3: memref<1x128xf32, #tpu.memory_space<vmem>>, %arg4: memref<1x128xf32, #tpu.memory_space<vmem>>, %arg5: memref<128x128xbf16, #tpu.memory_space<vmem>>) attributes {dimension_semantics = [#tpu.dimension_semantics<parallel>], iteration_bounds = array<i64: 1>, scalar_prefetch = 0 : i64, scratch_operands = 0 : i64, tpu.core_type = #tpu.core_type<tc>, window_params = [{transform_indices = @transform_0, window_bounds = array<i64: 128, 128>}, {pipeline_mode = #tpu.pipeline_mode<synchronous>, transform_indices = @transform_1, window_bounds = array<i64: 128, 128>}, {pipeline_mode = #tpu.pipeline_mode<synchronous>, transform_indices = @transform_2, window_bounds = array<i64: 1, 128>}, {pipeline_mode = #tpu.pipeline_mode<synchronous>, transform_indices = @transform_3, window_bounds = array<i64: 1, 128>}, {transform_indices = @transform_4, window_bounds = array<i64: 128, 128>}]} {
    %c0 = arith.constant 0 : index
    %c0_0 = arith.constant 0 : index
    %0 = vector.load %arg1[%c0, %c0_0] : memref<128x128xbf16, #tpu.memory_space<vmem>>, vector<128x128xbf16>
    %c0_1 = arith.constant 0 : index
    %c0_2 = arith.constant 0 : index
    %1 = vector.load %arg2[%c0_1, %c0_2] : memref<128x128xbf16, #tpu.memory_space<vmem>>, vector<128x128xbf16>
    %cst = arith.constant dense<0.000000e+00> : vector<128x128xf32>
    %2 = tpu.matmul %0, %1, %cst {dimension_numbers = #tpu.dot_dimension_numbers<[1], [0], [0], [1], [0, 0, 1, 1], [], []>} : vector<128x128xbf16>, vector<128x128xbf16>, vector<128x128xf32> -> vector<128x128xf32>
    %c0_3 = arith.constant 0 : index
    %c0_4 = arith.constant 0 : index
    %3 = vector.load %arg3[%c0_3, %c0_4] : memref<1x128xf32, #tpu.memory_space<vmem>>, vector<1x128xf32>
    %4 = vector.broadcast %3 : vector<1x128xf32> to vector<128x128xf32>
    %5 = arith.mulf %2, %4 : vector<128x128xf32>
    %c0_5 = arith.constant 0 : index
    %c0_6 = arith.constant 0 : index
    %6 = vector.load %arg4[%c0_5, %c0_6] : memref<1x128xf32, #tpu.memory_space<vmem>>, vector<1x128xf32>
    %7 = vector.broadcast %6 : vector<1x128xf32> to vector<128x128xf32>
    %8 = arith.addf %5, %7 : vector<128x128xf32>
    %9 = arith.negf %8 : vector<128x128xf32>
    %10 = math.exp %9 : vector<128x128xf32>
    %cst_7 = arith.constant 1.000000e+00 : f32
    %11 = vector.broadcast %cst_7 : f32 to vector<128x128xf32>
    %12 = arith.addf %11, %10 : vector<128x128xf32>
    %13 = arith.divf %11, %12 : vector<128x128xf32>
    %14 = arith.mulf %8, %13 : vector<128x128xf32>
    %15 = arith.truncf %14 : vector<128x128xf32> to vector<128x128xbf16>
    %c0_8 = arith.constant 0 : index
    %c0_9 = arith.constant 0 : index
    %16 = vector.load %arg5[%c0_8, %c0_9] : memref<128x128xbf16, #tpu.memory_space<vmem>>, vector<128x128xbf16>
    tpu.vector_store %arg5[%c0_8, %c0_9], %15 {strides = array<i32>} : memref<128x128xbf16, #tpu.memory_space<vmem>>, vector<128x128xbf16>,
    return
  }
  func.func @transform_0(%arg0: i32) -> (i32, i32) {
    %c0_i32 = arith.constant 0 : i32
    %c0_i32_0 = arith.constant 0 : i32
    return %arg0, %c0_i32 : i32, i32
  }
  func.func @transform_1(%arg0: i32) -> (i32, i32) {
    %c0_i32 = arith.constant 0 : i32
    %c0_i32_0 = arith.constant 0 : i32
    %c0_i32_1 = arith.constant 0 : i32
    return %c0_i32, %c0_i32_0 : i32, i32
  }
  func.func @transform_2(%arg0: i32) -> (i32, i32) {
    %c0_i32 = arith.constant 0 : i32
    %c0_i32_0 = arith.constant 0 : i32
    %c0_i32_1 = arith.constant 0 : i32
    return %c0_i32, %c0_i32_0 : i32, i32
  }
  func.func @transform_3(%arg0: i32) -> (i32, i32) {
    %c0_i32 = arith.constant 0 : i32
    %c0_i32_0 = arith.constant 0 : i32
    %c0_i32_1 = arith.constant 0 : i32
    return %c0_i32, %c0_i32_0 : i32, i32
  }
  func.func @transform_4(%arg0: i32) -> (i32, i32) {
    %c0_i32 = arith.constant 0 : i32
    %c0_i32_0 = arith.constant 0 : i32
    return %arg0, %c0_i32 : i32, i32
  }
}

module attributes {stable_mosaic.version = 11 : i64} {
  func.func @_dw_s1_kernel(%arg0: i32, %arg1: memref<1x10x10x128xbf16, #tpu.memory_space<vmem>>, %arg2: memref<9x128xf32, #tpu.memory_space<vmem>>, %arg3: memref<1x1x1x128xf32, #tpu.memory_space<vmem>>, %arg4: memref<1x1x1x128xf32, #tpu.memory_space<vmem>>, %arg5: memref<1x8x8x128xbf16, #tpu.memory_space<vmem>>, %arg6: memref<1x1x1x128xf32, #tpu.memory_space<vmem>>) attributes {dimension_semantics = [#tpu.dimension_semantics<parallel>], iteration_bounds = array<i64: 2>, scalar_prefetch = 0 : i64, scratch_operands = 0 : i64, tpu.core_type = #tpu.core_type<tc>, window_params = [{transform_indices = @transform_0, window_bounds = array<i64: 1, 10, 10, 128>}, {pipeline_mode = #tpu.pipeline_mode<synchronous>, transform_indices = @transform_1, window_bounds = array<i64: 9, 128>}, {pipeline_mode = #tpu.pipeline_mode<synchronous>, transform_indices = @transform_2, window_bounds = array<i64: 1, 1, 1, 128>}, {pipeline_mode = #tpu.pipeline_mode<synchronous>, transform_indices = @transform_3, window_bounds = array<i64: 1, 1, 1, 128>}, {transform_indices = @transform_4, window_bounds = array<i64: 1, 8, 8, 128>}, {transform_indices = @transform_5, window_bounds = array<i64: 1, 1, 1, 128>}]} {
    %c0 = arith.constant 0 : index
    %c0_0 = arith.constant 0 : index
    %c0_1 = arith.constant 0 : index
    %c0_2 = arith.constant 0 : index
    %0 = vector.load %arg1[%c0, %c0_0, %c0_1, %c0_2] : memref<1x10x10x128xbf16, #tpu.memory_space<vmem>>, vector<1x10x10x128xbf16>
    %1 = arith.extf %0 : vector<1x10x10x128xbf16> to vector<1x10x10x128xf32>
    %c0_3 = arith.constant 0 : index
    %c0_4 = arith.constant 0 : index
    %2 = vector.load %arg2[%c0_3, %c0_4] : memref<9x128xf32, #tpu.memory_space<vmem>>, vector<9x128xf32>
    %cst = arith.constant 0.000000e+00 : f32
    %3 = vector.broadcast %cst : f32 to vector<1x8x8x128xf32>
    %4 = vector.extract_strided_slice %1 {offsets = [0, 0, 0, 0], sizes = [1, 8, 8, 128], strides = [1, 1, 1, 1]} : vector<1x10x10x128xf32> to vector<1x8x8x128xf32>
    %5 = vector.extract_strided_slice %2 {offsets = [0, 0], sizes = [1, 128], strides = [1, 1]} : vector<9x128xf32> to vector<1x128xf32>
    %6 = vector.shape_cast %5 : vector<1x128xf32> to vector<128xf32>
    %7 = vector.shape_cast %6 : vector<128xf32> to vector<1x1x1x128xf32>
    %8 = vector.broadcast %7 : vector<1x1x1x128xf32> to vector<1x8x8x128xf32>
    %9 = arith.mulf %4, %8 : vector<1x8x8x128xf32>
    %10 = arith.addf %3, %9 : vector<1x8x8x128xf32>
    %11 = vector.extract_strided_slice %1 {offsets = [0, 0, 1, 0], sizes = [1, 8, 8, 128], strides = [1, 1, 1, 1]} : vector<1x10x10x128xf32> to vector<1x8x8x128xf32>
    %12 = vector.extract_strided_slice %2 {offsets = [1, 0], sizes = [1, 128], strides = [1, 1]} : vector<9x128xf32> to vector<1x128xf32>
    %13 = vector.shape_cast %12 : vector<1x128xf32> to vector<128xf32>
    %14 = vector.shape_cast %13 : vector<128xf32> to vector<1x1x1x128xf32>
    %15 = vector.broadcast %14 : vector<1x1x1x128xf32> to vector<1x8x8x128xf32>
    %16 = arith.mulf %11, %15 : vector<1x8x8x128xf32>
    %17 = arith.addf %10, %16 : vector<1x8x8x128xf32>
    %18 = vector.extract_strided_slice %1 {offsets = [0, 0, 2, 0], sizes = [1, 8, 8, 128], strides = [1, 1, 1, 1]} : vector<1x10x10x128xf32> to vector<1x8x8x128xf32>
    %19 = vector.extract_strided_slice %2 {offsets = [2, 0], sizes = [1, 128], strides = [1, 1]} : vector<9x128xf32> to vector<1x128xf32>
    %20 = vector.shape_cast %19 : vector<1x128xf32> to vector<128xf32>
    %21 = vector.shape_cast %20 : vector<128xf32> to vector<1x1x1x128xf32>
    %22 = vector.broadcast %21 : vector<1x1x1x128xf32> to vector<1x8x8x128xf32>
    %23 = arith.mulf %18, %22 : vector<1x8x8x128xf32>
    %24 = arith.addf %17, %23 : vector<1x8x8x128xf32>
    %25 = vector.extract_strided_slice %1 {offsets = [0, 1, 0, 0], sizes = [1, 8, 8, 128], strides = [1, 1, 1, 1]} : vector<1x10x10x128xf32> to vector<1x8x8x128xf32>
    %26 = vector.extract_strided_slice %2 {offsets = [3, 0], sizes = [1, 128], strides = [1, 1]} : vector<9x128xf32> to vector<1x128xf32>
    %27 = vector.shape_cast %26 : vector<1x128xf32> to vector<128xf32>
    %28 = vector.shape_cast %27 : vector<128xf32> to vector<1x1x1x128xf32>
    %29 = vector.broadcast %28 : vector<1x1x1x128xf32> to vector<1x8x8x128xf32>
    %30 = arith.mulf %25, %29 : vector<1x8x8x128xf32>
    %31 = arith.addf %24, %30 : vector<1x8x8x128xf32>
    %32 = vector.extract_strided_slice %1 {offsets = [0, 1, 1, 0], sizes = [1, 8, 8, 128], strides = [1, 1, 1, 1]} : vector<1x10x10x128xf32> to vector<1x8x8x128xf32>
    %33 = vector.extract_strided_slice %2 {offsets = [4, 0], sizes = [1, 128], strides = [1, 1]} : vector<9x128xf32> to vector<1x128xf32>
    %34 = vector.shape_cast %33 : vector<1x128xf32> to vector<128xf32>
    %35 = vector.shape_cast %34 : vector<128xf32> to vector<1x1x1x128xf32>
    %36 = vector.broadcast %35 : vector<1x1x1x128xf32> to vector<1x8x8x128xf32>
    %37 = arith.mulf %32, %36 : vector<1x8x8x128xf32>
    %38 = arith.addf %31, %37 : vector<1x8x8x128xf32>
    %39 = vector.extract_strided_slice %1 {offsets = [0, 1, 2, 0], sizes = [1, 8, 8, 128], strides = [1, 1, 1, 1]} : vector<1x10x10x128xf32> to vector<1x8x8x128xf32>
    %40 = vector.extract_strided_slice %2 {offsets = [5, 0], sizes = [1, 128], strides = [1, 1]} : vector<9x128xf32> to vector<1x128xf32>
    %41 = vector.shape_cast %40 : vector<1x128xf32> to vector<128xf32>
    %42 = vector.shape_cast %41 : vector<128xf32> to vector<1x1x1x128xf32>
    %43 = vector.broadcast %42 : vector<1x1x1x128xf32> to vector<1x8x8x128xf32>
    %44 = arith.mulf %39, %43 : vector<1x8x8x128xf32>
    %45 = arith.addf %38, %44 : vector<1x8x8x128xf32>
    %46 = vector.extract_strided_slice %1 {offsets = [0, 2, 0, 0], sizes = [1, 8, 8, 128], strides = [1, 1, 1, 1]} : vector<1x10x10x128xf32> to vector<1x8x8x128xf32>
    %47 = vector.extract_strided_slice %2 {offsets = [6, 0], sizes = [1, 128], strides = [1, 1]} : vector<9x128xf32> to vector<1x128xf32>
    %48 = vector.shape_cast %47 : vector<1x128xf32> to vector<128xf32>
    %49 = vector.shape_cast %48 : vector<128xf32> to vector<1x1x1x128xf32>
    %50 = vector.broadcast %49 : vector<1x1x1x128xf32> to vector<1x8x8x128xf32>
    %51 = arith.mulf %46, %50 : vector<1x8x8x128xf32>
    %52 = arith.addf %45, %51 : vector<1x8x8x128xf32>
    %53 = vector.extract_strided_slice %1 {offsets = [0, 2, 1, 0], sizes = [1, 8, 8, 128], strides = [1, 1, 1, 1]} : vector<1x10x10x128xf32> to vector<1x8x8x128xf32>
    %54 = vector.extract_strided_slice %2 {offsets = [7, 0], sizes = [1, 128], strides = [1, 1]} : vector<9x128xf32> to vector<1x128xf32>
    %55 = vector.shape_cast %54 : vector<1x128xf32> to vector<128xf32>
    %56 = vector.shape_cast %55 : vector<128xf32> to vector<1x1x1x128xf32>
    %57 = vector.broadcast %56 : vector<1x1x1x128xf32> to vector<1x8x8x128xf32>
    %58 = arith.mulf %53, %57 : vector<1x8x8x128xf32>
    %59 = arith.addf %52, %58 : vector<1x8x8x128xf32>
    %60 = vector.extract_strided_slice %1 {offsets = [0, 2, 2, 0], sizes = [1, 8, 8, 128], strides = [1, 1, 1, 1]} : vector<1x10x10x128xf32> to vector<1x8x8x128xf32>
    %61 = vector.extract_strided_slice %2 {offsets = [8, 0], sizes = [1, 128], strides = [1, 1]} : vector<9x128xf32> to vector<1x128xf32>
    %62 = vector.shape_cast %61 : vector<1x128xf32> to vector<128xf32>
    %63 = vector.shape_cast %62 : vector<128xf32> to vector<1x1x1x128xf32>
    %64 = vector.broadcast %63 : vector<1x1x1x128xf32> to vector<1x8x8x128xf32>
    %65 = arith.mulf %60, %64 : vector<1x8x8x128xf32>
    %66 = arith.addf %59, %65 : vector<1x8x8x128xf32>
    %c0_5 = arith.constant 0 : index
    %c0_6 = arith.constant 0 : index
    %c0_7 = arith.constant 0 : index
    %c0_8 = arith.constant 0 : index
    %67 = vector.load %arg3[%c0_5, %c0_6, %c0_7, %c0_8] : memref<1x1x1x128xf32, #tpu.memory_space<vmem>>, vector<1x1x1x128xf32>
    %68 = vector.broadcast %67 : vector<1x1x1x128xf32> to vector<1x8x8x128xf32>
    %69 = arith.mulf %66, %68 : vector<1x8x8x128xf32>
    %c0_9 = arith.constant 0 : index
    %c0_10 = arith.constant 0 : index
    %c0_11 = arith.constant 0 : index
    %c0_12 = arith.constant 0 : index
    %70 = vector.load %arg4[%c0_9, %c0_10, %c0_11, %c0_12] : memref<1x1x1x128xf32, #tpu.memory_space<vmem>>, vector<1x1x1x128xf32>
    %71 = vector.broadcast %70 : vector<1x1x1x128xf32> to vector<1x8x8x128xf32>
    %72 = arith.addf %69, %71 : vector<1x8x8x128xf32>
    %73 = arith.negf %72 : vector<1x8x8x128xf32>
    %74 = math.exp %73 : vector<1x8x8x128xf32>
    %cst_13 = arith.constant 1.000000e+00 : f32
    %75 = vector.broadcast %cst_13 : f32 to vector<1x8x8x128xf32>
    %76 = arith.addf %75, %74 : vector<1x8x8x128xf32>
    %77 = arith.divf %75, %76 : vector<1x8x8x128xf32>
    %78 = arith.mulf %72, %77 : vector<1x8x8x128xf32>
    %79 = arith.truncf %78 : vector<1x8x8x128xf32> to vector<1x8x8x128xbf16>
    %c0_14 = arith.constant 0 : index
    %c0_15 = arith.constant 0 : index
    %c0_16 = arith.constant 0 : index
    %c0_17 = arith.constant 0 : index
    %80 = vector.load %arg5[%c0_14, %c0_15, %c0_16, %c0_17] : memref<1x8x8x128xbf16, #tpu.memory_space<vmem>>, vector<1x8x8x128xbf16>
    tpu.vector_store %arg5[%c0_14, %c0_15, %c0_16, %c0_17], %79 {strides = array<i32>} : memref<1x8x8x128xbf16, #tpu.memory_space<vmem>>, vector<1x8x8x128xbf16>,
    %cst_18 = arith.constant dense<0.000000e+00> : vector<1x128xf32>
    %81 = vector.multi_reduction <add>, %78, %cst_18 [1, 2] : vector<1x8x8x128xf32> to vector<1x128xf32>
    %82 = vector.shape_cast %81 : vector<1x128xf32> to vector<1x1x1x128xf32>
    %cst_19 = arith.constant 6.400000e+01 : f32
    %83 = vector.broadcast %cst_19 : f32 to vector<1x1x1x128xf32>
    %84 = arith.divf %82, %83 : vector<1x1x1x128xf32>
    %c0_20 = arith.constant 0 : index
    %c0_21 = arith.constant 0 : index
    %c0_22 = arith.constant 0 : index
    %c0_23 = arith.constant 0 : index
    %85 = vector.load %arg6[%c0_20, %c0_21, %c0_22, %c0_23] : memref<1x1x1x128xf32, #tpu.memory_space<vmem>>, vector<1x1x1x128xf32>
    tpu.vector_store %arg6[%c0_20, %c0_21, %c0_22, %c0_23], %84 {strides = array<i32>} : memref<1x1x1x128xf32, #tpu.memory_space<vmem>>, vector<1x1x1x128xf32>,
    return
  }
  func.func @transform_0(%arg0: i32) -> (i32, i32, i32, i32) {
    %c0_i32 = arith.constant 0 : i32
    %c0_i32_0 = arith.constant 0 : i32
    %c0_i32_1 = arith.constant 0 : i32
    %c0_i32_2 = arith.constant 0 : i32
    return %arg0, %c0_i32, %c0_i32_0, %c0_i32_1 : i32, i32, i32, i32
  }
  func.func @transform_1(%arg0: i32) -> (i32, i32) {
    %c0_i32 = arith.constant 0 : i32
    %c0_i32_0 = arith.constant 0 : i32
    %c0_i32_1 = arith.constant 0 : i32
    return %c0_i32, %c0_i32_0 : i32, i32
  }
  func.func @transform_2(%arg0: i32) -> (i32, i32, i32, i32) {
    %c0_i32 = arith.constant 0 : i32
    %c0_i32_0 = arith.constant 0 : i32
    %c0_i32_1 = arith.constant 0 : i32
    %c0_i32_2 = arith.constant 0 : i32
    %c0_i32_3 = arith.constant 0 : i32
    return %c0_i32, %c0_i32_0, %c0_i32_1, %c0_i32_2 : i32, i32, i32, i32
  }
  func.func @transform_3(%arg0: i32) -> (i32, i32, i32, i32) {
    %c0_i32 = arith.constant 0 : i32
    %c0_i32_0 = arith.constant 0 : i32
    %c0_i32_1 = arith.constant 0 : i32
    %c0_i32_2 = arith.constant 0 : i32
    %c0_i32_3 = arith.constant 0 : i32
    return %c0_i32, %c0_i32_0, %c0_i32_1, %c0_i32_2 : i32, i32, i32, i32
  }
  func.func @transform_4(%arg0: i32) -> (i32, i32, i32, i32) {
    %c0_i32 = arith.constant 0 : i32
    %c0_i32_0 = arith.constant 0 : i32
    %c0_i32_1 = arith.constant 0 : i32
    %c0_i32_2 = arith.constant 0 : i32
    return %arg0, %c0_i32, %c0_i32_0, %c0_i32_1 : i32, i32, i32, i32
  }
  func.func @transform_5(%arg0: i32) -> (i32, i32, i32, i32) {
    %c0_i32 = arith.constant 0 : i32
    %c0_i32_0 = arith.constant 0 : i32
    %c0_i32_1 = arith.constant 0 : i32
    %c0_i32_2 = arith.constant 0 : i32
    return %arg0, %c0_i32, %c0_i32_0, %c0_i32_1 : i32, i32, i32, i32
  }
}

module attributes {stable_mosaic.version = 11 : i64} {
  func.func @_se_gate_kernel(%arg0: i32, %arg1: memref<2x128xf32, #tpu.memory_space<vmem>>, %arg2: memref<128x128xbf16, #tpu.memory_space<vmem>>, %arg3: memref<1x128xf32, #tpu.memory_space<vmem>>, %arg4: memref<128x128xbf16, #tpu.memory_space<vmem>>, %arg5: memref<1x128xf32, #tpu.memory_space<vmem>>, %arg6: memref<2x128xf32, #tpu.memory_space<vmem>>) attributes {dimension_semantics = [#tpu.dimension_semantics<arbitrary>], iteration_bounds = array<i64: 1>, scalar_prefetch = 0 : i64, scratch_operands = 0 : i64, tpu.core_type = #tpu.core_type<tc>, window_params = [{pipeline_mode = #tpu.pipeline_mode<synchronous>, transform_indices = @transform_0, window_bounds = array<i64: 2, 128>}, {pipeline_mode = #tpu.pipeline_mode<synchronous>, transform_indices = @transform_1, window_bounds = array<i64: 128, 128>}, {pipeline_mode = #tpu.pipeline_mode<synchronous>, transform_indices = @transform_2, window_bounds = array<i64: 1, 128>}, {pipeline_mode = #tpu.pipeline_mode<synchronous>, transform_indices = @transform_3, window_bounds = array<i64: 128, 128>}, {pipeline_mode = #tpu.pipeline_mode<synchronous>, transform_indices = @transform_4, window_bounds = array<i64: 1, 128>}, {pipeline_mode = #tpu.pipeline_mode<synchronous>, transform_indices = @transform_5, window_bounds = array<i64: 2, 128>}]} {
    %c0 = arith.constant 0 : index
    %c0_0 = arith.constant 0 : index
    %0 = vector.load %arg1[%c0, %c0_0] : memref<2x128xf32, #tpu.memory_space<vmem>>, vector<2x128xf32>
    %1 = arith.truncf %0 : vector<2x128xf32> to vector<2x128xbf16>
    %c0_1 = arith.constant 0 : index
    %c0_2 = arith.constant 0 : index
    %2 = vector.load %arg2[%c0_1, %c0_2] : memref<128x128xbf16, #tpu.memory_space<vmem>>, vector<128x128xbf16>
    %cst = arith.constant dense<0.000000e+00> : vector<2x128xf32>
    %3 = tpu.matmul %1, %2, %cst {dimension_numbers = #tpu.dot_dimension_numbers<[1], [0], [0], [1], [0, 0, 1, 1], [], []>} : vector<2x128xbf16>, vector<128x128xbf16>, vector<2x128xf32> -> vector<2x128xf32>
    %c0_3 = arith.constant 0 : index
    %c0_4 = arith.constant 0 : index
    %4 = vector.load %arg3[%c0_3, %c0_4] : memref<1x128xf32, #tpu.memory_space<vmem>>, vector<1x128xf32>
    %5 = vector.broadcast %4 : vector<1x128xf32> to vector<2x128xf32>
    %6 = arith.addf %3, %5 : vector<2x128xf32>
    %7 = arith.negf %6 : vector<2x128xf32>
    %8 = math.exp %7 : vector<2x128xf32>
    %cst_5 = arith.constant 1.000000e+00 : f32
    %9 = vector.broadcast %cst_5 : f32 to vector<2x128xf32>
    %10 = arith.addf %9, %8 : vector<2x128xf32>
    %11 = arith.divf %9, %10 : vector<2x128xf32>
    %12 = arith.mulf %6, %11 : vector<2x128xf32>
    %13 = arith.truncf %12 : vector<2x128xf32> to vector<2x128xbf16>
    %c0_6 = arith.constant 0 : index
    %c0_7 = arith.constant 0 : index
    %14 = vector.load %arg4[%c0_6, %c0_7] : memref<128x128xbf16, #tpu.memory_space<vmem>>, vector<128x128xbf16>
    %cst_8 = arith.constant dense<0.000000e+00> : vector<2x128xf32>
    %15 = tpu.matmul %13, %14, %cst_8 {dimension_numbers = #tpu.dot_dimension_numbers<[1], [0], [0], [1], [0, 0, 1, 1], [], []>} : vector<2x128xbf16>, vector<128x128xbf16>, vector<2x128xf32> -> vector<2x128xf32>
    %c0_9 = arith.constant 0 : index
    %c0_10 = arith.constant 0 : index
    %16 = vector.load %arg5[%c0_9, %c0_10] : memref<1x128xf32, #tpu.memory_space<vmem>>, vector<1x128xf32>
    %17 = vector.broadcast %16 : vector<1x128xf32> to vector<2x128xf32>
    %18 = arith.addf %15, %17 : vector<2x128xf32>
    %19 = arith.negf %18 : vector<2x128xf32>
    %20 = math.exp %19 : vector<2x128xf32>
    %cst_11 = arith.constant 1.000000e+00 : f32
    %21 = vector.broadcast %cst_11 : f32 to vector<2x128xf32>
    %22 = arith.addf %21, %20 : vector<2x128xf32>
    %23 = arith.divf %21, %22 : vector<2x128xf32>
    %c0_12 = arith.constant 0 : index
    %c0_13 = arith.constant 0 : index
    %24 = vector.load %arg6[%c0_12, %c0_13] : memref<2x128xf32, #tpu.memory_space<vmem>>, vector<2x128xf32>
    tpu.vector_store %arg6[%c0_12, %c0_13], %23 {strides = array<i32>} : memref<2x128xf32, #tpu.memory_space<vmem>>, vector<2x128xf32>,
    return
  }
  func.func @transform_0(%arg0: i32) -> (i32, i32) {
    %c0_i32 = arith.constant 0 : i32
    %c0_i32_0 = arith.constant 0 : i32
    %c0_i32_1 = arith.constant 0 : i32
    return %c0_i32, %c0_i32_0 : i32, i32
  }
  func.func @transform_1(%arg0: i32) -> (i32, i32) {
    %c0_i32 = arith.constant 0 : i32
    %c0_i32_0 = arith.constant 0 : i32
    %c0_i32_1 = arith.constant 0 : i32
    return %c0_i32, %c0_i32_0 : i32, i32
  }
  func.func @transform_2(%arg0: i32) -> (i32, i32) {
    %c0_i32 = arith.constant 0 : i32
    %c0_i32_0 = arith.constant 0 : i32
    %c0_i32_1 = arith.constant 0 : i32
    return %c0_i32, %c0_i32_0 : i32, i32
  }
  func.func @transform_3(%arg0: i32) -> (i32, i32) {
    %c0_i32 = arith.constant 0 : i32
    %c0_i32_0 = arith.constant 0 : i32
    %c0_i32_1 = arith.constant 0 : i32
    return %c0_i32, %c0_i32_0 : i32, i32
  }
  func.func @transform_4(%arg0: i32) -> (i32, i32) {
    %c0_i32 = arith.constant 0 : i32
    %c0_i32_0 = arith.constant 0 : i32
    %c0_i32_1 = arith.constant 0 : i32
    return %c0_i32, %c0_i32_0 : i32, i32
  }
  func.func @transform_5(%arg0: i32) -> (i32, i32) {
    %c0_i32 = arith.constant 0 : i32
    %c0_i32_0 = arith.constant 0 : i32
    %c0_i32_1 = arith.constant 0 : i32
    return %c0_i32, %c0_i32_0 : i32, i32
  }
}

module attributes {stable_mosaic.version = 11 : i64} {
  func.func @_proj_res_kernel(%arg0: i32, %arg1: i32, %arg2: memref<1x64x128xbf16, #tpu.memory_space<vmem>>, %arg3: memref<1x1x128xf32, #tpu.memory_space<vmem>>, %arg4: memref<128x128xbf16, #tpu.memory_space<vmem>>, %arg5: memref<1x128xf32, #tpu.memory_space<vmem>>, %arg6: memref<1x128xf32, #tpu.memory_space<vmem>>, %arg7: memref<1x64x128xbf16, #tpu.memory_space<vmem>>, %arg8: memref<1x64x128xbf16, #tpu.memory_space<vmem>>) attributes {dimension_semantics = [#tpu.dimension_semantics<parallel>, #tpu.dimension_semantics<parallel>], iteration_bounds = array<i64: 2, 1>, scalar_prefetch = 0 : i64, scratch_operands = 0 : i64, tpu.core_type = #tpu.core_type<tc>, window_params = [{transform_indices = @transform_0, window_bounds = array<i64: 1, 64, 128>}, {transform_indices = @transform_1, window_bounds = array<i64: 1, 1, 128>}, {pipeline_mode = #tpu.pipeline_mode<synchronous>, transform_indices = @transform_2, window_bounds = array<i64: 128, 128>}, {pipeline_mode = #tpu.pipeline_mode<synchronous>, transform_indices = @transform_3, window_bounds = array<i64: 1, 128>}, {pipeline_mode = #tpu.pipeline_mode<synchronous>, transform_indices = @transform_4, window_bounds = array<i64: 1, 128>}, {transform_indices = @transform_5, window_bounds = array<i64: 1, 64, 128>}, {transform_indices = @transform_6, window_bounds = array<i64: 1, 64, 128>}]} {
    %c0 = arith.constant 0 : index
    %c0_0 = arith.constant 0 : index
    %c0_1 = arith.constant 0 : index
    %0 = vector.load %arg2[%c0, %c0_0, %c0_1] : memref<1x64x128xbf16, #tpu.memory_space<vmem>>, vector<1x64x128xbf16>
    %1 = vector.shape_cast %0 : vector<1x64x128xbf16> to vector<64x128xbf16>
    %2 = arith.extf %1 : vector<64x128xbf16> to vector<64x128xf32>
    %c0_2 = arith.constant 0 : index
    %c0_3 = arith.constant 0 : index
    %c0_4 = arith.constant 0 : index
    %3 = vector.load %arg3[%c0_2, %c0_3, %c0_4] : memref<1x1x128xf32, #tpu.memory_space<vmem>>, vector<1x1x128xf32>
    %4 = vector.shape_cast %3 : vector<1x1x128xf32> to vector<1x128xf32>
    %5 = vector.broadcast %4 : vector<1x128xf32> to vector<64x128xf32>
    %6 = arith.mulf %2, %5 : vector<64x128xf32>
    %7 = arith.truncf %6 : vector<64x128xf32> to vector<64x128xbf16>
    %c0_5 = arith.constant 0 : index
    %c0_6 = arith.constant 0 : index
    %8 = vector.load %arg4[%c0_5, %c0_6] : memref<128x128xbf16, #tpu.memory_space<vmem>>, vector<128x128xbf16>
    %cst = arith.constant dense<0.000000e+00> : vector<64x128xf32>
    %9 = tpu.matmul %7, %8, %cst {dimension_numbers = #tpu.dot_dimension_numbers<[1], [0], [0], [1], [0, 0, 1, 1], [], []>} : vector<64x128xbf16>, vector<128x128xbf16>, vector<64x128xf32> -> vector<64x128xf32>
    %c0_7 = arith.constant 0 : index
    %c0_8 = arith.constant 0 : index
    %10 = vector.load %arg5[%c0_7, %c0_8] : memref<1x128xf32, #tpu.memory_space<vmem>>, vector<1x128xf32>
    %11 = vector.broadcast %10 : vector<1x128xf32> to vector<64x128xf32>
    %12 = arith.mulf %9, %11 : vector<64x128xf32>
    %c0_9 = arith.constant 0 : index
    %c0_10 = arith.constant 0 : index
    %13 = vector.load %arg6[%c0_9, %c0_10] : memref<1x128xf32, #tpu.memory_space<vmem>>, vector<1x128xf32>
    %14 = vector.broadcast %13 : vector<1x128xf32> to vector<64x128xf32>
    %15 = arith.addf %12, %14 : vector<64x128xf32>
    %16 = arith.negf %15 : vector<64x128xf32>
    %17 = math.exp %16 : vector<64x128xf32>
    %cst_11 = arith.constant 1.000000e+00 : f32
    %18 = vector.broadcast %cst_11 : f32 to vector<64x128xf32>
    %19 = arith.addf %18, %17 : vector<64x128xf32>
    %20 = arith.divf %18, %19 : vector<64x128xf32>
    %21 = arith.mulf %15, %20 : vector<64x128xf32>
    %c0_12 = arith.constant 0 : index
    %c0_13 = arith.constant 0 : index
    %c0_14 = arith.constant 0 : index
    %22 = vector.load %arg7[%c0_12, %c0_13, %c0_14] : memref<1x64x128xbf16, #tpu.memory_space<vmem>>, vector<1x64x128xbf16>
    %23 = vector.shape_cast %22 : vector<1x64x128xbf16> to vector<64x128xbf16>
    %24 = arith.extf %23 : vector<64x128xbf16> to vector<64x128xf32>
    %25 = arith.addf %21, %24 : vector<64x128xf32>
    %26 = vector.shape_cast %25 : vector<64x128xf32> to vector<1x64x128xf32>
    %27 = arith.truncf %26 : vector<1x64x128xf32> to vector<1x64x128xbf16>
    %c0_15 = arith.constant 0 : index
    %c0_16 = arith.constant 0 : index
    %c0_17 = arith.constant 0 : index
    %28 = vector.load %arg8[%c0_15, %c0_16, %c0_17] : memref<1x64x128xbf16, #tpu.memory_space<vmem>>, vector<1x64x128xbf16>
    tpu.vector_store %arg8[%c0_15, %c0_16, %c0_17], %27 {strides = array<i32>} : memref<1x64x128xbf16, #tpu.memory_space<vmem>>, vector<1x64x128xbf16>,
    return
  }
  func.func @transform_0(%arg0: i32, %arg1: i32) -> (i32, i32, i32) {
    %c0_i32 = arith.constant 0 : i32
    %c0_i32_0 = arith.constant 0 : i32
    return %arg0, %arg1, %c0_i32 : i32, i32, i32
  }
  func.func @transform_1(%arg0: i32, %arg1: i32) -> (i32, i32, i32) {
    %c0_i32 = arith.constant 0 : i32
    %c0_i32_0 = arith.constant 0 : i32
    %c0_i32_1 = arith.constant 0 : i32
    return %arg0, %c0_i32, %c0_i32_0 : i32, i32, i32
  }
  func.func @transform_2(%arg0: i32, %arg1: i32) -> (i32, i32) {
    %c0_i32 = arith.constant 0 : i32
    %c0_i32_0 = arith.constant 0 : i32
    %c0_i32_1 = arith.constant 0 : i32
    return %c0_i32, %c0_i32_0 : i32, i32
  }
  func.func @transform_3(%arg0: i32, %arg1: i32) -> (i32, i32) {
    %c0_i32 = arith.constant 0 : i32
    %c0_i32_0 = arith.constant 0 : i32
    %c0_i32_1 = arith.constant 0 : i32
    return %c0_i32, %c0_i32_0 : i32, i32
  }
  func.func @transform_4(%arg0: i32, %arg1: i32) -> (i32, i32) {
    %c0_i32 = arith.constant 0 : i32
    %c0_i32_0 = arith.constant 0 : i32
    %c0_i32_1 = arith.constant 0 : i32
    return %c0_i32, %c0_i32_0 : i32, i32
  }
  func.func @transform_5(%arg0: i32, %arg1: i32) -> (i32, i32, i32) {
    %c0_i32 = arith.constant 0 : i32
    %c0_i32_0 = arith.constant 0 : i32
    return %arg0, %arg1, %c0_i32 : i32, i32, i32
  }
  func.func @transform_6(%arg0: i32, %arg1: i32) -> (i32, i32, i32) {
    %c0_i32 = arith.constant 0 : i32
    %c0_i32_0 = arith.constant 0 : i32
    return %arg0, %arg1, %c0_i32 : i32, i32, i32
  }
}

module attributes {stable_mosaic.version = 11 : i64} {
  func.func @_dw_s2_kernel(%arg0: i32, %arg1: memref<1x5x5x128xbf16, #tpu.memory_space<vmem>>, %arg2: memref<1x5x5x128xbf16, #tpu.memory_space<vmem>>, %arg3: memref<1x5x5x128xbf16, #tpu.memory_space<vmem>>, %arg4: memref<1x5x5x128xbf16, #tpu.memory_space<vmem>>, %arg5: memref<9x128xf32, #tpu.memory_space<vmem>>, %arg6: memref<1x1x1x128xf32, #tpu.memory_space<vmem>>, %arg7: memref<1x1x1x128xf32, #tpu.memory_space<vmem>>, %arg8: memref<1x4x4x128xbf16, #tpu.memory_space<vmem>>, %arg9: memref<1x1x1x128xf32, #tpu.memory_space<vmem>>) attributes {dimension_semantics = [#tpu.dimension_semantics<parallel>], iteration_bounds = array<i64: 2>, scalar_prefetch = 0 : i64, scratch_operands = 0 : i64, tpu.core_type = #tpu.core_type<tc>, window_params = [{transform_indices = @transform_0, window_bounds = array<i64: 1, 5, 5, 128>}, {transform_indices = @transform_1, window_bounds = array<i64: 1, 5, 5, 128>}, {transform_indices = @transform_2, window_bounds = array<i64: 1, 5, 5, 128>}, {transform_indices = @transform_3, window_bounds = array<i64: 1, 5, 5, 128>}, {pipeline_mode = #tpu.pipeline_mode<synchronous>, transform_indices = @transform_4, window_bounds = array<i64: 9, 128>}, {pipeline_mode = #tpu.pipeline_mode<synchronous>, transform_indices = @transform_5, window_bounds = array<i64: 1, 1, 1, 128>}, {pipeline_mode = #tpu.pipeline_mode<synchronous>, transform_indices = @transform_6, window_bounds = array<i64: 1, 1, 1, 128>}, {transform_indices = @transform_7, window_bounds = array<i64: 1, 4, 4, 128>}, {transform_indices = @transform_8, window_bounds = array<i64: 1, 1, 1, 128>}]} {
    %c0 = arith.constant 0 : index
    %c0_0 = arith.constant 0 : index
    %c0_1 = arith.constant 0 : index
    %c0_2 = arith.constant 0 : index
    %0 = vector.load %arg1[%c0, %c0_0, %c0_1, %c0_2] : memref<1x5x5x128xbf16, #tpu.memory_space<vmem>>, vector<1x5x5x128xbf16>
    %1 = arith.extf %0 : vector<1x5x5x128xbf16> to vector<1x5x5x128xf32>
    %c0_3 = arith.constant 0 : index
    %c0_4 = arith.constant 0 : index
    %c0_5 = arith.constant 0 : index
    %c0_6 = arith.constant 0 : index
    %2 = vector.load %arg2[%c0_3, %c0_4, %c0_5, %c0_6] : memref<1x5x5x128xbf16, #tpu.memory_space<vmem>>, vector<1x5x5x128xbf16>
    %3 = arith.extf %2 : vector<1x5x5x128xbf16> to vector<1x5x5x128xf32>
    %c0_7 = arith.constant 0 : index
    %c0_8 = arith.constant 0 : index
    %c0_9 = arith.constant 0 : index
    %c0_10 = arith.constant 0 : index
    %4 = vector.load %arg3[%c0_7, %c0_8, %c0_9, %c0_10] : memref<1x5x5x128xbf16, #tpu.memory_space<vmem>>, vector<1x5x5x128xbf16>
    %5 = arith.extf %4 : vector<1x5x5x128xbf16> to vector<1x5x5x128xf32>
    %c0_11 = arith.constant 0 : index
    %c0_12 = arith.constant 0 : index
    %c0_13 = arith.constant 0 : index
    %c0_14 = arith.constant 0 : index
    %6 = vector.load %arg4[%c0_11, %c0_12, %c0_13, %c0_14] : memref<1x5x5x128xbf16, #tpu.memory_space<vmem>>, vector<1x5x5x128xbf16>
    %7 = arith.extf %6 : vector<1x5x5x128xbf16> to vector<1x5x5x128xf32>
    %c0_15 = arith.constant 0 : index
    %c0_16 = arith.constant 0 : index
    %8 = vector.load %arg5[%c0_15, %c0_16] : memref<9x128xf32, #tpu.memory_space<vmem>>, vector<9x128xf32>
    %cst = arith.constant 0.000000e+00 : f32
    %9 = vector.broadcast %cst : f32 to vector<1x4x4x128xf32>
    %10 = vector.extract_strided_slice %1 {offsets = [0, 0, 0, 0], sizes = [1, 4, 4, 128], strides = [1, 1, 1, 1]} : vector<1x5x5x128xf32> to vector<1x4x4x128xf32>
    %11 = vector.extract_strided_slice %8 {offsets = [0, 0], sizes = [1, 128], strides = [1, 1]} : vector<9x128xf32> to vector<1x128xf32>
    %12 = vector.shape_cast %11 : vector<1x128xf32> to vector<128xf32>
    %13 = vector.shape_cast %12 : vector<128xf32> to vector<1x1x1x128xf32>
    %14 = vector.broadcast %13 : vector<1x1x1x128xf32> to vector<1x4x4x128xf32>
    %15 = arith.mulf %10, %14 : vector<1x4x4x128xf32>
    %16 = arith.addf %9, %15 : vector<1x4x4x128xf32>
    %17 = vector.extract_strided_slice %3 {offsets = [0, 0, 0, 0], sizes = [1, 4, 4, 128], strides = [1, 1, 1, 1]} : vector<1x5x5x128xf32> to vector<1x4x4x128xf32>
    %18 = vector.extract_strided_slice %8 {offsets = [1, 0], sizes = [1, 128], strides = [1, 1]} : vector<9x128xf32> to vector<1x128xf32>
    %19 = vector.shape_cast %18 : vector<1x128xf32> to vector<128xf32>
    %20 = vector.shape_cast %19 : vector<128xf32> to vector<1x1x1x128xf32>
    %21 = vector.broadcast %20 : vector<1x1x1x128xf32> to vector<1x4x4x128xf32>
    %22 = arith.mulf %17, %21 : vector<1x4x4x128xf32>
    %23 = arith.addf %16, %22 : vector<1x4x4x128xf32>
    %24 = vector.extract_strided_slice %1 {offsets = [0, 0, 1, 0], sizes = [1, 4, 4, 128], strides = [1, 1, 1, 1]} : vector<1x5x5x128xf32> to vector<1x4x4x128xf32>
    %25 = vector.extract_strided_slice %8 {offsets = [2, 0], sizes = [1, 128], strides = [1, 1]} : vector<9x128xf32> to vector<1x128xf32>
    %26 = vector.shape_cast %25 : vector<1x128xf32> to vector<128xf32>
    %27 = vector.shape_cast %26 : vector<128xf32> to vector<1x1x1x128xf32>
    %28 = vector.broadcast %27 : vector<1x1x1x128xf32> to vector<1x4x4x128xf32>
    %29 = arith.mulf %24, %28 : vector<1x4x4x128xf32>
    %30 = arith.addf %23, %29 : vector<1x4x4x128xf32>
    %31 = vector.extract_strided_slice %5 {offsets = [0, 0, 0, 0], sizes = [1, 4, 4, 128], strides = [1, 1, 1, 1]} : vector<1x5x5x128xf32> to vector<1x4x4x128xf32>
    %32 = vector.extract_strided_slice %8 {offsets = [3, 0], sizes = [1, 128], strides = [1, 1]} : vector<9x128xf32> to vector<1x128xf32>
    %33 = vector.shape_cast %32 : vector<1x128xf32> to vector<128xf32>
    %34 = vector.shape_cast %33 : vector<128xf32> to vector<1x1x1x128xf32>
    %35 = vector.broadcast %34 : vector<1x1x1x128xf32> to vector<1x4x4x128xf32>
    %36 = arith.mulf %31, %35 : vector<1x4x4x128xf32>
    %37 = arith.addf %30, %36 : vector<1x4x4x128xf32>
    %38 = vector.extract_strided_slice %7 {offsets = [0, 0, 0, 0], sizes = [1, 4, 4, 128], strides = [1, 1, 1, 1]} : vector<1x5x5x128xf32> to vector<1x4x4x128xf32>
    %39 = vector.extract_strided_slice %8 {offsets = [4, 0], sizes = [1, 128], strides = [1, 1]} : vector<9x128xf32> to vector<1x128xf32>
    %40 = vector.shape_cast %39 : vector<1x128xf32> to vector<128xf32>
    %41 = vector.shape_cast %40 : vector<128xf32> to vector<1x1x1x128xf32>
    %42 = vector.broadcast %41 : vector<1x1x1x128xf32> to vector<1x4x4x128xf32>
    %43 = arith.mulf %38, %42 : vector<1x4x4x128xf32>
    %44 = arith.addf %37, %43 : vector<1x4x4x128xf32>
    %45 = vector.extract_strided_slice %5 {offsets = [0, 0, 1, 0], sizes = [1, 4, 4, 128], strides = [1, 1, 1, 1]} : vector<1x5x5x128xf32> to vector<1x4x4x128xf32>
    %46 = vector.extract_strided_slice %8 {offsets = [5, 0], sizes = [1, 128], strides = [1, 1]} : vector<9x128xf32> to vector<1x128xf32>
    %47 = vector.shape_cast %46 : vector<1x128xf32> to vector<128xf32>
    %48 = vector.shape_cast %47 : vector<128xf32> to vector<1x1x1x128xf32>
    %49 = vector.broadcast %48 : vector<1x1x1x128xf32> to vector<1x4x4x128xf32>
    %50 = arith.mulf %45, %49 : vector<1x4x4x128xf32>
    %51 = arith.addf %44, %50 : vector<1x4x4x128xf32>
    %52 = vector.extract_strided_slice %1 {offsets = [0, 1, 0, 0], sizes = [1, 4, 4, 128], strides = [1, 1, 1, 1]} : vector<1x5x5x128xf32> to vector<1x4x4x128xf32>
    %53 = vector.extract_strided_slice %8 {offsets = [6, 0], sizes = [1, 128], strides = [1, 1]} : vector<9x128xf32> to vector<1x128xf32>
    %54 = vector.shape_cast %53 : vector<1x128xf32> to vector<128xf32>
    %55 = vector.shape_cast %54 : vector<128xf32> to vector<1x1x1x128xf32>
    %56 = vector.broadcast %55 : vector<1x1x1x128xf32> to vector<1x4x4x128xf32>
    %57 = arith.mulf %52, %56 : vector<1x4x4x128xf32>
    %58 = arith.addf %51, %57 : vector<1x4x4x128xf32>
    %59 = vector.extract_strided_slice %3 {offsets = [0, 1, 0, 0], sizes = [1, 4, 4, 128], strides = [1, 1, 1, 1]} : vector<1x5x5x128xf32> to vector<1x4x4x128xf32>
    %60 = vector.extract_strided_slice %8 {offsets = [7, 0], sizes = [1, 128], strides = [1, 1]} : vector<9x128xf32> to vector<1x128xf32>
    %61 = vector.shape_cast %60 : vector<1x128xf32> to vector<128xf32>
    %62 = vector.shape_cast %61 : vector<128xf32> to vector<1x1x1x128xf32>
    %63 = vector.broadcast %62 : vector<1x1x1x128xf32> to vector<1x4x4x128xf32>
    %64 = arith.mulf %59, %63 : vector<1x4x4x128xf32>
    %65 = arith.addf %58, %64 : vector<1x4x4x128xf32>
    %66 = vector.extract_strided_slice %1 {offsets = [0, 1, 1, 0], sizes = [1, 4, 4, 128], strides = [1, 1, 1, 1]} : vector<1x5x5x128xf32> to vector<1x4x4x128xf32>
    %67 = vector.extract_strided_slice %8 {offsets = [8, 0], sizes = [1, 128], strides = [1, 1]} : vector<9x128xf32> to vector<1x128xf32>
    %68 = vector.shape_cast %67 : vector<1x128xf32> to vector<128xf32>
    %69 = vector.shape_cast %68 : vector<128xf32> to vector<1x1x1x128xf32>
    %70 = vector.broadcast %69 : vector<1x1x1x128xf32> to vector<1x4x4x128xf32>
    %71 = arith.mulf %66, %70 : vector<1x4x4x128xf32>
    %72 = arith.addf %65, %71 : vector<1x4x4x128xf32>
    %c0_17 = arith.constant 0 : index
    %c0_18 = arith.constant 0 : index
    %c0_19 = arith.constant 0 : index
    %c0_20 = arith.constant 0 : index
    %73 = vector.load %arg6[%c0_17, %c0_18, %c0_19, %c0_20] : memref<1x1x1x128xf32, #tpu.memory_space<vmem>>, vector<1x1x1x128xf32>
    %74 = vector.broadcast %73 : vector<1x1x1x128xf32> to vector<1x4x4x128xf32>
    %75 = arith.mulf %72, %74 : vector<1x4x4x128xf32>
    %c0_21 = arith.constant 0 : index
    %c0_22 = arith.constant 0 : index
    %c0_23 = arith.constant 0 : index
    %c0_24 = arith.constant 0 : index
    %76 = vector.load %arg7[%c0_21, %c0_22, %c0_23, %c0_24] : memref<1x1x1x128xf32, #tpu.memory_space<vmem>>, vector<1x1x1x128xf32>
    %77 = vector.broadcast %76 : vector<1x1x1x128xf32> to vector<1x4x4x128xf32>
    %78 = arith.addf %75, %77 : vector<1x4x4x128xf32>
    %79 = arith.negf %78 : vector<1x4x4x128xf32>
    %80 = math.exp %79 : vector<1x4x4x128xf32>
    %cst_25 = arith.constant 1.000000e+00 : f32
    %81 = vector.broadcast %cst_25 : f32 to vector<1x4x4x128xf32>
    %82 = arith.addf %81, %80 : vector<1x4x4x128xf32>
    %83 = arith.divf %81, %82 : vector<1x4x4x128xf32>
    %84 = arith.mulf %78, %83 : vector<1x4x4x128xf32>
    %85 = arith.truncf %84 : vector<1x4x4x128xf32> to vector<1x4x4x128xbf16>
    %c0_26 = arith.constant 0 : index
    %c0_27 = arith.constant 0 : index
    %c0_28 = arith.constant 0 : index
    %c0_29 = arith.constant 0 : index
    %86 = vector.load %arg8[%c0_26, %c0_27, %c0_28, %c0_29] : memref<1x4x4x128xbf16, #tpu.memory_space<vmem>>, vector<1x4x4x128xbf16>
    tpu.vector_store %arg8[%c0_26, %c0_27, %c0_28, %c0_29], %85 {strides = array<i32>} : memref<1x4x4x128xbf16, #tpu.memory_space<vmem>>, vector<1x4x4x128xbf16>,
    %cst_30 = arith.constant dense<0.000000e+00> : vector<1x128xf32>
    %87 = vector.multi_reduction <add>, %84, %cst_30 [1, 2] : vector<1x4x4x128xf32> to vector<1x128xf32>
    %88 = vector.shape_cast %87 : vector<1x128xf32> to vector<1x1x1x128xf32>
    %cst_31 = arith.constant 1.600000e+01 : f32
    %89 = vector.broadcast %cst_31 : f32 to vector<1x1x1x128xf32>
    %90 = arith.divf %88, %89 : vector<1x1x1x128xf32>
    %c0_32 = arith.constant 0 : index
    %c0_33 = arith.constant 0 : index
    %c0_34 = arith.constant 0 : index
    %c0_35 = arith.constant 0 : index
    %91 = vector.load %arg9[%c0_32, %c0_33, %c0_34, %c0_35] : memref<1x1x1x128xf32, #tpu.memory_space<vmem>>, vector<1x1x1x128xf32>
    tpu.vector_store %arg9[%c0_32, %c0_33, %c0_34, %c0_35], %90 {strides = array<i32>} : memref<1x1x1x128xf32, #tpu.memory_space<vmem>>, vector<1x1x1x128xf32>,
    return
  }
  func.func @transform_0(%arg0: i32) -> (i32, i32, i32, i32) {
    %c0_i32 = arith.constant 0 : i32
    %c0_i32_0 = arith.constant 0 : i32
    %c0_i32_1 = arith.constant 0 : i32
    %c0_i32_2 = arith.constant 0 : i32
    return %arg0, %c0_i32, %c0_i32_0, %c0_i32_1 : i32, i32, i32, i32
  }
  func.func @transform_1(%arg0: i32) -> (i32, i32, i32, i32) {
    %c0_i32 = arith.constant 0 : i32
    %c0_i32_0 = arith.constant 0 : i32
    %c0_i32_1 = arith.constant 0 : i32
    %c0_i32_2 = arith.constant 0 : i32
    return %arg0, %c0_i32, %c0_i32_0, %c0_i32_1 : i32, i32, i32, i32
  }
  func.func @transform_2(%arg0: i32) -> (i32, i32, i32, i32) {
    %c0_i32 = arith.constant 0 : i32
    %c0_i32_0 = arith.constant 0 : i32
    %c0_i32_1 = arith.constant 0 : i32
    %c0_i32_2 = arith.constant 0 : i32
    return %arg0, %c0_i32, %c0_i32_0, %c0_i32_1 : i32, i32, i32, i32
  }
  func.func @transform_3(%arg0: i32) -> (i32, i32, i32, i32) {
    %c0_i32 = arith.constant 0 : i32
    %c0_i32_0 = arith.constant 0 : i32
    %c0_i32_1 = arith.constant 0 : i32
    %c0_i32_2 = arith.constant 0 : i32
    return %arg0, %c0_i32, %c0_i32_0, %c0_i32_1 : i32, i32, i32, i32
  }
  func.func @transform_4(%arg0: i32) -> (i32, i32) {
    %c0_i32 = arith.constant 0 : i32
    %c0_i32_0 = arith.constant 0 : i32
    %c0_i32_1 = arith.constant 0 : i32
    return %c0_i32, %c0_i32_0 : i32, i32
  }
  func.func @transform_5(%arg0: i32) -> (i32, i32, i32, i32) {
    %c0_i32 = arith.constant 0 : i32
    %c0_i32_0 = arith.constant 0 : i32
    %c0_i32_1 = arith.constant 0 : i32
    %c0_i32_2 = arith.constant 0 : i32
    %c0_i32_3 = arith.constant 0 : i32
    return %c0_i32, %c0_i32_0, %c0_i32_1, %c0_i32_2 : i32, i32, i32, i32
  }
  func.func @transform_6(%arg0: i32) -> (i32, i32, i32, i32) {
    %c0_i32 = arith.constant 0 : i32
    %c0_i32_0 = arith.constant 0 : i32
    %c0_i32_1 = arith.constant 0 : i32
    %c0_i32_2 = arith.constant 0 : i32
    %c0_i32_3 = arith.constant 0 : i32
    return %c0_i32, %c0_i32_0, %c0_i32_1, %c0_i32_2 : i32, i32, i32, i32
  }
  func.func @transform_7(%arg0: i32) -> (i32, i32, i32, i32) {
    %c0_i32 = arith.constant 0 : i32
    %c0_i32_0 = arith.constant 0 : i32
    %c0_i32_1 = arith.constant 0 : i32
    %c0_i32_2 = arith.constant 0 : i32
    return %arg0, %c0_i32, %c0_i32_0, %c0_i32_1 : i32, i32, i32, i32
  }
  func.func @transform_8(%arg0: i32) -> (i32, i32, i32, i32) {
    %c0_i32 = arith.constant 0 : i32
    %c0_i32_0 = arith.constant 0 : i32
    %c0_i32_1 = arith.constant 0 : i32
    %c0_i32_2 = arith.constant 0 : i32
    return %arg0, %c0_i32, %c0_i32_0, %c0_i32_1 : i32, i32, i32, i32
  }
}

module attributes {stable_mosaic.version = 11 : i64} {
  func.func @_proj_kernel(%arg0: i32, %arg1: i32, %arg2: memref<1x16x128xbf16, #tpu.memory_space<vmem>>, %arg3: memref<1x1x128xf32, #tpu.memory_space<vmem>>, %arg4: memref<128x128xbf16, #tpu.memory_space<vmem>>, %arg5: memref<1x128xf32, #tpu.memory_space<vmem>>, %arg6: memref<1x128xf32, #tpu.memory_space<vmem>>, %arg7: memref<1x16x128xbf16, #tpu.memory_space<vmem>>) attributes {dimension_semantics = [#tpu.dimension_semantics<parallel>, #tpu.dimension_semantics<parallel>], iteration_bounds = array<i64: 2, 1>, scalar_prefetch = 0 : i64, scratch_operands = 0 : i64, tpu.core_type = #tpu.core_type<tc>, window_params = [{transform_indices = @transform_0, window_bounds = array<i64: 1, 16, 128>}, {transform_indices = @transform_1, window_bounds = array<i64: 1, 1, 128>}, {pipeline_mode = #tpu.pipeline_mode<synchronous>, transform_indices = @transform_2, window_bounds = array<i64: 128, 128>}, {pipeline_mode = #tpu.pipeline_mode<synchronous>, transform_indices = @transform_3, window_bounds = array<i64: 1, 128>}, {pipeline_mode = #tpu.pipeline_mode<synchronous>, transform_indices = @transform_4, window_bounds = array<i64: 1, 128>}, {transform_indices = @transform_5, window_bounds = array<i64: 1, 16, 128>}]} {
    %c0 = arith.constant 0 : index
    %c0_0 = arith.constant 0 : index
    %c0_1 = arith.constant 0 : index
    %0 = vector.load %arg2[%c0, %c0_0, %c0_1] : memref<1x16x128xbf16, #tpu.memory_space<vmem>>, vector<1x16x128xbf16>
    %1 = vector.shape_cast %0 : vector<1x16x128xbf16> to vector<16x128xbf16>
    %2 = arith.extf %1 : vector<16x128xbf16> to vector<16x128xf32>
    %c0_2 = arith.constant 0 : index
    %c0_3 = arith.constant 0 : index
    %c0_4 = arith.constant 0 : index
    %3 = vector.load %arg3[%c0_2, %c0_3, %c0_4] : memref<1x1x128xf32, #tpu.memory_space<vmem>>, vector<1x1x128xf32>
    %4 = vector.shape_cast %3 : vector<1x1x128xf32> to vector<1x128xf32>
    %5 = vector.broadcast %4 : vector<1x128xf32> to vector<16x128xf32>
    %6 = arith.mulf %2, %5 : vector<16x128xf32>
    %7 = arith.truncf %6 : vector<16x128xf32> to vector<16x128xbf16>
    %c0_5 = arith.constant 0 : index
    %c0_6 = arith.constant 0 : index
    %8 = vector.load %arg4[%c0_5, %c0_6] : memref<128x128xbf16, #tpu.memory_space<vmem>>, vector<128x128xbf16>
    %cst = arith.constant dense<0.000000e+00> : vector<16x128xf32>
    %9 = tpu.matmul %7, %8, %cst {dimension_numbers = #tpu.dot_dimension_numbers<[1], [0], [0], [1], [0, 0, 1, 1], [], []>} : vector<16x128xbf16>, vector<128x128xbf16>, vector<16x128xf32> -> vector<16x128xf32>
    %c0_7 = arith.constant 0 : index
    %c0_8 = arith.constant 0 : index
    %10 = vector.load %arg5[%c0_7, %c0_8] : memref<1x128xf32, #tpu.memory_space<vmem>>, vector<1x128xf32>
    %11 = vector.broadcast %10 : vector<1x128xf32> to vector<16x128xf32>
    %12 = arith.mulf %9, %11 : vector<16x128xf32>
    %c0_9 = arith.constant 0 : index
    %c0_10 = arith.constant 0 : index
    %13 = vector.load %arg6[%c0_9, %c0_10] : memref<1x128xf32, #tpu.memory_space<vmem>>, vector<1x128xf32>
    %14 = vector.broadcast %13 : vector<1x128xf32> to vector<16x128xf32>
    %15 = arith.addf %12, %14 : vector<16x128xf32>
    %16 = arith.negf %15 : vector<16x128xf32>
    %17 = math.exp %16 : vector<16x128xf32>
    %cst_11 = arith.constant 1.000000e+00 : f32
    %18 = vector.broadcast %cst_11 : f32 to vector<16x128xf32>
    %19 = arith.addf %18, %17 : vector<16x128xf32>
    %20 = arith.divf %18, %19 : vector<16x128xf32>
    %21 = arith.mulf %15, %20 : vector<16x128xf32>
    %22 = vector.shape_cast %21 : vector<16x128xf32> to vector<1x16x128xf32>
    %23 = arith.truncf %22 : vector<1x16x128xf32> to vector<1x16x128xbf16>
    %c0_12 = arith.constant 0 : index
    %c0_13 = arith.constant 0 : index
    %c0_14 = arith.constant 0 : index
    %24 = vector.load %arg7[%c0_12, %c0_13, %c0_14] : memref<1x16x128xbf16, #tpu.memory_space<vmem>>, vector<1x16x128xbf16>
    tpu.vector_store %arg7[%c0_12, %c0_13, %c0_14], %23 {strides = array<i32>} : memref<1x16x128xbf16, #tpu.memory_space<vmem>>, vector<1x16x128xbf16>,
    return
  }
  func.func @transform_0(%arg0: i32, %arg1: i32) -> (i32, i32, i32) {
    %c0_i32 = arith.constant 0 : i32
    %c0_i32_0 = arith.constant 0 : i32
    return %arg0, %arg1, %c0_i32 : i32, i32, i32
  }
  func.func @transform_1(%arg0: i32, %arg1: i32) -> (i32, i32, i32) {
    %c0_i32 = arith.constant 0 : i32
    %c0_i32_0 = arith.constant 0 : i32
    %c0_i32_1 = arith.constant 0 : i32
    return %arg0, %c0_i32, %c0_i32_0 : i32, i32, i32
  }
  func.func @transform_2(%arg0: i32, %arg1: i32) -> (i32, i32) {
    %c0_i32 = arith.constant 0 : i32
    %c0_i32_0 = arith.constant 0 : i32
    %c0_i32_1 = arith.constant 0 : i32
    return %c0_i32, %c0_i32_0 : i32, i32
  }
  func.func @transform_3(%arg0: i32, %arg1: i32) -> (i32, i32) {
    %c0_i32 = arith.constant 0 : i32
    %c0_i32_0 = arith.constant 0 : i32
    %c0_i32_1 = arith.constant 0 : i32
    return %c0_i32, %c0_i32_0 : i32, i32
  }
  func.func @transform_4(%arg0: i32, %arg1: i32) -> (i32, i32) {
    %c0_i32 = arith.constant 0 : i32
    %c0_i32_0 = arith.constant 0 : i32
    %c0_i32_1 = arith.constant 0 : i32
    return %c0_i32, %c0_i32_0 : i32, i32
  }
  func.func @transform_5(%arg0: i32, %arg1: i32) -> (i32, i32, i32) {
    %c0_i32 = arith.constant 0 : i32
    %c0_i32_0 = arith.constant 0 : i32
    return %arg0, %arg1, %c0_i32 : i32, i32, i32
  }
}

module attributes {stable_mosaic.version = 11 : i64} {
  func.func @_head_pool_fc_kernel(%arg0: i32, %arg1: memref<1x16x128xbf16, #tpu.memory_space<vmem>>, %arg2: memref<128x128xbf16, #tpu.memory_space<vmem>>, %arg3: memref<1x128xf32, #tpu.memory_space<vmem>>, %arg4: memref<1x128xf32, #tpu.memory_space<vmem>>, %arg5: memref<128x128xbf16, #tpu.memory_space<vmem>>, %arg6: memref<1x128xf32, #tpu.memory_space<vmem>>, %arg7: memref<1x1x128xf32, #tpu.memory_space<vmem>>) attributes {dimension_semantics = [#tpu.dimension_semantics<parallel>], iteration_bounds = array<i64: 2>, scalar_prefetch = 0 : i64, scratch_operands = 0 : i64, tpu.core_type = #tpu.core_type<tc>, window_params = [{transform_indices = @transform_0, window_bounds = array<i64: 1, 16, 128>}, {pipeline_mode = #tpu.pipeline_mode<synchronous>, transform_indices = @transform_1, window_bounds = array<i64: 128, 128>}, {pipeline_mode = #tpu.pipeline_mode<synchronous>, transform_indices = @transform_2, window_bounds = array<i64: 1, 128>}, {pipeline_mode = #tpu.pipeline_mode<synchronous>, transform_indices = @transform_3, window_bounds = array<i64: 1, 128>}, {pipeline_mode = #tpu.pipeline_mode<synchronous>, transform_indices = @transform_4, window_bounds = array<i64: 128, 128>}, {pipeline_mode = #tpu.pipeline_mode<synchronous>, transform_indices = @transform_5, window_bounds = array<i64: 1, 128>}, {transform_indices = @transform_6, window_bounds = array<i64: 1, 1, 128>}]} {
    %c0 = arith.constant 0 : index
    %c0_0 = arith.constant 0 : index
    %c0_1 = arith.constant 0 : index
    %0 = vector.load %arg1[%c0, %c0_0, %c0_1] : memref<1x16x128xbf16, #tpu.memory_space<vmem>>, vector<1x16x128xbf16>
    %1 = vector.shape_cast %0 : vector<1x16x128xbf16> to vector<16x128xbf16>
    %c0_2 = arith.constant 0 : index
    %c0_3 = arith.constant 0 : index
    %2 = vector.load %arg2[%c0_2, %c0_3] : memref<128x128xbf16, #tpu.memory_space<vmem>>, vector<128x128xbf16>
    %cst = arith.constant dense<0.000000e+00> : vector<16x128xf32>
    %3 = tpu.matmul %1, %2, %cst {dimension_numbers = #tpu.dot_dimension_numbers<[1], [0], [0], [1], [0, 0, 1, 1], [], []>} : vector<16x128xbf16>, vector<128x128xbf16>, vector<16x128xf32> -> vector<16x128xf32>
    %c0_4 = arith.constant 0 : index
    %c0_5 = arith.constant 0 : index
    %4 = vector.load %arg3[%c0_4, %c0_5] : memref<1x128xf32, #tpu.memory_space<vmem>>, vector<1x128xf32>
    %5 = vector.broadcast %4 : vector<1x128xf32> to vector<16x128xf32>
    %6 = arith.mulf %3, %5 : vector<16x128xf32>
    %c0_6 = arith.constant 0 : index
    %c0_7 = arith.constant 0 : index
    %7 = vector.load %arg4[%c0_6, %c0_7] : memref<1x128xf32, #tpu.memory_space<vmem>>, vector<1x128xf32>
    %8 = vector.broadcast %7 : vector<1x128xf32> to vector<16x128xf32>
    %9 = arith.addf %6, %8 : vector<16x128xf32>
    %10 = arith.negf %9 : vector<16x128xf32>
    %11 = math.exp %10 : vector<16x128xf32>
    %cst_8 = arith.constant 1.000000e+00 : f32
    %12 = vector.broadcast %cst_8 : f32 to vector<16x128xf32>
    %13 = arith.addf %12, %11 : vector<16x128xf32>
    %14 = arith.divf %12, %13 : vector<16x128xf32>
    %15 = arith.mulf %9, %14 : vector<16x128xf32>
    %cst_9 = arith.constant dense<0.000000e+00> : vector<128xf32>
    %16 = vector.multi_reduction <add>, %15, %cst_9 [0] : vector<16x128xf32> to vector<128xf32>
    %17 = vector.shape_cast %16 : vector<128xf32> to vector<1x128xf32>
    %cst_10 = arith.constant 1.600000e+01 : f32
    %18 = vector.broadcast %cst_10 : f32 to vector<1x128xf32>
    %19 = arith.divf %17, %18 : vector<1x128xf32>
    %20 = arith.truncf %19 : vector<1x128xf32> to vector<1x128xbf16>
    %c0_11 = arith.constant 0 : index
    %c0_12 = arith.constant 0 : index
    %21 = vector.load %arg5[%c0_11, %c0_12] : memref<128x128xbf16, #tpu.memory_space<vmem>>, vector<128x128xbf16>
    %cst_13 = arith.constant dense<0.000000e+00> : vector<1x128xf32>
    %22 = tpu.matmul %20, %21, %cst_13 {dimension_numbers = #tpu.dot_dimension_numbers<[1], [0], [0], [1], [0, 0, 1, 1], [], []>} : vector<1x128xbf16>, vector<128x128xbf16>, vector<1x128xf32> -> vector<1x128xf32>
    %c0_14 = arith.constant 0 : index
    %c0_15 = arith.constant 0 : index
    %23 = vector.load %arg6[%c0_14, %c0_15] : memref<1x128xf32, #tpu.memory_space<vmem>>, vector<1x128xf32>
    %24 = arith.addf %22, %23 : vector<1x128xf32>
    %25 = vector.shape_cast %24 : vector<1x128xf32> to vector<1x1x128xf32>
    %c0_16 = arith.constant 0 : index
    %c0_17 = arith.constant 0 : index
    %c0_18 = arith.constant 0 : index
    %26 = vector.load %arg7[%c0_16, %c0_17, %c0_18] : memref<1x1x128xf32, #tpu.memory_space<vmem>>, vector<1x1x128xf32>
    tpu.vector_store %arg7[%c0_16, %c0_17, %c0_18], %25 {strides = array<i32>} : memref<1x1x128xf32, #tpu.memory_space<vmem>>, vector<1x1x128xf32>,
    return
  }
  func.func @transform_0(%arg0: i32) -> (i32, i32, i32) {
    %c0_i32 = arith.constant 0 : i32
    %c0_i32_0 = arith.constant 0 : i32
    %c0_i32_1 = arith.constant 0 : i32
    return %arg0, %c0_i32, %c0_i32_0 : i32, i32, i32
  }
  func.func @transform_1(%arg0: i32) -> (i32, i32) {
    %c0_i32 = arith.constant 0 : i32
    %c0_i32_0 = arith.constant 0 : i32
    %c0_i32_1 = arith.constant 0 : i32
    return %c0_i32, %c0_i32_0 : i32, i32
  }
  func.func @transform_2(%arg0: i32) -> (i32, i32) {
    %c0_i32 = arith.constant 0 : i32
    %c0_i32_0 = arith.constant 0 : i32
    %c0_i32_1 = arith.constant 0 : i32
    return %c0_i32, %c0_i32_0 : i32, i32
  }
  func.func @transform_3(%arg0: i32) -> (i32, i32) {
    %c0_i32 = arith.constant 0 : i32
    %c0_i32_0 = arith.constant 0 : i32
    %c0_i32_1 = arith.constant 0 : i32
    return %c0_i32, %c0_i32_0 : i32, i32
  }
  func.func @transform_4(%arg0: i32) -> (i32, i32) {
    %c0_i32 = arith.constant 0 : i32
    %c0_i32_0 = arith.constant 0 : i32
    %c0_i32_1 = arith.constant 0 : i32
    return %c0_i32, %c0_i32_0 : i32, i32
  }
  func.func @transform_5(%arg0: i32) -> (i32, i32) {
    %c0_i32 = arith.constant 0 : i32
    %c0_i32_0 = arith.constant 0 : i32
    %c0_i32_1 = arith.constant 0 : i32
    return %c0_i32, %c0_i32_0 : i32, i32
  }
  func.func @transform_6(%arg0: i32) -> (i32, i32, i32) {
    %c0_i32 = arith.constant 0 : i32
    %c0_i32_0 = arith.constant 0 : i32
    %c0_i32_1 = arith.constant 0 : i32
    return %arg0, %c0_i32, %c0_i32_0 : i32, i32, i32
  }
}

</mosaic_0001>

<bundles_post_ra>
// kernel: efficientnet_forward.10
= control target key start
LH: loop header
LB: loop body
LE: loop exit
PB: predicated region body
PF: predicated region fallthrough
CT: control target
= control target key end

     0   :  { %vm90_vm0 = vcmask 261120   ;;  %s870_s1 = inlined_call_operand.vmem [shape: bf16[32,128], index: 1, kind: input, shape index: {}]   ;;  %s871_s0 = inlined_call_operand.vmem [shape: bf16[128,32], index: 0, kind: input, shape index: {}]   ;;  %s872_s2 = inlined_call_operand.vmem [shape: f32[1,128], index: 2, kind: input, shape index: {}]   ;;  %s873_s3 = inlined_call_operand.vmem [shape: f32[1,128], index: 3, kind: input, shape index: {}]   ;;  %s874_s4 = inlined_call_operand.vmem [shape: bf16[128,128], index: 4, kind: output, shape index: {}]  }
   0x1   :  { %v603_v0 = vld [vmem:[%s870_s1 + $0x8] sm:$0xff]   ;;  %v604_v1 = vld [vmem:[%s870_s1] sm:$0xff]   ;;  %v609_v6 = vld [vmem:[%s871_s0 + $0x10] sm:$0xff]  }
   0x2   :  { %579 = vmatprep.subr.bf16.mxu0 %v603_v0  ;;  %599 = vmatprep.subr.bf16.mxu1 %v603_v0  ;;  %v605_v2 = vld [vmem:[%s871_s0] sm:$0xff]   ;;  %v607_v4 = vld [vmem:[%s871_s0 + $0x8] sm:$0xff]   ;;  %v610_v7 = vld [vmem:[%s871_s0 + $0x30] sm:$0xff]  }
   0x3   :  { %580 = vmatpush3.bf16.msra.mxu0 %v603_v0  ;;  %601 = vmatpush3.bf16.msra.mxu1 %v603_v0  ;;  %v606_v3 = vld [vmem:[%s871_s0 + $0x20] sm:$0xff]   ;;  %v608_v5 = vld [vmem:[%s871_s0 + $0x28] sm:$0xff]   ;;  %v611_v8 = vld [vmem:[%s871_s0 + $0x18] sm:$0xff]  }
   0x4   :  { %581 = vmatprep.subr.bf16.mxu0 %v604_v1  ;;  %600 = vmatprep.subr.bf16.mxu1 %v604_v1  ;;  %v612_v9 = vld [vmem:[%s871_s0 + $0x38] sm:$0xff]   ;;  %v743_v10 = vld [vmem:[%s872_s2] ss:$0 sm:$0xff] }
   0x5   :  { %583 = vmatprep.mubr.msk.bf16.mxu0 %vm90_vm0, %v605_v2  ;;  %591 = vmatprep.mubr.msk.bf16.mxu1 %vm90_vm0, %v606_v3  ;;  %v748_v12 = vld [vmem:[%s873_s3] ss:$0 sm:$0xff] }
   0x7   :  { %582 = vmatpush3.bf16.msra.mxu0 %v604_v1  ;;  %602 = vmatpush3.bf16.msra.mxu1 %v604_v1 }
   0xa   :  { %584 = vmatmul.mubr.msk.bf16.vlgmr.msra.gmra.mxu0 %vm90_vm0, %v607_v4  ;;  %592 = vmatmul.mubr.msk.bf16.vlgmr.msra.gmra.mxu1 %vm90_vm0, %v608_v5 }
   0xb   :  { %587 = vmatprep.mubr.msk.bf16.mxu0 %vm90_vm0, %v609_v6  ;;  %595 = vmatprep.mubr.msk.bf16.mxu1 %vm90_vm0, %v610_v7 }
  0x12   :  { %588 = vmatmul.mubr.msk.bf16.gmra.mxu0 %vm90_vm0, %v611_v8  ;;  %596 = vmatmul.mubr.msk.bf16.gmra.mxu1 %vm90_vm0, %v612_v9 }
  0xca   :  { %v585_v11 = vpop.f32.mrf.mxu0  ;;  %v593_v13 = vpop.f32.mrf.mxu1 }
  0xcb   :  { %v221_v14 = vmul.f32 %v585_v11, %v743_v10  ;;  %v229_v15 = vmul.f32 %v593_v13, %v743_v10 }
  0xcc   :  { %v149_v16 = vpop.f32.mrf.mxu0  ;;  %v181_v17 = vpop.f32.mrf.mxu1 }
  0xcd   :  { %v753_v18 = vadd.f32 %v748_v12, %v221_v14  ;;  %v756_v19 = vadd.f32 %v748_v12, %v229_v15  ;;  %v219_v20 = vmul.f32 %v743_v10, %v149_v16  ;;  %v227_v21 = vmul.f32 %v743_v10, %v181_v17 }
  0xce   :  { %v586_v22 = vpop.f32.mrf.mxu0  ;;  %v594_v23 = vpop.f32.mrf.mxu1 }
  0xcf   :  { %v476_v24 = vmul.f32 -1.442695, %v753_v18  ;;  %v484_v25 = vmul.f32 -1.442695, %v756_v19  ;;  %v763_v26 = vadd.f32 %v748_v12, %v219_v20  ;;  %v766_v27 = vadd.f32 %v748_v12, %v227_v21 }
  0xd0   :  { %v222_v28 = vmul.f32 %v586_v22, %v743_v10  ;;  %v230_v29 = vmul.f32 %v594_v23, %v743_v10  ;;  %v152_v30 = vpop.f32.mrf.mxu0  ;;  %v184_v31 = vpop.f32.mrf.mxu1 }
  0xd1   :  { %613 = vpow2.f32 %v476_v24  ;;  %v474_v32 = vmul.f32 -1.442695, %v763_v26  ;;  %v482_v33 = vmul.f32 -1.442695, %v766_v27  ;;  %v220_v34 = vmul.f32 %v743_v10, %v152_v30 }
  0xd2   :  { %615 = vpow2.f32 %v484_v25  ;;  %v774_v35 = vadd.f32 %v748_v12, %v222_v28  ;;  %v777_v36 = vadd.f32 %v748_v12, %v230_v29  ;;  %v228_v37 = vmul.f32 %v743_v10, %v184_v31  ;;  %v589_v38 = vpop.f32.mrf.mxu0  ;;  %v597_v39 = vpop.f32.mrf.mxu1 }
  0xd3   :  { %617 = vpow2.f32 %v474_v32  ;;  %v781_v40 = vadd.f32 %v748_v12, %v220_v34  ;;  %v225_v41 = vmul.f32 %v589_v38, %v743_v10  ;;  %v233_v42 = vmul.f32 %v597_v39, %v743_v10 }
  0xd4   :  { %619 = vpow2.f32 %v482_v33  ;;  %v477_v43 = vmul.f32 -1.442695, %v774_v35  ;;  %v485_v44 = vmul.f32 -1.442695, %v777_v36  ;;  %v788_v45 = vadd.f32 %v748_v12, %v228_v37  ;;  %v165_v46 = vpop.f32.mrf.mxu0  ;;  %v197_v47 = vpop.f32.mrf.mxu1 }
  0xd5   :  { %v475_v48 = vmul.f32 -1.442695, %v781_v40  ;;  %v792_v49 = vadd.f32 %v748_v12, %v225_v41  ;;  %v795_v50 = vadd.f32 %v748_v12, %v233_v42  ;;  %v223_v51 = vmul.f32 %v743_v10, %v165_v46 }
  0xd6   :  { %621 = vpow2.f32 %v477_v43  ;;  %v483_v52 = vmul.f32 -1.442695, %v788_v45  ;;  %v231_v53 = vmul.f32 %v743_v10, %v197_v47  ;;  %v590_v54 = vpop.f32.mrf.mxu0  ;;  %v598_v55 = vpop.f32.mrf.mxu1 }
  0xd7   :  { %623 = vpow2.f32 %v485_v44  ;;  %v480_v56 = vmul.f32 -1.442695, %v792_v49  ;;  %v488_v57 = vmul.f32 -1.442695, %v795_v50  ;;  %v803_v58 = vadd.f32 %v748_v12, %v223_v51 }
  0xd8   :  { %625 = vpow2.f32 %v475_v48  ;;  %v806_v59 = vadd.f32 %v748_v12, %v231_v53  ;;  %v226_v60 = vmul.f32 %v590_v54, %v743_v10  ;;  %v234_v61 = vmul.f32 %v598_v55, %v743_v10  ;;  %v168_v62 = vpop.f32.mrf.mxu0  ;;  %v200_v63 = vpop.f32.mrf.mxu1 }
  0xd9   :  { %627 = vpow2.f32 %v483_v52  ;;  %v478_v0 = vmul.f32 -1.442695, %v803_v58  ;;  %v224_v1 = vmul.f32 %v743_v10, %v168_v62  ;;  %v232_v2 = vmul.f32 %v743_v10, %v200_v63 }
  0xda   :  { %629 = vpow2.f32 %v480_v56  ;;  %v486_v3 = vmul.f32 -1.442695, %v806_v59  ;;  %v815_v4 = vadd.f32 %v748_v12, %v226_v60  ;;  %v818_v5 = vadd.f32 %v748_v12, %v234_v61 }
  0xdb   :  { %631 = vpow2.f32 %v488_v57  ;;  %v821_v6 = vadd.f32 %v748_v12, %v224_v1  ;;  %v827_v10 = vadd.f32 %v748_v12, %v232_v2 }
  0xdc   :  { %633 = vpow2.f32 %v478_v0  ;;  %v481_v7 = vmul.f32 -1.442695, %v815_v4  ;;  %v489_v8 = vmul.f32 -1.442695, %v818_v5 }
  0xdd   :  { %635 = vpow2.f32 %v486_v3  ;;  %v479_v9 = vmul.f32 -1.442695, %v821_v6  ;;  %v487_v21 = vmul.f32 -1.442695, %v827_v10 }
  0xde   :  { %v614_v11 = vpop.eup %613  ;;  %637 = vpow2.f32 %v481_v7 }
  0xdf   :  { %v616_v13 = vpop.eup %615  ;;  %v308_v14 = vadd.f32 1.0, %v614_v11  ;;  %639 = vpow2.f32 %v489_v8 }
  0xe0   :  { %v618_v15 = vpop.eup %617  ;;  %v316_v16 = vadd.f32 1.0, %v616_v13  ;;  %641 = vpow2.f32 %v479_v9 }
  0xe1   :  { %v620_v17 = vpop.eup %619  ;;  %643 = vrcp.f32 %v308_v14  ;;  %v306_v20 = vadd.f32 1.0, %v618_v15 }
  0xe2   :  { %645 = vrcp.f32 %v316_v16  ;;  %v314_v22 = vadd.f32 1.0, %v620_v17 }
  0xe3   :  { %v622_v23 = vpop.eup %621  ;;  %647 = vrcp.f32 %v306_v20 }
  0xe4   :  { %v624_v24 = vpop.eup %623  ;;  %649 = vrcp.f32 %v314_v22  ;;  %v309_v12 = vadd.f32 1.0, %v622_v23 }
  0xe5   :  { %v626_v25 = vpop.eup %625  ;;  %v317_v28 = vadd.f32 1.0, %v624_v24  ;;  %651 = vpow2.f32 %v487_v21 }
  0xe6   :  { %v628_v29 = vpop.eup %627  ;;  %653 = vrcp.f32 %v309_v12  ;;  %v307_v30 = vadd.f32 1.0, %v626_v25 }
  0xe7   :  { %v630_v31 = vpop.eup %629  ;;  %655 = vrcp.f32 %v317_v28  ;;  %v315_v32 = vadd.f32 1.0, %v628_v29 }
  0xe8   :  { %v632_v33 = vpop.eup %631  ;;  %657 = vrcp.f32 %v307_v30  ;;  %v312_v34 = vadd.f32 1.0, %v630_v31 }
  0xe9   :  { %v634_v37 = vpop.eup %633  ;;  %659 = vrcp.f32 %v315_v32  ;;  %v320_v38 = vadd.f32 1.0, %v632_v33 }
  0xea   :  { %v636_v39 = vpop.eup %635  ;;  %v310_v41 = vadd.f32 1.0, %v634_v37  ;;  %661 = vrcp.f32 %v312_v34 }
  0xeb   :  { %v638_v42 = vpop.eup %637  ;;  %663 = vrcp.f32 %v320_v38  ;;  %v318_v53 = vadd.f32 1.0, %v636_v39 }
  0xec   :  { %v640_v43 = vpop.eup %639  ;;  %v313_v44 = vadd.f32 1.0, %v638_v42  ;;  %665 = vrcp.f32 %v310_v41 }
  0xed   :  { %v642_v46 = vpop.eup %641  ;;  %v321_v47 = vadd.f32 1.0, %v640_v43 }
  0xee   :  { %v644_v48 = vpop.eup %643  ;;  %667 = vrcp.f32 %v313_v44  ;;  %v311_v51 = vadd.f32 1.0, %v642_v46 }
  0xef   :  { %v646_v52 = vpop.eup %645  ;;  %669 = vrcp.f32 %v321_v47  ;;  %v356_v62 = vmul.f32 %v644_v48, %v753_v18 }
  0xf0   :  { %v648_v54 = vpop.eup %647  ;;  %671 = vrcp.f32 %v311_v51  ;;  %v364_v1 = vmul.f32 %v646_v52, %v756_v19 }
  0xf1   :  { %v650_v55 = vpop.eup %649  ;;  %673 = vrcp.f32 %v318_v53  ;;  %v354_v7 = vmul.f32 %v648_v54, %v763_v26 }
  0xf2   :  { %v652_v56 = vpop.eup %651  ;;  %v362_v11 = vmul.f32 %v650_v55, %v766_v27 }
  0xf3   :  { %v654_v57 = vpop.eup %653  ;;  %v319_v60 = vadd.f32 1.0, %v652_v56 }
  0xf4   :  { %v656_v61 = vpop.eup %655  ;;  %v357_v63 = vmul.f32 %v654_v57, %v774_v35 }
  0xf5   :  { %v658_v0 = vpop.eup %657  ;;  %v365_v2 = vmul.f32 %v656_v61, %v777_v36  ;;  %675 = vrcp.f32 %v319_v60 }
  0xf6   :  { %v660_v3 = vpop.eup %659  ;;  %v530_v8 = vpack.c.bf16 %v357_v63, %v356_v62  ;;  %v355_v9 = vmul.f32 %v658_v0, %v781_v40 }
  0xf7   :  { %v550_v13 = vpack.c.bf16 %v365_v2, %v364_v1  ;;  %v363_v14 = vmul.f32 %v660_v3, %v788_v45  ;;  %v662_v18 = vpop.eup %661 }
  0xf8   :  { %562 = vst [vmem:[%s874_s4 + $0x8] sm:$0xff] %v530_v8   ;;  %v525_v19 = vpack.c.bf16 %v355_v9, %v354_v7  ;;  %v664_v35 = vpop.eup %663  ;;  %v360_v45 = vmul.f32 %v662_v18, %v792_v49 }
  0xf9   :  { %566 = vst [vmem:[%s874_s4 + $0x28] sm:$0xff] %v550_v13   ;;  %v545_v26 = vpack.c.bf16 %v363_v14, %v362_v11  ;;  %v666_v36 = vpop.eup %665  ;;  %v368_v17 = vmul.f32 %v664_v35, %v795_v50 }
  0xfa   :  { %526 = vst [vmem:[%s874_s4] sm:$0xff] %v525_v19   ;;  %v358_v21 = vmul.f32 %v666_v36, %v803_v58 }
  0xfb   :  { %v668_v27 = vpop.eup %667  ;;  %565 = vst [vmem:[%s874_s4 + $0x20] sm:$0xff] %v545_v26  }
  0xfc   :  { %v670_v40 = vpop.eup %669  ;;  %v361_v15 = vmul.f32 %v668_v27, %v815_v4 }
  0xfd   :  { %v672_v16 = vpop.eup %671  ;;  %v369_v20 = vmul.f32 %v670_v40, %v818_v5 }
  0xfe   :  { %v540_v22 = vpack.c.bf16 %v361_v15, %v360_v45  ;;  %v359_v23 = vmul.f32 %v672_v16, %v821_v6  ;;  %v674_v12 = vpop.eup %673 }
  0xff   :  { %v560_v24 = vpack.c.bf16 %v369_v20, %v368_v17  ;;  %v366_v50 = vmul.f32 %v674_v12, %v806_v59 }
 0x100   :  { %564 = vst [vmem:[%s874_s4 + $0x18] sm:$0xff] %v540_v22   ;;  %v535_v25 = vpack.c.bf16 %v359_v23, %v358_v21 }
 0x101   :  { %568 = vst [vmem:[%s874_s4 + $0x38] sm:$0xff] %v560_v24  }
 0x102   :  { %v676_v49 = vpop.eup %675  ;;  %563 = vst [vmem:[%s874_s4 + $0x10] sm:$0xff] %v535_v25  }
 0x103   :  { %v367_v58 = vmul.f32 %v676_v49, %v827_v10 }
 0x105   :  { %v555_v4 = vpack.c.bf16 %v367_v58, %v366_v50 }
 0x107   :  { %567 = vst [vmem:[%s874_s4 + $0x30] sm:$0xff] %v555_v4  }

// kernel: efficientnet_forward.11
= control target key start
LH: loop header
LB: loop body
LE: loop exit
PB: predicated region body
PF: predicated region fallthrough
CT: control target
= control target key end

     0   :  { %s945_s1 = inlined_call_operand.vmem [shape: bf16[128,128], index: 1, kind: input, shape index: {}]   ;;  %s946_s0 = inlined_call_operand.vmem [shape: bf16[128,128], index: 0, kind: input, shape index: {}]   ;;  %s947_s2 = inlined_call_operand.vmem [shape: f32[1,128], index: 2, kind: input, shape index: {}]   ;;  %s948_s3 = inlined_call_operand.vmem [shape: f32[1,128], index: 3, kind: input, shape index: {}]   ;;  %s949_s4 = inlined_call_operand.vmem [shape: bf16[128,128], index: 4, kind: output, shape index: {}]  }
   0x1   :  { %v662_v0 = vld [vmem:[%s945_s1 + $0x38] sm:$0xff]   ;;  %v663_v1 = vld [vmem:[%s945_s1 + $0x30] sm:$0xff]   ;;  %v664_v2 = vld [vmem:[%s945_s1 + $0x28] sm:$0xff]  }
   0x2   :  { %614 = vmatprep.subr.bf16.mxu0 %v662_v0  ;;  %646 = vmatprep.subr.bf16.mxu1 %v662_v0  ;;  %v665_v3 = vld [vmem:[%s945_s1 + $0x20] sm:$0xff]   ;;  %v666_v6 = vld [vmem:[%s945_s1 + $0x18] sm:$0xff]   ;;  %v667_v7 = vld [vmem:[%s945_s1 + $0x10] sm:$0xff]  }
   0x3   :  { %615 = vmatpush3.bf16.msra.mxu0 %v662_v0  ;;  %654 = vmatpush3.bf16.msra.mxu1 %v662_v0  ;;  %v670_v4 = vld [vmem:[%s946_s0] sm:$0xff]   ;;  %v668_v8 = vld [vmem:[%s945_s1 + $0x8] sm:$0xff]   ;;  %v674_v12 = vld [vmem:[%s946_s0 + $0x10] sm:$0xff]  }
   0x4   :  { %616 = vmatprep.subr.bf16.mxu0 %v663_v1  ;;  %647 = vmatprep.subr.bf16.mxu1 %v663_v1  ;;  %v671_v5 = vld [vmem:[%s946_s0 + $0x20] sm:$0xff]   ;;  %v672_v10 = vld [vmem:[%s946_s0 + $0x8] sm:$0xff]   ;;  %v675_v13 = vld [vmem:[%s946_s0 + $0x30] sm:$0xff]  }
   0x5   :  { %630 = vmatprep.mubr.bf16.mxu0 %v670_v4  ;;  %638 = vmatprep.mubr.bf16.mxu1 %v671_v5  ;;  %v669_v9 = vld [vmem:[%s945_s1] sm:$0xff]   ;;  %v673_v11 = vld [vmem:[%s946_s0 + $0x28] sm:$0xff]   ;;  %v676_v14 = vld [vmem:[%s946_s0 + $0x18] sm:$0xff]  }
   0x6   :  { %v677_v15 = vld [vmem:[%s946_s0 + $0x38] sm:$0xff]   ;;  %v818_v16 = vld [vmem:[%s947_s2] ss:$0 sm:$0xff] }
   0x7   :  { %617 = vmatpush3.bf16.msra.mxu0 %v663_v1  ;;  %655 = vmatpush3.bf16.msra.mxu1 %v663_v1  ;;  %v823_v18 = vld [vmem:[%s948_s3] ss:$0 sm:$0xff] }
   0x8   :  { %618 = vmatprep.subr.bf16.mxu0 %v664_v2  ;;  %648 = vmatprep.subr.bf16.mxu1 %v664_v2 }
   0xb   :  { %619 = vmatpush3.bf16.msra.mxu0 %v664_v2  ;;  %656 = vmatpush3.bf16.msra.mxu1 %v664_v2 }
   0xc   :  { %620 = vmatprep.subr.bf16.mxu0 %v665_v3  ;;  %649 = vmatprep.subr.bf16.mxu1 %v665_v3 }
   0xf   :  { %621 = vmatpush3.bf16.msra.mxu0 %v665_v3  ;;  %657 = vmatpush3.bf16.msra.mxu1 %v665_v3 }
  0x10   :  { %622 = vmatprep.subr.bf16.mxu0 %v666_v6  ;;  %650 = vmatprep.subr.bf16.mxu1 %v666_v6 }
  0x13   :  { %623 = vmatpush3.bf16.msra.mxu0 %v666_v6  ;;  %658 = vmatpush3.bf16.msra.mxu1 %v666_v6 }
  0x14   :  { %624 = vmatprep.subr.bf16.mxu0 %v667_v7  ;;  %651 = vmatprep.subr.bf16.mxu1 %v667_v7 }
  0x17   :  { %625 = vmatpush3.bf16.msra.mxu0 %v667_v7  ;;  %659 = vmatpush3.bf16.msra.mxu1 %v667_v7 }
  0x18   :  { %626 = vmatprep.subr.bf16.mxu0 %v668_v8  ;;  %652 = vmatprep.subr.bf16.mxu1 %v668_v8 }
  0x1b   :  { %627 = vmatpush3.bf16.msra.mxu0 %v668_v8  ;;  %660 = vmatpush3.bf16.msra.mxu1 %v668_v8 }
  0x1c   :  { %628 = vmatprep.subr.bf16.mxu0 %v669_v9  ;;  %653 = vmatprep.subr.bf16.mxu1 %v669_v9 }
  0x1f   :  { %629 = vmatpush3.bf16.msra.mxu0 %v669_v9  ;;  %661 = vmatpush3.bf16.msra.mxu1 %v669_v9 }
  0x22   :  { %631 = vmatmul.mubr.bf16.vlgmr.msra.gmra.mxu0 %v672_v10  ;;  %639 = vmatmul.mubr.bf16.vlgmr.msra.gmra.mxu1 %v673_v11 }
  0x23   :  { %634 = vmatprep.mubr.bf16.mxu0 %v674_v12  ;;  %642 = vmatprep.mubr.bf16.mxu1 %v675_v13 }
  0x2a   :  { %635 = vmatmul.mubr.bf16.gmra.mxu0 %v676_v14  ;;  %643 = vmatmul.mubr.bf16.gmra.mxu1 %v677_v15 }
  0xe2   :  { %v632_v17 = vpop.f32.mrf.mxu0  ;;  %v640_v19 = vpop.f32.mrf.mxu1 }
  0xe3   :  { %v252_v20 = vmul.f32 %v632_v17, %v818_v16  ;;  %v260_v21 = vmul.f32 %v640_v19, %v818_v16 }
  0xe4   :  { %v180_v22 = vpop.f32.mrf.mxu0  ;;  %v212_v23 = vpop.f32.mrf.mxu1 }
  0xe5   :  { %v828_v24 = vadd.f32 %v823_v18, %v252_v20  ;;  %v831_v25 = vadd.f32 %v823_v18, %v260_v21  ;;  %v250_v26 = vmul.f32 %v818_v16, %v180_v22  ;;  %v258_v27 = vmul.f32 %v818_v16, %v212_v23 }
  0xe6   :  { %v633_v28 = vpop.f32.mrf.mxu0  ;;  %v641_v29 = vpop.f32.mrf.mxu1 }
  0xe7   :  { %v505_v30 = vmul.f32 -1.442695, %v828_v24  ;;  %v513_v31 = vmul.f32 -1.442695, %v831_v25  ;;  %v838_v32 = vadd.f32 %v823_v18, %v250_v26  ;;  %v841_v33 = vadd.f32 %v823_v18, %v258_v27 }
  0xe8   :  { %v253_v34 = vmul.f32 %v633_v28, %v818_v16  ;;  %v261_v35 = vmul.f32 %v641_v29, %v818_v16  ;;  %v183_v36 = vpop.f32.mrf.mxu0  ;;  %v215_v37 = vpop.f32.mrf.mxu1 }
  0xe9   :  { %678 = vpow2.f32 %v505_v30  ;;  %v503_v38 = vmul.f32 -1.442695, %v838_v32  ;;  %v511_v39 = vmul.f32 -1.442695, %v841_v33  ;;  %v251_v40 = vmul.f32 %v818_v16, %v183_v36 }
  0xea   :  { %680 = vpow2.f32 %v513_v31  ;;  %v849_v41 = vadd.f32 %v823_v18, %v253_v34  ;;  %v852_v42 = vadd.f32 %v823_v18, %v261_v35  ;;  %v259_v43 = vmul.f32 %v818_v16, %v215_v37  ;;  %v636_v44 = vpop.f32.mrf.mxu0  ;;  %v644_v45 = vpop.f32.mrf.mxu1 }
  0xeb   :  { %682 = vpow2.f32 %v503_v38  ;;  %v856_v46 = vadd.f32 %v823_v18, %v251_v40  ;;  %v256_v47 = vmul.f32 %v636_v44, %v818_v16  ;;  %v264_v48 = vmul.f32 %v644_v45, %v818_v16 }
  0xec   :  { %684 = vpow2.f32 %v511_v39  ;;  %v506_v49 = vmul.f32 -1.442695, %v849_v41  ;;  %v514_v50 = vmul.f32 -1.442695, %v852_v42  ;;  %v863_v51 = vadd.f32 %v823_v18, %v259_v43  ;;  %v196_v52 = vpop.f32.mrf.mxu0  ;;  %v228_v53 = vpop.f32.mrf.mxu1 }
  0xed   :  { %v504_v54 = vmul.f32 -1.442695, %v856_v46  ;;  %v867_v55 = vadd.f32 %v823_v18, %v256_v47  ;;  %v870_v56 = vadd.f32 %v823_v18, %v264_v48  ;;  %v254_v57 = vmul.f32 %v818_v16, %v196_v52 }
  0xee   :  { %686 = vpow2.f32 %v506_v49  ;;  %v512_v58 = vmul.f32 -1.442695, %v863_v51  ;;  %v262_v59 = vmul.f32 %v818_v16, %v228_v53  ;;  %v637_v60 = vpop.f32.mrf.mxu0  ;;  %v645_v61 = vpop.f32.mrf.mxu1 }
  0xef   :  { %688 = vpow2.f32 %v514_v50  ;;  %v509_v62 = vmul.f32 -1.442695, %v867_v55  ;;  %v517_v63 = vmul.f32 -1.442695, %v870_v56  ;;  %v878_v0 = vadd.f32 %v823_v18, %v254_v57 }
  0xf0   :  { %690 = vpow2.f32 %v504_v54  ;;  %v881_v1 = vadd.f32 %v823_v18, %v262_v59  ;;  %v257_v2 = vmul.f32 %v637_v60, %v818_v16  ;;  %v265_v3 = vmul.f32 %v645_v61, %v818_v16  ;;  %v199_v4 = vpop.f32.mrf.mxu0  ;;  %v231_v5 = vpop.f32.mrf.mxu1 }
  0xf1   :  { %692 = vpow2.f32 %v512_v58  ;;  %v507_v6 = vmul.f32 -1.442695, %v878_v0  ;;  %v255_v7 = vmul.f32 %v818_v16, %v199_v4  ;;  %v263_v8 = vmul.f32 %v818_v16, %v231_v5 }
  0xf2   :  { %694 = vpow2.f32 %v509_v62  ;;  %v515_v9 = vmul.f32 -1.442695, %v881_v1  ;;  %v890_v10 = vadd.f32 %v823_v18, %v257_v2  ;;  %v893_v11 = vadd.f32 %v823_v18, %v265_v3 }
  0xf3   :  { %696 = vpow2.f32 %v517_v63  ;;  %v896_v12 = vadd.f32 %v823_v18, %v255_v7  ;;  %v902_v16 = vadd.f32 %v823_v18, %v263_v8 }
  0xf4   :  { %698 = vpow2.f32 %v507_v6  ;;  %v510_v13 = vmul.f32 -1.442695, %v890_v10  ;;  %v518_v14 = vmul.f32 -1.442695, %v893_v11 }
  0xf5   :  { %700 = vpow2.f32 %v515_v9  ;;  %v508_v15 = vmul.f32 -1.442695, %v896_v12  ;;  %v516_v27 = vmul.f32 -1.442695, %v902_v16 }
  0xf6   :  { %v679_v17 = vpop.eup %678  ;;  %702 = vpow2.f32 %v510_v13 }
  0xf7   :  { %v681_v19 = vpop.eup %680  ;;  %v339_v20 = vadd.f32 1.0, %v679_v17  ;;  %704 = vpow2.f32 %v518_v14 }
  0xf8   :  { %v683_v21 = vpop.eup %682  ;;  %v347_v22 = vadd.f32 1.0, %v681_v19  ;;  %706 = vpow2.f32 %v508_v15 }
  0xf9   :  { %v685_v23 = vpop.eup %684  ;;  %708 = vrcp.f32 %v339_v20  ;;  %v337_v26 = vadd.f32 1.0, %v683_v21 }
  0xfa   :  { %710 = vrcp.f32 %v347_v22  ;;  %v345_v28 = vadd.f32 1.0, %v685_v23 }
  0xfb   :  { %v687_v29 = vpop.eup %686  ;;  %712 = vrcp.f32 %v337_v26 }
  0xfc   :  { %v689_v30 = vpop.eup %688  ;;  %714 = vrcp.f32 %v345_v28  ;;  %v340_v18 = vadd.f32 1.0, %v687_v29 }
  0xfd   :  { %v691_v31 = vpop.eup %690  ;;  %v348_v34 = vadd.f32 1.0, %v689_v30  ;;  %716 = vpow2.f32 %v516_v27 }
  0xfe   :  { %v693_v35 = vpop.eup %692  ;;  %718 = vrcp.f32 %v340_v18  ;;  %v338_v36 = vadd.f32 1.0, %v691_v31 }
  0xff   :  { %v695_v37 = vpop.eup %694  ;;  %720 = vrcp.f32 %v348_v34  ;;  %v346_v38 = vadd.f32 1.0, %v693_v35 }
 0x100   :  { %v697_v39 = vpop.eup %696  ;;  %722 = vrcp.f32 %v338_v36  ;;  %v343_v40 = vadd.f32 1.0, %v695_v37 }
 0x101   :  { %v699_v43 = vpop.eup %698  ;;  %724 = vrcp.f32 %v346_v38  ;;  %v351_v44 = vadd.f32 1.0, %v697_v39 }
 0x102   :  { %v701_v45 = vpop.eup %700  ;;  %v341_v47 = vadd.f32 1.0, %v699_v43  ;;  %726 = vrcp.f32 %v343_v40 }
 0x103   :  { %v703_v48 = vpop.eup %702  ;;  %728 = vrcp.f32 %v351_v44  ;;  %v349_v59 = vadd.f32 1.0, %v701_v45 }
 0x104   :  { %v705_v49 = vpop.eup %704  ;;  %v344_v50 = vadd.f32 1.0, %v703_v48  ;;  %730 = vrcp.f32 %v341_v47 }
 0x105   :  { %v707_v52 = vpop.eup %706  ;;  %v352_v53 = vadd.f32 1.0, %v705_v49 }
 0x106   :  { %v709_v54 = vpop.eup %708  ;;  %732 = vrcp.f32 %v344_v50  ;;  %v342_v57 = vadd.f32 1.0, %v707_v52 }
 0x107   :  { %v711_v58 = vpop.eup %710  ;;  %734 = vrcp.f32 %v352_v53  ;;  %v387_v4 = vmul.f32 %v709_v54, %v828_v24 }
 0x108   :  { %v713_v60 = vpop.eup %712  ;;  %736 = vrcp.f32 %v342_v57  ;;  %v395_v7 = vmul.f32 %v711_v58, %v831_v25 }
 0x109   :  { %v715_v61 = vpop.eup %714  ;;  %738 = vrcp.f32 %v349_v59  ;;  %v385_v13 = vmul.f32 %v713_v60, %v838_v32 }
 0x10a   :  { %v717_v62 = vpop.eup %716  ;;  %v393_v17 = vmul.f32 %v715_v61, %v841_v33 }
 0x10b   :  { %v719_v63 = vpop.eup %718  ;;  %v350_v2 = vadd.f32 1.0, %v717_v62 }
 0x10c   :  { %v721_v3 = vpop.eup %720  ;;  %v388_v5 = vmul.f32 %v719_v63, %v849_v41 }
 0x10d   :  { %v723_v6 = vpop.eup %722  ;;  %v396_v8 = vmul.f32 %v721_v3, %v852_v42  ;;  %740 = vrcp.f32 %v350_v2 }
 0x10e   :  { %v725_v9 = vpop.eup %724  ;;  %v559_v14 = vpack.c.bf16 %v388_v5, %v387_v4  ;;  %v386_v15 = vmul.f32 %v723_v6, %v856_v46 }
 0x10f   :  { %v579_v19 = vpack.c.bf16 %v396_v8, %v395_v7  ;;  %v394_v20 = vmul.f32 %v725_v9, %v863_v51  ;;  %v727_v24 = vpop.eup %726 }
 0x110   :  { %591 = vst [vmem:[%s949_s4 + $0x8] sm:$0xff] %v559_v14   ;;  %v554_v25 = vpack.c.bf16 %v386_v15, %v385_v13  ;;  %v729_v41 = vpop.eup %728  ;;  %v391_v51 = vmul.f32 %v727_v24, %v867_v55 }
 0x111   :  { %595 = vst [vmem:[%s949_s4 + $0x28] sm:$0xff] %v579_v19   ;;  %v574_v32 = vpack.c.bf16 %v394_v20, %v393_v17  ;;  %v731_v42 = vpop.eup %730  ;;  %v399_v23 = vmul.f32 %v729_v41, %v870_v56 }
 0x112   :  { %555 = vst [vmem:[%s949_s4] sm:$0xff] %v554_v25   ;;  %v389_v27 = vmul.f32 %v731_v42, %v878_v0 }
 0x113   :  { %v733_v33 = vpop.eup %732  ;;  %594 = vst [vmem:[%s949_s4 + $0x20] sm:$0xff] %v574_v32  }
 0x114   :  { %v735_v46 = vpop.eup %734  ;;  %v392_v21 = vmul.f32 %v733_v33, %v890_v10 }
 0x115   :  { %v737_v22 = vpop.eup %736  ;;  %v400_v26 = vmul.f32 %v735_v46, %v893_v11 }
 0x116   :  { %v569_v28 = vpack.c.bf16 %v392_v21, %v391_v51  ;;  %v390_v29 = vmul.f32 %v737_v22, %v896_v12  ;;  %v739_v18 = vpop.eup %738 }
 0x117   :  { %v589_v30 = vpack.c.bf16 %v400_v26, %v399_v23  ;;  %v397_v56 = vmul.f32 %v739_v18, %v881_v1 }
 0x118   :  { %593 = vst [vmem:[%s949_s4 + $0x18] sm:$0xff] %v569_v28   ;;  %v564_v31 = vpack.c.bf16 %v390_v29, %v389_v27 }
 0x119   :  { %597 = vst [vmem:[%s949_s4 + $0x38] sm:$0xff] %v589_v30  }
 0x11a   :  { %v741_v55 = vpop.eup %740  ;;  %592 = vst [vmem:[%s949_s4 + $0x10] sm:$0xff] %v564_v31  }
 0x11b   :  { %v398_v0 = vmul.f32 %v741_v55, %v902_v16 }
 0x11d   :  { %v584_v10 = vpack.c.bf16 %v398_v0, %v397_v56 }
 0x11f   :  { %596 = vst [vmem:[%s949_s4 + $0x30] sm:$0xff] %v584_v10  }

// kernel: efficientnet_forward.12
= control target key start
LH: loop header
LB: loop body
LE: loop exit
PB: predicated region body
PF: predicated region fallthrough
CT: control target
= control target key end

     0   :  { %s1116_s18 = smov 0   ;;  %s1498_s0 = inlined_call_operand.vmem [shape: bf16[2,10,10,128], index: 0, kind: input, shape index: {}]   ;;  %s1499_s1 = inlined_call_operand.vmem [shape: f32[9,128], index: 1, kind: input, shape index: {}]   ;;  %s1500_s2 = inlined_call_operand.vmem [shape: f32[1,1,1,128], index: 2, kind: input, shape index: {}]   ;;  %s1501_s3 = inlined_call_operand.vmem [shape: f32[1,1,1,128], index: 3, kind: input, shape index: {}]   ;;  %s1502_s4 = inlined_call_operand.vmem [shape: bf16[2,8,8,128], index: 4, kind: output, shape index: {0}]   ;;  %s1503_s5 = inlined_call_operand.vmem [shape: f32[2,1,1,128], index: 5, kind: output, shape index: {1}]  }
   0x1 LB: > { %s992_s19 = sadd.s32 4294967295, %s1084_s18   ;;  %p996_p0 = scmp.ge.s32.totalorder %s1084_s18, 1  ;;  %s1084_s18 = sphi %s1116_s18, %s16_s18  }
   0x2   : > { %p190_p1 = scmp.lt.s32.totalorder %s1084_s18, 3 }
   0x4   : > { %p191_p2 = pnand %p996_p0, %p190_p1 }
   0x6   : > { %194 = sbr.rel (%p191_p2) target bundleno = 174 (0xae), region = 36 }
   0xb   : > { %p221_p3 = scmp.lt.s32.totalorder %s992_s19, 1  ;;  %v276_v0 = vlaneseq  ;;  %v274_v2 = vld [vmem:[%s1499_s1] sm:$0xff]  ;;  %vm332_vm0 = vcmask 1046528   ;;  %vm409_vm1 = vcmask 1045504  }
   0xd   : > { %s1516_s19 = smov (!%p221_p3, %s992_s19), 1  ;;  %v277_v1 = vshrl.u32 %v276_v0, 7 }
   0xe   : > { %s1037_s22 = smul.u32 80, %s1516_s19  ;;  %s1013_s7 = sshll.u32 %s1516_s19, 5 }
   0xf   : > { %v278_v3 = vsub.s32 0, %v277_v1  ;;  %v298_v4 = vsub.s32 1, %v277_v1  ;;  %v375_v5 = vsub.s32 2, %v277_v1  ;;  %v452_v6 = vsub.s32 3, %v277_v1  ;;  %s230_s10 = scalar_lea.vmem %s1502_s4, %s1013_s7  ;;  %s233_s13 = scalar_lea.vmem %s1503_s5, %s1516_s19 }
  0x10   : > { %v472_v7 = vsub.s32 4, %v277_v1  ;;  %v548_v8 = vsub.s32 5, %v277_v1  ;;  %v624_v9 = vsub.s32 6, %v277_v1  ;;  %v644_v10 = vsub.s32 7, %v277_v1  ;;  %s1133_s25 = scalar_lea.vmem %s1498_s0, %s1037_s22 }
  0x11   : > { %v279_v11 = vrot.slane %v274_v2, %v278_v3  ;;  %v1135_v12 = vrot.slane %v274_v2, %v298_v4  ;;  %v1137_v13 = vrot.slane %v274_v2, %v375_v5  ;;  %v1139_v14 = vrot.slane %v274_v2, %v452_v6  ;;  %v234_v15 = vld [vmem:[%s1133_s25] ss:$8 sps:$4 sm:$0xff]   ;;  %v1143_v16 = vld [vmem:[%s1133_s25 + $0x4] sm:$0x1]  ;;  %v237_v17 = vld [vmem:[%s1133_s25 + $0xc] sm:$0x1] }
  0x12   : > { %v1146_v18 = vrot.slane %v274_v2, %v472_v7  ;;  %v1148_v19 = vrot.slane %v274_v2, %v548_v8  ;;  %v1150_v20 = vrot.slane %v274_v2, %v624_v9  ;;  %v1152_v21 = vrot.slane %v274_v2, %v644_v10  ;;  %v238_v22 = vld [vmem:[%s1133_s25 + $0x10] ss:$8 sps:$4 sm:$0xff]   ;;  %v239_v23 = vld [vmem:[%s1133_s25 + $0x14] sm:$0x1]  ;;  %v241_v24 = vld [vmem:[%s1133_s25 + $0x1c] sm:$0x1] }
  0x13   : > { %v1157_v25 = vunpack.c.l.bf16 %v234_v15  ;;  %v1504_v26 = vunpack.c.l.bf16 %v1143_v16  ;;  %v1160_v27 = vunpack.c.h.bf16 %v234_v15  ;;  %v1162_v28 = vunpack.c.l.bf16 %v237_v17  ;;  %v242_v29 = vld [vmem:[%s1133_s25 + $0x20] ss:$8 sps:$4 sm:$0xff]   ;;  %v243_v30 = vld [vmem:[%s1133_s25 + $0x24] sm:$0x1]  ;;  %v245_v31 = vld [vmem:[%s1133_s25 + $0x2c] sm:$0x1] }
  0x14   : > { %1508 = vst [vmem:[#allocation2_spill] sm:$0xff] %v1152_v21  ;;  %v1167_v32 = vunpack.c.l.bf16 %v238_v22  ;;  %v1169_v33 = vunpack.c.l.bf16 %v239_v23  ;;  %v1171_v34 = vunpack.c.h.bf16 %v238_v22  ;;  %v1173_v35 = vunpack.c.l.bf16 %v241_v24  ;;  %v246_v36 = vld [vmem:[%s1133_s25 + $0x30] ss:$8 sps:$4 sm:$0xff]   ;;  %v247_v37 = vld [vmem:[%s1133_s25 + $0x34] sm:$0x1] }
  0x15   : > { %v249_v38 = vld [vmem:[%s1133_s25 + $0x3c] sm:$0x1]  ;;  %v1178_v39 = vunpack.c.l.bf16 %v242_v29  ;;  %v1180_v40 = vunpack.c.l.bf16 %v243_v30  ;;  %v1182_v41 = vunpack.c.h.bf16 %v242_v29  ;;  %v1184_v42 = vunpack.c.l.bf16 %v245_v31  ;;  %v250_v43 = vld [vmem:[%s1133_s25 + $0x40] ss:$8 sps:$4 sm:$0xff]   ;;  %v251_v44 = vld [vmem:[%s1133_s25 + $0x44] sm:$0x1] }
  0x16   : > { %v1189_v45 = vld [vmem:[%s1133_s25 + $0x4c] sm:$0x1]  ;;  %v1191_v46 = vunpack.c.l.bf16 %v246_v36  ;;  %v1193_v47 = vunpack.c.l.bf16 %v247_v37  ;;  %v1195_v48 = vunpack.c.h.bf16 %v246_v36  ;;  %v1197_v49 = vunpack.c.l.bf16 %v249_v38 }
  0x17   : > { %1509 = vst [vmem:[#allocation3_spill] sm:$0xff] %v1189_v45  ;;  %v1199_v50 = vunpack.c.l.bf16 %v250_v43  ;;  %v1201_v51 = vunpack.c.l.bf16 %v251_v44  ;;  %v1203_v52 = vunpack.c.h.bf16 %v250_v43  ;;  %v280_v54 = vmul.f32 %v279_v11, %v1157_v25 }
  0x18   : > { %v281_v55 = vmul.f32 %v279_v11, %v1160_v27  ;;  %v282_v56 = vmul.f32 %v279_v11, %v1167_v32  ;;  %v283_v57 = vmul.f32 %v279_v11, %v1171_v34  ;;  %v284_v58 = vmul.f32 %v279_v11, %v1178_v39 }
  0x19   : > { %v285_v59 = vmul.f32 %v279_v11, %v1182_v41  ;;  %v286_v60 = vmul.f32 %v279_v11, %v1191_v46  ;;  %v287_v61 = vmul.f32 %v279_v11, %v1195_v48  ;;  %v300_v62 = vmul.f32 %v1135_v12, %v1157_v25 }
  0x1a   : > { %v301_v63 = vmul.f32 %v1135_v12, %v1504_v26  ;;  %v302_v0 = vmul.f32 %v1135_v12, %v1160_v27  ;;  %v303_v1 = vmul.f32 %v1135_v12, %v1162_v28  ;;  %v304_v2 = vmul.f32 %v1135_v12, %v1167_v32 }
  0x1b   : > { %v305_v3 = vmul.f32 %v1135_v12, %v1169_v33  ;;  %v306_v4 = vmul.f32 %v1135_v12, %v1171_v34  ;;  %v307_v5 = vmul.f32 %v1135_v12, %v1173_v35  ;;  %v308_v6 = vmul.f32 %v1135_v12, %v1178_v39 }
  0x1c   : > { %v309_v7 = vmul.f32 %v1135_v12, %v1180_v40  ;;  %v310_v8 = vmul.f32 %v1135_v12, %v1182_v41  ;;  %v311_v9 = vmul.f32 %v1135_v12, %v1184_v42  ;;  %v312_v10 = vmul.f32 %v1135_v12, %v1191_v46 }
  0x1d   : > { %v313_v11 = vmul.f32 %v1135_v12, %v1193_v47  ;;  %v314_v15 = vmul.f32 %v1135_v12, %v1195_v48  ;;  %v315_v17 = vmul.f32 %v1135_v12, %v1197_v49  ;;  %v333_v22 = vrot.slane %v300_v62, 1 }
  0x1e   : > { %v334_v23 = vrot.slane %v301_v63, 1  ;;  %v336_v24 = vrot.slane %v302_v0, 1  ;;  %v337_v29 = vrot.slane %v303_v1, 1  ;;  %v339_v30 = vrot.slane %v304_v2, 1 }
  0x1f   : > { %v340_v31 = vrot.slane %v305_v3, 1  ;;  %v342_v36 = vrot.slane %v306_v4, 1  ;;  %v343_v37 = vrot.slane %v307_v5, 1  ;;  %v345_v44 = vrot.slane %v308_v6, 1 }
  0x20   : > { %v335_v38 = vsel %vm332_vm0, %v333_v22, %v334_v23  ;;  %v338_v43 = vsel %vm332_vm0, %v336_v24, %v337_v29  ;;  %v346_v53 = vrot.slane %v309_v7, 1  ;;  %v348_v21 = vrot.slane %v310_v8, 1 }
  0x21   : > { %v341_v26 = vsel %vm332_vm0, %v339_v30, %v340_v31  ;;  %v344_v45 = vsel %vm332_vm0, %v342_v36, %v343_v37  ;;  %v349_v12 = vrot.slane %v311_v9, 1  ;;  %v351_v63 = vrot.slane %v312_v10, 1 }
  0x22   : > { %v347_v62 = vsel %vm332_vm0, %v345_v44, %v346_v53  ;;  %v352_v0 = vrot.slane %v313_v11, 1  ;;  %v354_v1 = vrot.slane %v314_v15, 1  ;;  %v355_v3 = vrot.slane %v315_v17, 1 }
  0x23   : > { %v350_v2 = vsel %vm332_vm0, %v348_v21, %v349_v12  ;;  %v365_v4 = vadd.f32 %v335_v38, %v280_v54  ;;  %v366_v5 = vadd.f32 %v338_v43, %v281_v55  ;;  %v367_v7 = vadd.f32 %v341_v26, %v282_v56 }
  0x24   : > { %v353_v6 = vsel %vm332_vm0, %v351_v63, %v352_v0  ;;  %v368_v22 = vadd.f32 %v344_v45, %v283_v57  ;;  %v369_v23 = vadd.f32 %v347_v62, %v284_v58  ;;  %v356_v24 = vsel %vm332_vm0, %v354_v1, %v355_v3 }
  0x25   : > { %v370_v8 = vadd.f32 %v350_v2, %v285_v59  ;;  %v371_v9 = vadd.f32 %v353_v6, %v286_v60  ;;  %v377_v53 = vmul.f32 %v1137_v13, %v1157_v25  ;;  %v372_v10 = vadd.f32 %v356_v24, %v287_v61 }
  0x26   : > { %v1510_v11 = vunpack.c.l.bf16 %v1143_v16  ;;  %v379_v54 = vmul.f32 %v1137_v13, %v1160_v27  ;;  %v380_v26 = vmul.f32 %v1137_v13, %v1162_v28  ;;  %v381_v45 = vmul.f32 %v1137_v13, %v1167_v32 }
  0x27   : > { %v382_v55 = vmul.f32 %v1137_v13, %v1169_v33  ;;  %v383_v25 = vmul.f32 %v1137_v13, %v1171_v34  ;;  %v384_v16 = vmul.f32 %v1137_v13, %v1173_v35  ;;  %v385_v56 = vmul.f32 %v1137_v13, %v1178_v39 }
  0x28   : > { %v378_v21 = vmul.f32 %v1137_v13, %v1510_v11  ;;  %v386_v57 = vmul.f32 %v1137_v13, %v1180_v40  ;;  %v387_v58 = vmul.f32 %v1137_v13, %v1182_v41  ;;  %v388_v59 = vmul.f32 %v1137_v13, %v1184_v42 }
  0x29   : > { %v389_v60 = vmul.f32 %v1137_v13, %v1191_v46  ;;  %v390_v61 = vmul.f32 %v1137_v13, %v1193_v47  ;;  %v391_v15 = vmul.f32 %v1137_v13, %v1195_v48  ;;  %v392_v17 = vmul.f32 %v1137_v13, %v1197_v49 }
  0x2a   : > { %v410_v29 = vrot.slane %v377_v53, 2  ;;  %v411_v30 = vrot.slane %v378_v21, 2  ;;  %v413_v31 = vrot.slane %v379_v54, 2  ;;  %v414_v36 = vrot.slane %v380_v26, 2 }
  0x2b   : > { %v416_v37 = vrot.slane %v381_v45, 2  ;;  %v417_v38 = vrot.slane %v382_v55, 2  ;;  %v419_v43 = vrot.slane %v383_v25, 2  ;;  %v420_v44 = vrot.slane %v384_v16, 2 }
  0x2c   : > { %v412_v12 = vsel %vm409_vm1, %v410_v29, %v411_v30  ;;  %v415_v62 = vsel %vm409_vm1, %v413_v31, %v414_v36  ;;  %v422_v63 = vrot.slane %v385_v56, 2  ;;  %v423_v0 = vrot.slane %v386_v57, 2 }
  0x2d   : > { %v418_v1 = vsel %vm409_vm1, %v416_v37, %v417_v38  ;;  %v421_v2 = vsel %vm409_vm1, %v419_v43, %v420_v44  ;;  %v425_v3 = vrot.slane %v387_v58, 2  ;;  %v426_v13 = vrot.slane %v388_v59, 2 }
  0x2e   : > { %v424_v6 = vsel %vm409_vm1, %v422_v63, %v423_v0  ;;  %v428_v24 = vrot.slane %v389_v60, 2  ;;  %v429_v53 = vrot.slane %v390_v61, 2  ;;  %v431_v11 = vrot.slane %v391_v15, 2 }
  0x2f   : > { %v427_v21 = vsel %vm409_vm1, %v425_v3, %v426_v13  ;;  %v432_v54 = vrot.slane %v392_v17, 2  ;;  %v442_v26 = vadd.f32 %v412_v12, %v365_v4  ;;  %v443_v45 = vadd.f32 %v415_v62, %v366_v5 }
  0x30   : > { %v430_v55 = vsel %vm409_vm1, %v428_v24, %v429_v53  ;;  %v444_v25 = vadd.f32 %v418_v1, %v367_v7  ;;  %v445_v16 = vadd.f32 %v421_v2, %v368_v22  ;;  %v446_v56 = vadd.f32 %v424_v6, %v369_v23 }
  0x31   : > { %v433_v57 = vsel %vm409_vm1, %v431_v11, %v432_v54  ;;  %v447_v29 = vadd.f32 %v427_v21, %v370_v8  ;;  %v448_v58 = vadd.f32 %v430_v55, %v371_v9  ;;  %v454_v59 = vmul.f32 %v1139_v14, %v1160_v27 }
  0x32   : > { %v449_v60 = vadd.f32 %v433_v57, %v372_v10  ;;  %v455_v61 = vmul.f32 %v1139_v14, %v1167_v32  ;;  %v456_v4 = vmul.f32 %v1139_v14, %v1171_v34  ;;  %v457_v5 = vmul.f32 %v1139_v14, %v1178_v39 }
  0x33   : > { %v458_v7 = vmul.f32 %v1139_v14, %v1182_v41  ;;  %v459_v22 = vmul.f32 %v1139_v14, %v1191_v46  ;;  %v460_v23 = vmul.f32 %v1139_v14, %v1195_v48  ;;  %v461_v8 = vmul.f32 %v1139_v14, %v1199_v50 }
  0x34   : > { %v462_v9 = vadd.f32 %v454_v59, %v442_v26  ;;  %v463_v10 = vadd.f32 %v455_v61, %v443_v45  ;;  %v464_v15 = vadd.f32 %v456_v4, %v444_v25  ;;  %v465_v17 = vadd.f32 %v457_v5, %v445_v16 }
  0x35   : > { %v466_v30 = vadd.f32 %v458_v7, %v446_v56  ;;  %v467_v31 = vadd.f32 %v459_v22, %v447_v29  ;;  %v468_v36 = vadd.f32 %v460_v23, %v448_v58  ;;  %v469_v37 = vadd.f32 %v461_v8, %v449_v60 }
  0x36   : > { %v474_v38 = vmul.f32 %v1146_v18, %v1160_v27  ;;  %v475_v43 = vmul.f32 %v1146_v18, %v1162_v28  ;;  %v476_v44 = vmul.f32 %v1146_v18, %v1167_v32  ;;  %v477_v14 = vmul.f32 %v1146_v18, %v1169_v33 }
  0x37   : > { %v478_v12 = vmul.f32 %v1146_v18, %v1171_v34  ;;  %v479_v62 = vmul.f32 %v1146_v18, %v1173_v35  ;;  %v480_v63 = vmul.f32 %v1146_v18, %v1178_v39  ;;  %v481_v0 = vmul.f32 %v1146_v18, %v1180_v40 }
  0x38   : > { %v482_v1 = vmul.f32 %v1146_v18, %v1182_v41  ;;  %v483_v2 = vmul.f32 %v1146_v18, %v1184_v42  ;;  %v484_v3 = vmul.f32 %v1146_v18, %v1191_v46  ;;  %v485_v13 = vmul.f32 %v1146_v18, %v1193_v47 }
  0x39   : > { %v486_v6 = vmul.f32 %v1146_v18, %v1195_v48  ;;  %v487_v24 = vmul.f32 %v1146_v18, %v1197_v49  ;;  %v488_v53 = vmul.f32 %v1146_v18, %v1199_v50  ;;  %v489_v11 = vmul.f32 %v1146_v18, %v1201_v51 }
  0x3a   : > { %v506_v21 = vrot.slane %v474_v38, 1  ;;  %v507_v54 = vrot.slane %v475_v43, 1  ;;  %v509_v26 = vrot.slane %v476_v44, 1  ;;  %v510_v45 = vrot.slane %v477_v14, 1 }
  0x3b   : > { %v512_v55 = vrot.slane %v478_v12, 1  ;;  %v513_v25 = vrot.slane %v479_v62, 1  ;;  %v515_v16 = vrot.slane %v480_v63, 1  ;;  %v516_v56 = vrot.slane %v481_v0, 1 }
  0x3c   : > { %v508_v57 = vsel %vm332_vm0, %v506_v21, %v507_v54  ;;  %v511_v29 = vsel %vm332_vm0, %v509_v26, %v510_v45  ;;  %v518_v58 = vrot.slane %v482_v1, 1  ;;  %v519_v59 = vrot.slane %v483_v2, 1 }
  0x3d   : > { %v514_v60 = vsel %vm332_vm0, %v512_v55, %v513_v25  ;;  %v517_v61 = vsel %vm332_vm0, %v515_v16, %v516_v56  ;;  %v521_v4 = vrot.slane %v484_v3, 1  ;;  %v522_v18 = vrot.slane %v485_v13, 1 }
  0x3e   : > { %v520_v5 = vsel %vm332_vm0, %v518_v58, %v519_v59  ;;  %v524_v7 = vrot.slane %v486_v6, 1  ;;  %v525_v22 = vrot.slane %v487_v24, 1  ;;  %v527_v23 = vrot.slane %v488_v53, 1 }
  0x3f   : > { %v523_v8 = vsel %vm332_vm0, %v521_v4, %v522_v18  ;;  %v528_v38 = vrot.slane %v489_v11, 1  ;;  %v538_v43 = vadd.f32 %v508_v57, %v462_v9  ;;  %v539_v44 = vadd.f32 %v511_v29, %v463_v10 }
  0x40   : > { %v526_v14 = vsel %vm332_vm0, %v524_v7, %v525_v22  ;;  %v540_v12 = vadd.f32 %v514_v60, %v464_v15  ;;  %v541_v62 = vadd.f32 %v517_v61, %v465_v17  ;;  %v542_v63 = vadd.f32 %v520_v5, %v466_v30 }
  0x41   : > { %v529_v0 = vsel %vm332_vm0, %v527_v23, %v528_v38  ;;  %v543_v1 = vadd.f32 %v523_v8, %v467_v31  ;;  %v544_v2 = vadd.f32 %v526_v14, %v468_v36  ;;  %v550_v3 = vmul.f32 %v1148_v19, %v1160_v27 }
  0x42   : > { %v545_v13 = vadd.f32 %v529_v0, %v469_v37  ;;  %v551_v6 = vmul.f32 %v1148_v19, %v1162_v28  ;;  %v552_v9 = vmul.f32 %v1148_v19, %v1167_v32  ;;  %v553_v10 = vmul.f32 %v1148_v19, %v1169_v33 }
  0x43   : > { %v554_v15 = vmul.f32 %v1148_v19, %v1171_v34  ;;  %v555_v17 = vmul.f32 %v1148_v19, %v1173_v35  ;;  %v556_v30 = vmul.f32 %v1148_v19, %v1178_v39  ;;  %v557_v27 = vmul.f32 %v1148_v19, %v1180_v40 }
  0x44   : > { %v558_v28 = vmul.f32 %v1148_v19, %v1182_v41  ;;  %v559_v31 = vmul.f32 %v1148_v19, %v1184_v42  ;;  %v560_v36 = vmul.f32 %v1148_v19, %v1191_v46  ;;  %v561_v37 = vmul.f32 %v1148_v19, %v1193_v47 }
  0x45   : > { %v562_v24 = vmul.f32 %v1148_v19, %v1195_v48  ;;  %v563_v53 = vmul.f32 %v1148_v19, %v1197_v49  ;;  %v564_v11 = vmul.f32 %v1148_v19, %v1199_v50  ;;  %v565_v21 = vmul.f32 %v1148_v19, %v1201_v51 }
  0x46   : > { %v582_v54 = vrot.slane %v550_v3, 2  ;;  %v583_v26 = vrot.slane %v551_v6, 2  ;;  %v585_v45 = vrot.slane %v552_v9, 2  ;;  %v586_v55 = vrot.slane %v553_v10, 2 }
  0x47   : > { %v588_v25 = vrot.slane %v554_v15, 2  ;;  %v589_v16 = vrot.slane %v555_v17, 2  ;;  %v591_v56 = vrot.slane %v556_v30, 2  ;;  %v592_v57 = vrot.slane %v557_v27, 2 }
  0x48   : > { %v584_v29 = vsel %vm409_vm1, %v582_v54, %v583_v26  ;;  %v587_v58 = vsel %vm409_vm1, %v585_v45, %v586_v55  ;;  %v594_v59 = vrot.slane %v558_v28, 2  ;;  %v595_v60 = vrot.slane %v559_v31, 2  ;;  %v1511_v54 = vld [vmem:[#allocation2_spill] sm:$0xff] }
  0x49   : > { %v590_v61 = vsel %vm409_vm1, %v588_v25, %v589_v16  ;;  %v593_v4 = vsel %vm409_vm1, %v591_v56, %v592_v57  ;;  %v597_v18 = vrot.slane %v560_v36, 2  ;;  %v598_v19 = vrot.slane %v561_v37, 2 }
  0x4a   : > { %v596_v5 = vsel %vm409_vm1, %v594_v59, %v595_v60  ;;  %v600_v7 = vrot.slane %v562_v24, 2  ;;  %v601_v22 = vrot.slane %v563_v53, 2  ;;  %v603_v23 = vrot.slane %v564_v11, 2 }
  0x4b   : > { %v599_v8 = vsel %vm409_vm1, %v597_v18, %v598_v19  ;;  %v604_v38 = vrot.slane %v565_v21, 2  ;;  %v614_v14 = vadd.f32 %v584_v29, %v538_v43  ;;  %v615_v0 = vadd.f32 %v587_v58, %v539_v44  ;;  %v1512_v19 = vld [vmem:[#allocation3_spill] sm:$0xff] }
  0x4c   : > { %v602_v3 = vsel %vm409_vm1, %v600_v7, %v601_v22  ;;  %v616_v6 = vadd.f32 %v590_v61, %v540_v12  ;;  %v617_v9 = vadd.f32 %v593_v4, %v541_v62  ;;  %v618_v10 = vadd.f32 %v596_v5, %v542_v63 }
  0x4d   : > { %v605_v15 = vsel %vm409_vm1, %v603_v23, %v604_v38  ;;  %v619_v17 = vadd.f32 %v599_v8, %v543_v1  ;;  %v620_v30 = vadd.f32 %v602_v3, %v544_v2  ;;  %v626_v27 = vmul.f32 %v1150_v20, %v1167_v32 }
  0x4e   : > { %v621_v28 = vadd.f32 %v605_v15, %v545_v13  ;;  %v627_v31 = vmul.f32 %v1150_v20, %v1171_v34  ;;  %v628_v43 = vmul.f32 %v1150_v20, %v1178_v39  ;;  %v629_v44 = vmul.f32 %v1150_v20, %v1182_v41 }
  0x4f   : > { %v630_v12 = vmul.f32 %v1150_v20, %v1191_v46  ;;  %v631_v62 = vmul.f32 %v1150_v20, %v1195_v48  ;;  %v632_v63 = vmul.f32 %v1150_v20, %v1199_v50  ;;  %v633_v1 = vmul.f32 %v1150_v20, %v1203_v52 }
  0x50   : > { %v634_v2 = vadd.f32 %v626_v27, %v614_v14  ;;  %v635_v13 = vadd.f32 %v627_v31, %v615_v0  ;;  %v636_v36 = vadd.f32 %v628_v43, %v616_v6  ;;  %v637_v37 = vadd.f32 %v629_v44, %v617_v9  ;;  %v1000_v43 = vld [vmem:[%s1499_s1 + $0x8] ss:$0 sm:$0xff] }
  0x51   : > { %v638_v24 = vadd.f32 %v630_v12, %v618_v10  ;;  %v639_v53 = vadd.f32 %v631_v62, %v619_v17  ;;  %v640_v11 = vadd.f32 %v632_v63, %v620_v30  ;;  %v641_v21 = vadd.f32 %v633_v1, %v621_v28 }
  0x52   : > { %v646_v26 = vmul.f32 %v1511_v54, %v1167_v32  ;;  %v647_v45 = vmul.f32 %v1511_v54, %v1169_v33  ;;  %v648_v55 = vmul.f32 %v1511_v54, %v1171_v34  ;;  %v649_v20 = vmul.f32 %v1511_v54, %v1173_v35 }
  0x53   : > { %v650_v25 = vmul.f32 %v1511_v54, %v1178_v39  ;;  %v651_v16 = vmul.f32 %v1511_v54, %v1180_v40  ;;  %v652_v56 = vmul.f32 %v1511_v54, %v1182_v41  ;;  %v653_v57 = vmul.f32 %v1511_v54, %v1184_v42 }
  0x54   : > { %v654_v29 = vmul.f32 %v1511_v54, %v1191_v46  ;;  %v655_v58 = vmul.f32 %v1511_v54, %v1193_v47  ;;  %v656_v59 = vmul.f32 %v1511_v54, %v1195_v48  ;;  %v657_v60 = vmul.f32 %v1511_v54, %v1197_v49 }
  0x55   : > { %v658_v61 = vmul.f32 %v1511_v54, %v1199_v50  ;;  %v659_v4 = vmul.f32 %v1511_v54, %v1201_v51  ;;  %v660_v18 = vmul.f32 %v1511_v54, %v1203_v52  ;;  %v1513_v5 = vunpack.c.l.bf16 %v1512_v19 }
  0x56   : > { %v678_v22 = vrot.slane %v646_v26, 1  ;;  %v679_v23 = vrot.slane %v647_v45, 1  ;;  %v681_v8 = vrot.slane %v648_v55, 1  ;;  %v682_v38 = vrot.slane %v649_v20, 1 }
  0x57   : > { %v661_v7 = vmul.f32 %v1511_v54, %v1513_v5  ;;  %v684_v14 = vrot.slane %v650_v25, 1  ;;  %v685_v0 = vrot.slane %v651_v16, 1  ;;  %v687_v3 = vrot.slane %v652_v56, 1 }
  0x58   : > { %v688_v6 = vrot.slane %v653_v57, 1  ;;  %v680_v9 = vsel %vm332_vm0, %v678_v22, %v679_v23  ;;  %v683_v10 = vsel %vm332_vm0, %v681_v8, %v682_v38  ;;  %v690_v15 = vrot.slane %v654_v29, 1 }
  0x59   : > { %v691_v17 = vrot.slane %v655_v58, 1  ;;  %v686_v30 = vsel %vm332_vm0, %v684_v14, %v685_v0  ;;  %v693_v28 = vrot.slane %v656_v59, 1  ;;  %v694_v31 = vrot.slane %v657_v60, 1 }
  0x5a   : > { %v689_v27 = vsel %vm332_vm0, %v687_v3, %v688_v6  ;;  %v696_v12 = vrot.slane %v658_v61, 1  ;;  %v697_v62 = vrot.slane %v659_v4, 1  ;;  %v699_v63 = vrot.slane %v660_v18, 1  ;;  %v1001_v3 = vld [vmem:[%s1500_s2] ss:$0 sm:$0xff] }
  0x5b   : > { %v692_v44 = vsel %vm332_vm0, %v690_v15, %v691_v17  ;;  %v695_v1 = vsel %vm332_vm0, %v693_v28, %v694_v31  ;;  %v700_v54 = vrot.slane %v661_v7, 1  ;;  %v710_v26 = vadd.f32 %v680_v9, %v634_v2  ;;  %v1002_v31 = vld [vmem:[%s1501_s3] ss:$0 sm:$0xff] }
  0x5c   : > { %v711_v45 = vadd.f32 %v683_v10, %v635_v13  ;;  %v698_v55 = vsel %vm332_vm0, %v696_v12, %v697_v62  ;;  %v712_v20 = vadd.f32 %v686_v30, %v636_v36  ;;  %v713_v25 = vadd.f32 %v689_v27, %v637_v37 }
  0x5d   : > { %v714_v16 = vadd.f32 %v692_v44, %v638_v24  ;;  %v701_v56 = vsel %vm332_vm0, %v699_v63, %v700_v54  ;;  %v715_v57 = vadd.f32 %v695_v1, %v639_v53  ;;  %v716_v29 = vadd.f32 %v698_v55, %v640_v11 }
  0x5e   : > { %v722_v58 = vmul.f32 %v1000_v43, %v1167_v32  ;;  %v717_v59 = vadd.f32 %v701_v56, %v641_v21  ;;  %v723_v60 = vmul.f32 %v1000_v43, %v1169_v33  ;;  %v724_v61 = vmul.f32 %v1000_v43, %v1171_v34 }
  0x5f   : > { %v725_v4 = vmul.f32 %v1000_v43, %v1173_v35  ;;  %v726_v2 = vmul.f32 %v1000_v43, %v1178_v39  ;;  %v727_v13 = vmul.f32 %v1000_v43, %v1180_v40  ;;  %v728_v36 = vmul.f32 %v1000_v43, %v1182_v41 }
  0x60   : > { %v729_v37 = vmul.f32 %v1000_v43, %v1184_v42  ;;  %v730_v24 = vmul.f32 %v1000_v43, %v1191_v46  ;;  %v731_v53 = vmul.f32 %v1000_v43, %v1193_v47  ;;  %v732_v32 = vmul.f32 %v1000_v43, %v1195_v48 }
  0x61   : > { %v733_v33 = vmul.f32 %v1000_v43, %v1197_v49  ;;  %v734_v34 = vmul.f32 %v1000_v43, %v1199_v50  ;;  %v735_v35 = vmul.f32 %v1000_v43, %v1201_v51  ;;  %v736_v39 = vmul.f32 %v1000_v43, %v1203_v52 }
  0x62   : > { %v1514_v40 = vmov %v1513_v5  ;;  %v754_v41 = vrot.slane %v722_v58, 2  ;;  %v755_v21 = vrot.slane %v723_v60, 2  ;;  %v757_v42 = vrot.slane %v724_v61, 2 }
  0x63   : > { %v737_v11 = vmul.f32 %v1000_v43, %v1514_v40  ;;  %v758_v18 = vrot.slane %v725_v4, 2  ;;  %v760_v46 = vrot.slane %v726_v2, 2  ;;  %v761_v5 = vrot.slane %v727_v13, 2 }
  0x64   : > { %v763_v47 = vrot.slane %v728_v36, 2  ;;  %v764_v7 = vrot.slane %v729_v37, 2  ;;  %v756_v48 = vsel %vm409_vm1, %v754_v41, %v755_v21  ;;  %v766_v50 = vrot.slane %v730_v24, 2 }
  0x65   : > { %v759_v49 = vsel %vm409_vm1, %v757_v42, %v758_v18  ;;  %v767_v22 = vrot.slane %v731_v53, 2  ;;  %v762_v51 = vsel %vm409_vm1, %v760_v46, %v761_v5  ;;  %v769_v19 = vrot.slane %v732_v32, 2 }
  0x66   : > { %v765_v52 = vsel %vm409_vm1, %v763_v47, %v764_v7  ;;  %v770_v23 = vrot.slane %v733_v33, 2  ;;  %v772_v38 = vrot.slane %v734_v34, 2  ;;  %v773_v14 = vrot.slane %v735_v35, 2 }
  0x67   : > { %v768_v8 = vsel %vm409_vm1, %v766_v50, %v767_v22  ;;  %v775_v0 = vrot.slane %v736_v39, 2  ;;  %v776_v9 = vrot.slane %v737_v11, 2  ;;  %v786_v10 = vadd.f32 %v756_v48, %v710_v26 }
  0x68   : > { %v771_v6 = vsel %vm409_vm1, %v769_v19, %v770_v23  ;;  %v787_v15 = vadd.f32 %v759_v49, %v711_v45  ;;  %v774_v17 = vsel %vm409_vm1, %v772_v38, %v773_v14  ;;  %v788_v30 = vadd.f32 %v762_v51, %v712_v20 }
  0x69   : > { %v789_v27 = vadd.f32 %v765_v52, %v713_v25  ;;  %v790_v28 = vadd.f32 %v768_v8, %v714_v16  ;;  %v777_v43 = vsel %vm409_vm1, %v775_v0, %v776_v9  ;;  %v791_v44 = vadd.f32 %v771_v6, %v715_v57 }
  0x6a   : > { %v792_v12 = vadd.f32 %v774_v17, %v716_v29  ;;  %v801_v62 = vmul.f32 %v1001_v3, %v786_v10  ;;  %v793_v63 = vadd.f32 %v777_v43, %v717_v59  ;;  %v802_v1 = vmul.f32 %v1001_v3, %v787_v15 }
  0x6b   : > { %v803_v54 = vmul.f32 %v1001_v3, %v788_v30  ;;  %v804_v55 = vmul.f32 %v1001_v3, %v789_v27  ;;  %v805_v26 = vmul.f32 %v1001_v3, %v790_v28  ;;  %v806_v45 = vmul.f32 %v1001_v3, %v791_v44 }
  0x6c   : > { %v807_v56 = vmul.f32 %v1001_v3, %v792_v12  ;;  %v816_v58 = vadd.f32 %v1002_v31, %v801_v62  ;;  %v808_v20 = vmul.f32 %v1001_v3, %v793_v63  ;;  %v817_v25 = vadd.f32 %v1002_v31, %v802_v1 }
  0x6d   : > { %v818_v16 = vadd.f32 %v1002_v31, %v803_v54  ;;  %v819_v60 = vadd.f32 %v1002_v31, %v804_v55  ;;  %v820_v61 = vadd.f32 %v1002_v31, %v805_v26  ;;  %v821_v4 = vadd.f32 %v1002_v31, %v806_v45 }
  0x6e   : > { %v1483_v2 = vadd.f32 %v1002_v31, %v807_v56  ;;  %v1003_v13 = vmul.f32 -1.442695, %v816_v58  ;;  %v823_v57 = vadd.f32 %v1002_v31, %v808_v20  ;;  %v1004_v29 = vmul.f32 -1.442695, %v817_v25 }
  0x6f   : > { %v1005_v36 = vmul.f32 -1.442695, %v818_v16  ;;  %v1006_v59 = vmul.f32 -1.442695, %v819_v60  ;;  %v1007_v37 = vmul.f32 -1.442695, %v820_v61 }
  0x70   : > { %1046 = vpow2.f32 %v1003_v13  ;;  %v1008_v24 = vmul.f32 -1.442695, %v821_v4  ;;  %v1009_v53 = vmul.f32 -1.442695, %v1483_v2  ;;  %v1010_v32 = vmul.f32 -1.442695, %v823_v57 }
  0x71   : > { %1048 = vpow2.f32 %v1004_v29 }
  0x72   : > { %1050 = vpow2.f32 %v1005_v36 }
  0x73   : > { %1052 = vpow2.f32 %v1006_v59 }
  0x74   : > { %1054 = vpow2.f32 %v1007_v37 }
  0x75   : > { %1056 = vpow2.f32 %v1008_v24 }
  0x76   : > { %1058 = vpow2.f32 %v1009_v53 }
  0x77   : > { %1060 = vpow2.f32 %v1010_v32 }
  0x7d   : > { %v1047_v33 = vpop.eup %1046 }
  0x7e   : > { %v1049_v34 = vpop.eup %1048  ;;  %v848_v35 = vadd.f32 1.0, %v1047_v33 }
  0x7f   : > { %v1051_v39 = vpop.eup %1050  ;;  %v849_v40 = vadd.f32 1.0, %v1049_v34 }
  0x80   : > { %v1053_v11 = vpop.eup %1052  ;;  %v850_v41 = vadd.f32 1.0, %v1051_v39  ;;  %1062 = vrcp.f32 %v848_v35 }
  0x81   : > { %v1055_v21 = vpop.eup %1054  ;;  %v851_v42 = vadd.f32 1.0, %v1053_v11  ;;  %1064 = vrcp.f32 %v849_v40 }
  0x82   : > { %v1057_v18 = vpop.eup %1056  ;;  %v852_v46 = vadd.f32 1.0, %v1055_v21  ;;  %1066 = vrcp.f32 %v850_v41 }
  0x83   : > { %v1059_v5 = vpop.eup %1058  ;;  %v853_v47 = vadd.f32 1.0, %v1057_v18  ;;  %1068 = vrcp.f32 %v851_v42 }
  0x84   : > { %v1061_v7 = vpop.eup %1060  ;;  %v854_v48 = vadd.f32 1.0, %v1059_v5  ;;  %1070 = vrcp.f32 %v852_v46 }
  0x85   : > { %v855_v49 = vadd.f32 1.0, %v1061_v7  ;;  %1072 = vrcp.f32 %v853_v47 }
  0x86   : > { %1074 = vrcp.f32 %v854_v48 }
  0x87   : > { %1076 = vrcp.f32 %v855_v49 }
  0x8d   : > { %v1063_v50 = vpop.eup %1062 }
  0x8e   : > { %v1065_v22 = vpop.eup %1064  ;;  %v872_v51 = vmul.f32 %v1063_v50, %v816_v58 }
  0x8f   : > { %v1067_v52 = vpop.eup %1066  ;;  %v873_v19 = vmul.f32 %v1065_v22, %v817_v25 }
  0x90   : > { %v1069_v23 = vpop.eup %1068  ;;  %v874_v8 = vmul.f32 %v1067_v52, %v818_v16 }
  0x91   : > { %v1071_v38 = vpop.eup %1070  ;;  %v875_v14 = vmul.f32 %v1069_v23, %v819_v60  ;;  %v1017_v0 = vpack.c.bf16 %v873_v19, %v872_v51  ;;  %v896_v3 = vadd.f32 %v873_v19, %v872_v51 }
  0x92   : > { %v1073_v6 = vpop.eup %1072  ;;  %v876_v10 = vmul.f32 %v1071_v38, %v820_v61 }
  0x93   : > { %v1075_v9 = vpop.eup %1074  ;;  %v877_v15 = vmul.f32 %v1073_v6, %v821_v4  ;;  %1018 = vst [vmem:[%s230_s10] sm:$0xff] %v1017_v0   ;;  %v1022_v17 = vpack.c.bf16 %v875_v14, %v874_v8  ;;  %v897_v30 = vadd.f32 %v896_v3, %v874_v8 }
  0x94   : > { %v1077_v27 = vpop.eup %1076  ;;  %v878_v28 = vmul.f32 %v1075_v9, %v1483_v2 }
  0x95   : > { %v879_v31 = vmul.f32 %v1077_v27, %v823_v57  ;;  %1034 = vst [vmem:[%s230_s10 + $0x8] sm:$0xff] %v1022_v17   ;;  %v1027_v43 = vpack.c.bf16 %v877_v15, %v876_v10  ;;  %v898_v44 = vadd.f32 %v897_v30, %v875_v14 }
  0x97   : > { %1035 = vst [vmem:[%s230_s10 + $0x10] sm:$0xff] %v1027_v43   ;;  %v1032_v12 = vpack.c.bf16 %v879_v31, %v878_v28  ;;  %v899_v62 = vadd.f32 %v898_v44, %v876_v10 }
  0x99   : > { %1036 = vst [vmem:[%s230_s10 + $0x18] sm:$0xff] %v1032_v12   ;;  %v900_v63 = vadd.f32 %v899_v62, %v877_v15 }
  0x9b   : > { %v901_v1 = vadd.f32 %v900_v63, %v878_v28 }
  0x9d   : > { %v902_v54 = vadd.f32 %v901_v1, %v879_v31 }
  0x9f   : > { %v903_v55 = vrot.slane %v902_v54, 4 }
  0xa1   : > { %v904_v26 = vadd.f32 %v903_v55, %v902_v54 }
  0xa3   : > { %v905_v45 = vrot.slane %v904_v26, 2 }
  0xa5   : > { %v906_v56 = vadd.f32 %v905_v45, %v904_v26 }
  0xa7   : > { %v907_v58 = vrot.slane %v906_v56, 1 }
  0xa9   : > { %v908_v20 = vadd.f32 %v907_v58, %v906_v56 }
  0xab   : > { %v910_v25 = vmul.f32 0.015625, %v908_v20 }
  0xad   : > { %911 = vst [vmem:[%s233_s13] sm:$0x1] %v910_v25 }
  0xae PF: > { %s16_s18 = sadd.s32 1, %s1084_s18  }
  0xaf   : > { %p13_p4 = scmp.ge.s32.totalorder %s16_s18, 4  }
  0xb1   :  { %15 = sbr.rel (!%p13_p4) target bundleno = 1 (0x1), region = 78 }

// kernel: efficientnet_forward.13
= control target key start
LH: loop header
LB: loop body
LE: loop exit
PB: predicated region body
PF: predicated region fallthrough
CT: control target
= control target key end

     0   :  { %v368_v0 = vmov 0.0   ;;  %vm369_vm0 = vmmov 0   ;;  %s460_s1 = inlined_call_operand.vmem [shape: bf16[128,128], index: 1, kind: input, shape index: {}]   ;;  %s461_s0 = inlined_call_operand.vmem [shape: f32[2,128], index: 0, kind: input, shape index: {}]   ;;  %s462_s3 = inlined_call_operand.vmem [shape: bf16[128,128], index: 3, kind: input, shape index: {}]   ;;  %s463_s2 = inlined_call_operand.vmem [shape: f32[1,128], index: 2, kind: input, shape index: {}]   ;;  %s464_s4 = inlined_call_operand.vmem [shape: f32[1,128], index: 4, kind: input, shape index: {}]   ;;  %s465_s5 = inlined_call_operand.vmem [shape: f32[2,128], index: 5, kind: output, shape index: {}]  }
   0x1   :  { %302 = vmatprep.subr.bf16.mxu0 %v368_v0  ;;  %v344_v1 = vld [vmem:[%s460_s1 + $0x38] sm:$0xff]   ;;  %318 = vmatprep.mubr.msk.bf16.mxu0 %vm369_vm0, %v368_v0  ;;  %v345_v2 = vld [vmem:[%s460_s1 + $0x30] sm:$0xff]   ;;  %v346_v3 = vld [vmem:[%s460_s1 + $0x28] sm:$0xff]  }
   0x2   :  { %322 = vmatprep.subr.bf16.mxu1 %v368_v0  ;;  %338 = vmatprep.mubr.msk.bf16.mxu1 %vm369_vm0, %v368_v0  ;;  %v347_v4 = vld [vmem:[%s460_s1 + $0x20] sm:$0xff]   ;;  %v348_v5 = vld [vmem:[%s460_s1 + $0x18] sm:$0xff]   ;;  %v349_v6 = vld [vmem:[%s460_s1 + $0x10] sm:$0xff]  }
   0x3   :  { %303 = vmatpush3.bf16.msra.mxu0 %v344_v1  ;;  %v350_v7 = vld [vmem:[%s460_s1 + $0x8] sm:$0xff]   ;;  %v351_v8 = vld [vmem:[%s460_s1] sm:$0xff]   ;;  %v352_v11 = vld [vmem:[%s462_s3 + $0x38] sm:$0xff]  }
   0x4   :  { %304 = vmatprep.subr.bf16.mxu0 %v368_v0  ;;  %v21_v9 = vld [vmem:[%s461_s0] sm:$0x3]  ;;  %323 = vmatpush3.bf16.msra.mxu1 %v352_v11  ;;  %v353_v12 = vld [vmem:[%s462_s3 + $0x30] sm:$0xff]   ;;  %v354_v13 = vld [vmem:[%s462_s3 + $0x28] sm:$0xff]  }
   0x5   :  { %v22_v10 = vpack.c.bf16 %v21_v9, %v21_v9  ;;  %324 = vmatprep.subr.bf16.mxu1 %v368_v0  ;;  %v355_v14 = vld [vmem:[%s462_s3 + $0x20] sm:$0xff]   ;;  %v356_v15 = vld [vmem:[%s462_s3 + $0x18] sm:$0xff]   ;;  %v357_v16 = vld [vmem:[%s462_s3 + $0x10] sm:$0xff]  }
   0x6   :  { %v358_v17 = vld [vmem:[%s462_s3 + $0x8] sm:$0xff]   ;;  %v359_v18 = vld [vmem:[%s462_s3] sm:$0xff]  }
   0x7   :  { %305 = vmatpush3.bf16.msra.mxu0 %v345_v2  ;;  %v264_v19 = vld [vmem:[%s463_s2] ss:$0 sm:$0xff] }
   0x8   :  { %306 = vmatprep.subr.bf16.mxu0 %v368_v0  ;;  %325 = vmatpush3.bf16.msra.mxu1 %v353_v12  ;;  %v274_v31 = vld [vmem:[%s464_s4] ss:$0 sm:$0xff] }
   0x9   :  { %326 = vmatprep.subr.bf16.mxu1 %v368_v0 }
   0xb   :  { %307 = vmatpush3.bf16.msra.mxu0 %v346_v3 }
   0xc   :  { %308 = vmatprep.subr.bf16.mxu0 %v368_v0  ;;  %327 = vmatpush3.bf16.msra.mxu1 %v354_v13 }
   0xd   :  { %328 = vmatprep.subr.bf16.mxu1 %v368_v0 }
   0xf   :  { %309 = vmatpush3.bf16.msra.mxu0 %v347_v4 }
  0x10   :  { %310 = vmatprep.subr.bf16.mxu0 %v368_v0  ;;  %329 = vmatpush3.bf16.msra.mxu1 %v355_v14 }
  0x11   :  { %330 = vmatprep.subr.bf16.mxu1 %v368_v0 }
  0x13   :  { %311 = vmatpush3.bf16.msra.mxu0 %v348_v5 }
  0x14   :  { %312 = vmatprep.subr.bf16.mxu0 %v368_v0  ;;  %331 = vmatpush3.bf16.msra.mxu1 %v356_v15 }
  0x15   :  { %332 = vmatprep.subr.bf16.mxu1 %v368_v0 }
  0x17   :  { %313 = vmatpush3.bf16.msra.mxu0 %v349_v6 }
  0x18   :  { %314 = vmatprep.subr.bf16.mxu0 %v368_v0  ;;  %333 = vmatpush3.bf16.msra.mxu1 %v357_v16 }
  0x19   :  { %334 = vmatprep.subr.bf16.mxu1 %v368_v0 }
  0x1b   :  { %315 = vmatpush3.bf16.msra.mxu0 %v350_v7 }
  0x1c   :  { %316 = vmatprep.subr.bf16.mxu0 %v368_v0  ;;  %335 = vmatpush3.bf16.msra.mxu1 %v358_v17 }
  0x1d   :  { %336 = vmatprep.subr.bf16.mxu1 %v368_v0 }
  0x1f   :  { %317 = vmatpush3.bf16.msra.mxu0 %v351_v8 }
  0x20   :  { %337 = vmatpush3.bf16.msra.mxu1 %v359_v18 }
  0x22   :  { %319 = vmatmul.mubr.bf16.vlgmr.msra.gmra.mxu0 %v22_v10 }
  0xe2   :  { %v128_v20 = vpop.f32.mrf.mxu0 }
  0xe3   :  { %v129_v21 = vadd.f32 %v264_v19, %v128_v20 }
  0xe4   :  { %v320_v22 = vpop.f32.mrf.mxu0 }
  0xe5   :  { %v273_v23 = vmul.f32 -1.442695, %v129_v21 }
  0xe6   :  { %v131_v24 = vpop.f32.mrf.mxu0 }
  0xe7   :  { %360 = vpow2.f32 %v273_v23 }
  0xe8   :  { %v321_v25 = vpop.f32.mrf.mxu0 }
  0xf4   :  { %v361_v26 = vpop.eup %360 }
  0xf5   :  { %v137_v27 = vadd.f32 1.0, %v361_v26 }
  0xf7   :  { %362 = vrcp.f32 %v137_v27 }
 0x104   :  { %v363_v28 = vpop.eup %362 }
 0x105   :  { %v140_v29 = vmul.f32 %v363_v28, %v129_v21 }
 0x107   :  { %v141_v30 = vpack.c.bf16 %v140_v29, %v140_v29 }
 0x109   :  { %339 = vmatmul.mubr.bf16.vlgmr.msra.gmra.mxu1 %v141_v30 }
 0x1c9   :  { %v247_v32 = vpop.f32.mrf.mxu1 }
 0x1ca   :  { %v248_v33 = vadd.f32 %v274_v31, %v247_v32 }
 0x1cb   :  { %v340_v34 = vpop.f32.mrf.mxu1 }
 0x1cc   :  { %v283_v35 = vmul.f32 -1.442695, %v248_v33 }
 0x1cd   :  { %v250_v36 = vpop.f32.mrf.mxu1 }
 0x1ce   :  { %364 = vpow2.f32 %v283_v35 }
 0x1cf   :  { %v341_v37 = vpop.f32.mrf.mxu1 }
 0x1db   :  { %v365_v38 = vpop.eup %364 }
 0x1dc   :  { %v256_v39 = vadd.f32 1.0, %v365_v38 }
 0x1de   :  { %366 = vrcp.f32 %v256_v39 }
 0x1eb   :  { %v367_v40 = vpop.eup %366 }
 0x1ec   :  { %259 = vst [vmem:[%s465_s5] sm:$0x3] %v367_v40 }

// kernel: efficientnet_forward.16
= control target key start
LH: loop header
LB: loop body
LE: loop exit
PB: predicated region body
PF: predicated region fallthrough
CT: control target
= control target key end

     0   :  { %s847_s27 = smov 0   ;;  %s976_s0 = inlined_call_operand.vmem [shape: bf16[2,5,5,128], index: 0, kind: input, shape index: {}]   ;;  %s977_s1 = inlined_call_operand.vmem [shape: bf16[2,5,5,128], index: 1, kind: input, shape index: {}]   ;;  %s978_s2 = inlined_call_operand.vmem [shape: bf16[2,5,5,128], index: 2, kind: input, shape index: {}]   ;;  %s979_s3 = inlined_call_operand.vmem [shape: bf16[2,5,5,128], index: 3, kind: input, shape index: {}]   ;;  %s980_s4 = inlined_call_operand.vmem [shape: f32[9,128], index: 4, kind: input, shape index: {}]   ;;  %s981_s5 = inlined_call_operand.vmem [shape: f32[1,1,1,128], index: 5, kind: input, shape index: {}]   ;;  %s982_s6 = inlined_call_operand.vmem [shape: f32[1,1,1,128], index: 6, kind: input, shape index: {}]   ;;  %s983_s7 = inlined_call_operand.vmem [shape: bf16[2,4,4,128], index: 7, kind: output, shape index: {0}]   ;;  %s984_s8 = inlined_call_operand.vmem [shape: f32[2,1,1,128], index: 8, kind: output, shape index: {1}]  }
   0x1 LB: > { %s748_s28 = sadd.s32 4294967295, %s800_s27   ;;  %p752_p0 = scmp.ge.s32.totalorder %s800_s27, 1  ;;  %s800_s27 = sphi %s847_s27, %s19_s27  }
   0x2   : > { %p295_p1 = scmp.lt.s32.totalorder %s800_s27, 3 }
   0x4   : > { %p296_p2 = pnand %p752_p0, %p295_p1 }
   0x5   : > { %p347_p3 = scmp.lt.s32.totalorder (!%p296_p2), %s748_s28, 1 }
   0x6   : > { %299 = sbr.rel (%p296_p2) target bundleno = 111 (0x6f), region = 48 }
   0xb   : > { %v413_v0 = vlaneseq  ;;  %s986_s28 = smov (!%p347_p3, %s748_s28), 1  ;;  %v411_v2 = vld [vmem:[%s980_s4] sm:$0xff]  ;;  %v913_v42 = vld [vmem:[%s980_s4 + $0x8] ss:$0 sm:$0xff]  ;;  %vm615_vm0 = vcmask 1043456  }
   0xc   : > { %s769_s9 = smul.u32 20, %s986_s28  ;;  %s768_s30 = sshll.u32 %s986_s28, 3 }
   0xd   : > { %v414_v1 = vshrl.u32 %v413_v0, 7  ;;  %s371_s11 = scalar_lea.vmem %s983_s7, %s768_s30  ;;  %s374_s14 = scalar_lea.vmem %s984_s8, %s986_s28 }
   0xe   : > { %s864_s12 = scalar_lea.vmem %s976_s0, %s769_s9  ;;  %s869_s15 = scalar_lea.vmem %s977_s1, %s769_s9 }
   0xf   : > { %v415_v3 = vsub.s32 0, %v414_v1  ;;  %v427_v4 = vsub.s32 1, %v414_v1  ;;  %v439_v5 = vsub.s32 2, %v414_v1  ;;  %v463_v6 = vsub.s32 3, %v414_v1  ;;  %s880_s18 = scalar_lea.vmem %s978_s2, %s769_s9  ;;  %s885_s21 = scalar_lea.vmem %s979_s3, %s769_s9  ;;  %v375_v13 = vld [vmem:[%s864_s12] sm:$0x7] }
  0x10   : > { %v475_v7 = vsub.s32 4, %v414_v1  ;;  %v487_v8 = vsub.s32 5, %v414_v1  ;;  %v511_v12 = vsub.s32 6, %v414_v1  ;;  %v376_v14 = vld [vmem:[%s864_s12 + $0x4] sm:$0x7]  ;;  %v380_v17 = vunpack.c.l.bf16 %v375_v13 }
  0x11   : > { %v871_v9 = vrot.slane %v411_v2, %v415_v3  ;;  %v873_v10 = vrot.slane %v411_v2, %v427_v4  ;;  %v875_v11 = vrot.slane %v411_v2, %v439_v5  ;;  %v385_v15 = vld [vmem:[%s869_s15] sm:$0x7]  ;;  %v381_v18 = vunpack.c.l.bf16 %v376_v14  ;;  %v386_v19 = vld [vmem:[%s869_s15 + $0x4] sm:$0x7]  ;;  %v377_v32 = vld [vmem:[%s864_s12 + $0x8] sm:$0x7] }
  0x12   : > { %v890_v16 = vrot.slane %v411_v2, %v487_v8  ;;  %v390_v20 = vunpack.c.l.bf16 %v385_v15  ;;  %v395_v21 = vld [vmem:[%s880_s18] sm:$0x7]  ;;  %v895_v23 = vrot.slane %v411_v2, %v463_v6  ;;  %v391_v24 = vunpack.c.l.bf16 %v386_v19  ;;  %v387_v36 = vld [vmem:[%s869_s15 + $0x8] sm:$0x7]  ;;  %v396_v37 = vld [vmem:[%s880_s18 + $0x4] sm:$0x7] }
  0x13   : > { %v403_v22 = vld [vmem:[%s885_s21] sm:$0x7]  ;;  %v399_v25 = vunpack.c.l.bf16 %v395_v21  ;;  %v897_v26 = vrot.slane %v411_v2, %v475_v7  ;;  %v523_v27 = vsub.s32 7, %v414_v1  ;;  %v417_v29 = vmul.f32 %v871_v9, %v380_v17  ;;  %v404_v41 = vld [vmem:[%s885_s21 + $0x4] sm:$0x7] }
  0x14   : > { %v407_v28 = vunpack.c.l.bf16 %v403_v22  ;;  %v429_v30 = vmul.f32 %v873_v10, %v390_v20  ;;  %v441_v31 = vmul.f32 %v875_v11, %v380_v17  ;;  %v418_v33 = vmul.f32 %v871_v9, %v381_v18  ;;  %v378_v54 = vld [vmem:[%s864_s12 + $0xc] sm:$0x7]  ;;  %v397_v60 = vld [vmem:[%s880_s18 + $0x8] sm:$0x7] }
  0x15   : > { %v430_v34 = vmul.f32 %v873_v10, %v391_v24  ;;  %v489_v35 = vmul.f32 %v890_v16, %v399_v25  ;;  %v465_v40 = vmul.f32 %v895_v23, %v399_v25  ;;  %v915_v43 = vrot.slane %v411_v2, %v511_v12  ;;  %v923_v55 = vld [vmem:[%s869_s15 + $0xc] sm:$0x7]  ;;  %v405_v4 = vld [vmem:[%s885_s21 + $0x8] sm:$0x7] }
  0x16   : > { %v433_v38 = vadd.f32 %v429_v30, %v417_v29  ;;  %v449_v39 = vrot.slane %v441_v31, 1  ;;  %v917_v44 = vrot.slane %v411_v2, %v523_v27  ;;  %v382_v45 = vunpack.c.l.bf16 %v377_v32  ;;  %v398_v27 = vld [vmem:[%s880_s18 + $0xc] sm:$0x7] }
  0x17   : > { %v477_v47 = vmul.f32 %v897_v26, %v407_v28  ;;  %v392_v48 = vunpack.c.l.bf16 %v387_v36  ;;  %v400_v49 = vunpack.c.l.bf16 %v396_v37  ;;  %v434_v50 = vadd.f32 %v430_v34, %v418_v33  ;;  %v406_v32 = vld [vmem:[%s885_s21 + $0xc] sm:$0x7] }
  0x18   : > { %v457_v46 = vadd.f32 %v449_v39, %v433_v38  ;;  %v497_v51 = vrot.slane %v489_v35, 1  ;;  %v408_v52 = vunpack.c.l.bf16 %v404_v41  ;;  %v442_v53 = vmul.f32 %v875_v11, %v381_v18  ;;  %v760_v35 = vld [vmem:[%s981_s5] ss:$0 sm:$0xff] }
  0x19   : > { %v537_v57 = vmul.f32 %v913_v42, %v381_v18  ;;  %v419_v58 = vmul.f32 %v871_v9, %v382_v45  ;;  %v431_v59 = vmul.f32 %v873_v10, %v392_v48  ;;  %v466_v62 = vmul.f32 %v895_v23, %v400_v49 }
  0x1a   : > { %v469_v56 = vadd.f32 %v465_v40, %v457_v46  ;;  %v450_v61 = vrot.slane %v442_v53, 1  ;;  %v490_v63 = vmul.f32 %v890_v16, %v400_v49  ;;  %v513_v1 = vmul.f32 %v915_v43, %v381_v18 }
  0x1b   : > { %v383_v2 = vunpack.c.l.bf16 %v378_v54  ;;  %v393_v3 = vunpack.c.l.bf16 %v923_v55  ;;  %v525_v5 = vmul.f32 %v917_v44, %v391_v24  ;;  %v478_v7 = vmul.f32 %v897_v26, %v408_v52 }
  0x1c   : > { %v481_v0 = vadd.f32 %v477_v47, %v469_v56  ;;  %v458_v6 = vadd.f32 %v450_v61, %v434_v50  ;;  %v401_v8 = vunpack.c.l.bf16 %v397_v60  ;;  %v545_v13 = vrot.slane %v537_v57, 1  ;;  %v379_v50 = vld [vmem:[%s864_s12 + $0x10] sm:$0x7] }
  0x1d   : > { %v435_v14 = vadd.f32 %v431_v59, %v419_v58  ;;  %v514_v15 = vmul.f32 %v915_v43, %v382_v45  ;;  %v498_v19 = vrot.slane %v490_v63, 1  ;;  %v409_v18 = vunpack.c.l.bf16 %v405_v4  ;;  %v389_v58 = vld [vmem:[%s869_s15 + $0x10] sm:$0x7] }
  0x1e   : > { %v505_v12 = vadd.f32 %v497_v51, %v481_v0  ;;  %v470_v17 = vadd.f32 %v466_v62, %v458_v6  ;;  %v443_v20 = vmul.f32 %v875_v11, %v382_v45  ;;  %v538_v22 = vmul.f32 %v913_v42, %v382_v45  ;;  %v761_v45 = vld [vmem:[%s982_s6] ss:$0 sm:$0xff] }
  0x1f   : > { %v420_v24 = vmul.f32 %v871_v9, %v383_v2  ;;  %v432_v25 = vmul.f32 %v873_v10, %v393_v3  ;;  %v467_v30 = vmul.f32 %v895_v23, %v401_v8  ;;  %v491_v31 = vmul.f32 %v890_v16, %v401_v8 }
  0x20   : > { %v517_v21 = vadd.f32 %v513_v1, %v505_v12  ;;  %v482_v28 = vadd.f32 %v478_v7, %v470_v17  ;;  %v451_v29 = vrot.slane %v443_v20, 1  ;;  %v526_v34 = vmul.f32 %v917_v44, %v392_v48 }
  0x21   : > { %v479_v10 = vmul.f32 %v897_v26, %v409_v18  ;;  %v402_v37 = vunpack.c.l.bf16 %v398_v27  ;;  %v436_v39 = vadd.f32 %v432_v25, %v420_v24  ;;  %v410_v40 = vunpack.c.l.bf16 %v406_v32 }
  0x22   : > { %v529_v33 = vadd.f32 %v525_v5, %v517_v21  ;;  %v506_v36 = vadd.f32 %v498_v19, %v482_v28  ;;  %v459_v9 = vadd.f32 %v451_v29, %v435_v14  ;;  %v444_v41 = vmul.f32 %v875_v11, %v383_v2 }
  0x23   : > { %v546_v47 = vrot.slane %v538_v22, 1  ;;  %v499_v49 = vrot.slane %v491_v31, 1  ;;  %v468_v53 = vmul.f32 %v895_v23, %v402_v37  ;;  %v492_v54 = vmul.f32 %v890_v16, %v402_v37 }
  0x24   : > { %v553_v38 = vadd.f32 %v545_v13, %v529_v33  ;;  %v518_v46 = vadd.f32 %v514_v15, %v506_v36  ;;  %v471_v48 = vadd.f32 %v467_v30, %v459_v9  ;;  %v452_v52 = vrot.slane %v444_v41, 1 }
  0x25   : > { %v515_v57 = vmul.f32 %v915_v43, %v383_v2  ;;  %v539_v11 = vmul.f32 %v913_v42, %v383_v2  ;;  %v384_v60 = vunpack.c.l.bf16 %v379_v50  ;;  %v480_v62 = vmul.f32 %v897_v26, %v410_v40 }
  0x26   : > { %v564_v51 = vmul.f32 %v760_v35, %v553_v38  ;;  %v530_v55 = vadd.f32 %v526_v34, %v518_v46  ;;  %v483_v56 = vadd.f32 %v479_v10, %v471_v48  ;;  %v460_v61 = vadd.f32 %v452_v52, %v436_v39 }
  0x27   : > { %v527_v1 = vmul.f32 %v917_v44, %v393_v3  ;;  %v394_v23 = vunpack.c.l.bf16 %v389_v58  ;;  %v500_v16 = vrot.slane %v492_v54, 1  ;;  %v547_v8 = vrot.slane %v539_v11, 1 }
  0x28   : > { %v575_v59 = vadd.f32 %v761_v45, %v564_v51  ;;  %v554_v63 = vadd.f32 %v546_v47, %v530_v55  ;;  %v507_v0 = vadd.f32 %v499_v49, %v483_v56  ;;  %v472_v5 = vadd.f32 %v468_v53, %v460_v61 }
  0x29   : > { %v516_v2 = vmul.f32 %v915_v43, %v384_v60  ;;  %v540_v13 = vmul.f32 %v913_v42, %v384_v60  ;;  %v528_v17 = vmul.f32 %v917_v44, %v394_v23 }
  0x2a   : > { %v762_v4 = vmul.f32 -1.442695, %v575_v59  ;;  %v565_v6 = vmul.f32 %v760_v35, %v554_v63  ;;  %v519_v7 = vadd.f32 %v515_v57, %v507_v0  ;;  %v484_v12 = vadd.f32 %v480_v62, %v472_v5 }
  0x2b   : > { %v548_v20 = vrot.slane %v540_v13, 1 }
  0x2c   : > { %778 = vpow2.f32 %v762_v4  ;;  %v576_v14 = vadd.f32 %v761_v45, %v565_v6  ;;  %v531_v15 = vadd.f32 %v527_v1, %v519_v7  ;;  %v508_v26 = vadd.f32 %v500_v16, %v484_v12 }
  0x2e   : > { %v763_v19 = vmul.f32 -1.442695, %v576_v14  ;;  %v555_v3 = vadd.f32 %v547_v8, %v531_v15  ;;  %v520_v18 = vadd.f32 %v516_v2, %v508_v26 }
  0x30   : > { %780 = vpow2.f32 %v763_v19  ;;  %v566_v21 = vmul.f32 %v760_v35, %v555_v3  ;;  %v532_v22 = vadd.f32 %v528_v17, %v520_v18 }
  0x32   : > { %v577_v24 = vadd.f32 %v761_v45, %v566_v21  ;;  %v556_v25 = vadd.f32 %v548_v20, %v532_v22 }
  0x34   : > { %v764_v27 = vmul.f32 -1.442695, %v577_v24  ;;  %v567_v28 = vmul.f32 %v760_v35, %v556_v25 }
  0x36   : > { %782 = vpow2.f32 %v764_v27  ;;  %v578_v43 = vadd.f32 %v761_v45, %v567_v28 }
  0x38   : > { %v765_v30 = vmul.f32 -1.442695, %v578_v43 }
  0x39   : > { %v779_v42 = vpop.eup %778 }
  0x3a   : > { %v591_v29 = vadd.f32 1.0, %v779_v42 }
  0x3c   : > { %784 = vrcp.f32 %v591_v29 }
  0x3d   : > { %786 = vpow2.f32 %v765_v30  ;;  %v781_v44 = vpop.eup %780 }
  0x3e   : > { %v592_v31 = vadd.f32 1.0, %v781_v44 }
  0x40   : > { %788 = vrcp.f32 %v592_v31 }
  0x43   : > { %v783_v32 = vpop.eup %782 }
  0x44   : > { %v593_v33 = vadd.f32 1.0, %v783_v32 }
  0x46   : > { %790 = vrcp.f32 %v593_v33 }
  0x49   : > { %v785_v34 = vpop.eup %784 }
  0x4a   : > { %v787_v36 = vpop.eup %786  ;;  %v603_v9 = vmul.f32 %v785_v34, %v575_v59 }
  0x4b   : > { %v594_v35 = vadd.f32 1.0, %v787_v36 }
  0x4c   : > { %v607_v10 = vpack.c.bf16 %v603_v9, %v603_v9  ;;  %v616_v40 = vsel %vm615_vm0, %v603_v9, 0.0 }
  0x4d   : > { %792 = vrcp.f32 %v594_v35  ;;  %v789_v37 = vpop.eup %788 }
  0x4e   : > { %611 = vst [vmem:[%s371_s11] sm:$0x3] %v607_v10  ;;  %v604_v38 = vmul.f32 %v789_v37, %v576_v14 }
  0x50   : > { %v608_v39 = vpack.c.bf16 %v604_v38, %v604_v38  ;;  %v617_v41 = vsel %vm615_vm0, %v604_v38, 0.0 }
  0x51   : > { %v618_v47 = vadd.f32 %v617_v41, %v616_v40 }
  0x52   : > { %612 = vst [vmem:[%s371_s11 + $0x2] sm:$0x3] %v608_v39 }
  0x53   : > { %v791_v45 = vpop.eup %790 }
  0x54   : > { %v605_v46 = vmul.f32 %v791_v45, %v577_v24 }
  0x56   : > { %v609_v48 = vpack.c.bf16 %v605_v46, %v605_v46  ;;  %v619_v49 = vsel %vm615_vm0, %v605_v46, 0.0 }
  0x57   : > { %v620_v51 = vadd.f32 %v619_v49, %v618_v47 }
  0x58   : > { %613 = vst [vmem:[%s371_s11 + $0x4] sm:$0x3] %v609_v48 }
  0x5a   : > { %v793_v50 = vpop.eup %792 }
  0x5b   : > { %v606_v52 = vmul.f32 %v793_v50, %v578_v43 }
  0x5d   : > { %v610_v53 = vpack.c.bf16 %v606_v52, %v606_v52  ;;  %v621_v54 = vsel %vm615_vm0, %v606_v52, 0.0 }
  0x5e   : > { %v622_v55 = vadd.f32 %v621_v54, %v620_v51 }
  0x5f   : > { %614 = vst [vmem:[%s371_s11 + $0x6] sm:$0x3] %v610_v53 }
  0x60   : > { %v623_v56 = vrot.slane %v622_v55, 4 }
  0x62   : > { %v624_v57 = vadd.f32 %v623_v56, %v622_v55 }
  0x64   : > { %v625_v11 = vrot.slane %v624_v57, 2 }
  0x66   : > { %v626_v58 = vadd.f32 %v625_v11, %v624_v57 }
  0x68   : > { %v627_v59 = vrot.slane %v626_v58, 1 }
  0x6a   : > { %v628_v60 = vadd.f32 %v627_v59, %v626_v58 }
  0x6c   : > { %v630_v61 = vmul.f32 0.0625, %v628_v60 }
  0x6e   : > { %631 = vst [vmem:[%s374_s14] sm:$0x1] %v630_v61 }
  0x6f PF: > { %s19_s27 = sadd.s32 1, %s800_s27  }
  0x70   : > { %p16_p4 = scmp.ge.s32.totalorder %s19_s27, 4  }
  0x72   :  { %18 = sbr.rel (!%p16_p4) target bundleno = 1 (0x1), region = 99 }

// kernel: efficientnet_forward.14
= control target key start
LH: loop header
LB: loop body
LE: loop exit
PB: predicated region body
PF: predicated region fallthrough
CT: control target
= control target key end

     0   :  { %s1057_s21 = smov 0   ;;  %s1059_s22 = smov 0   ;;  %s1161_s0 = inlined_call_operand.vmem [shape: bf16[2,64,128], index: 0, kind: input, shape index: {}]   ;;  %s1162_s1 = inlined_call_operand.vmem [shape: f32[2,1,128], index: 1, kind: input, shape index: {}]   ;;  %s1163_s2 = inlined_call_operand.vmem [shape: bf16[128,128], index: 2, kind: input, shape index: {}]   ;;  %s1164_s3 = inlined_call_operand.vmem [shape: f32[1,128], index: 3, kind: input, shape index: {}]   ;;  %s1165_s4 = inlined_call_operand.vmem [shape: f32[1,128], index: 4, kind: input, shape index: {}]   ;;  %s1166_s5 = inlined_call_operand.vmem [shape: bf16[2,64,128], index: 5, kind: input, shape index: {}]   ;;  %s1167_s6 = inlined_call_operand.vmem [shape: bf16[2,64,128], index: 6, kind: output, shape index: {}]  }
   0x1   :  { %s1061_s23 = smov 0  }
   0x2 LB: > { %s28_s24 = sadd.s32 1, %s1016_s22  ;;  %p774_p0 = scmp.ge.s32.totalorder %s1020_s23, 1  ;;  %s1020_s23 = sphi %s1061_s23, %s16_s23   ;;  %s1016_s22 = sphi %s1059_s22, %s1169_s22   ;;  %s1012_s21 = sphi %s1057_s21, %s1168_s21  }
   0x3   : > { %p30_p1 = scmp.ge.s32.totalorder %s28_s24, 2  ;;  %p258_p2 = scmp.lt.s32.totalorder %s1020_s23, 3 }
   0x5   : > { %s1171_s24 = smov (%p30_p1, %s28_s24), 0  ;;  %p259_p3 = pnand %p774_p0, %p258_p2 }
   0x6   : > { %p309_p4 = scmp.lt.s32.totalorder (!%p259_p3), %s1012_s21, 1 }
   0x7   : > { %262 = sbr.rel (%p259_p3) target bundleno = 289 (0x121), region = 44 }
   0xc   : > { %v958_v0 = vld [vmem:[%s1163_s2 + $0x38] sm:$0xff]   ;;  %v959_v1 = vld [vmem:[%s1163_s2 + $0x30] sm:$0xff]   ;;  %s1173_s21 = smov (!%p309_p4, %s1012_s21), 1  ;;  %v960_v2 = vld [vmem:[%s1163_s2 + $0x28] sm:$0xff]  }
   0xd   : > { %894 = vmatprep.subr.bf16.mxu0 %v958_v0  ;;  %918 = vmatprep.subr.bf16.mxu1 %v958_v0  ;;  %s1084_s7 = sshll.u32 %s1173_s21, 5  ;;  %s320_s13 = scalar_lea.vmem %s1162_s1, %s1173_s21  ;;  %v961_v3 = vld [vmem:[%s1163_s2 + $0x20] sm:$0xff]   ;;  %v962_v14 = vld [vmem:[%s1163_s2 + $0x18] sm:$0xff]   ;;  %v963_v18 = vld [vmem:[%s1163_s2 + $0x10] sm:$0xff]  }
   0xe   : > { %895 = vmatpush3.bf16.msra.mxu0 %v958_v0  ;;  %926 = vmatpush3.bf16.msra.mxu1 %v958_v0  ;;  %s1090_s10 = scalar_lea.vmem %s1161_s0, %s1084_s7  ;;  %v781_v5 = vld [vmem:[%s320_s13] ss:$0 sm:$0xff]  ;;  %v964_v21 = vld [vmem:[%s1163_s2 + $0x8] sm:$0xff]   ;;  %s339_s13 = scalar_lea.vmem %s1167_s6, %s1084_s7 }
   0xf   : > { %896 = vmatprep.subr.bf16.mxu0 %v959_v1  ;;  %919 = vmatprep.subr.bf16.mxu1 %v959_v1  ;;  %v822_v4 = vld [vmem:[%s1090_s10] sm:$0xff]   ;;  %v874_v6 = vld [vmem:[%s1090_s10 + $0x10] sm:$0xff]   ;;  %v873_v19 = vld [vmem:[%s1090_s10 + $0x8] sm:$0xff]  }
  0x10   : > { %v823_v7 = vunpack.c.l.bf16 %v822_v4  ;;  %v824_v8 = vunpack.c.h.bf16 %v822_v4  ;;  %v831_v9 = vunpack.c.l.bf16 %v874_v6  ;;  %v832_v10 = vunpack.c.h.bf16 %v874_v6  ;;  %v875_v20 = vld [vmem:[%s1090_s10 + $0x18] sm:$0xff]   ;;  %v965_v26 = vld [vmem:[%s1163_s2] sm:$0xff]   ;;  %s329_s10 = scalar_lea.vmem %s1166_s5, %s1084_s7 }
  0x11   : > { %v827_v22 = vunpack.c.l.bf16 %v873_v19  ;;  %v828_v23 = vunpack.c.h.bf16 %v873_v19  ;;  %v835_v24 = vunpack.c.l.bf16 %v875_v20  ;;  %v836_v25 = vunpack.c.h.bf16 %v875_v20  ;;  %v790_v33 = vld [vmem:[%s1164_s3] ss:$0 sm:$0xff]  ;;  %v876_v20 = vld [vmem:[%s329_s10 + $0x8] sm:$0xff]  }
  0x12   : > { %897 = vmatpush3.bf16.msra.mxu0 %v959_v1  ;;  %927 = vmatpush3.bf16.msra.mxu1 %v959_v1  ;;  %v365_v11 = vmul.f32 %v823_v7, %v781_v5  ;;  %v366_v12 = vmul.f32 %v824_v8, %v781_v5  ;;  %v369_v13 = vmul.f32 %v831_v9, %v781_v5  ;;  %v791_v35 = vld [vmem:[%s1165_s4] ss:$0 sm:$0xff] }
  0x13   : > { %898 = vmatprep.subr.bf16.mxu0 %v960_v2  ;;  %920 = vmatprep.subr.bf16.mxu1 %v960_v2  ;;  %v370_v15 = vmul.f32 %v832_v10, %v781_v5  ;;  %v367_v27 = vmul.f32 %v827_v22, %v781_v5  ;;  %v368_v28 = vmul.f32 %v828_v23, %v781_v5  ;;  %v878_v22 = vld [vmem:[%s329_s10 + $0x18] sm:$0xff]  }
  0x14   : > { %v373_v16 = vpack.c.bf16 %v366_v12, %v365_v11  ;;  %v371_v29 = vmul.f32 %v835_v24, %v781_v5  ;;  %v372_v30 = vmul.f32 %v836_v25, %v781_v5  ;;  %v838_v24 = vld [vmem:[%s329_s10] sm:$0xff]  }
  0x15   : > { %v375_v17 = vpack.c.bf16 %v370_v15, %v369_v13  ;;  %v374_v31 = vpack.c.bf16 %v368_v28, %v367_v27  ;;  %v843_v27 = vunpack.c.l.bf16 %v876_v20  ;;  %v877_v28 = vld [vmem:[%s329_s10 + $0x10] sm:$0xff]  }
  0x16   : > { %899 = vmatpush3.bf16.msra.mxu0 %v960_v2  ;;  %928 = vmatpush3.bf16.msra.mxu1 %v960_v2  ;;  %v376_v32 = vpack.c.bf16 %v372_v30, %v371_v29  ;;  %v844_v29 = vunpack.c.h.bf16 %v876_v20 }
  0x17   : > { %900 = vmatprep.subr.bf16.mxu0 %v961_v3  ;;  %921 = vmatprep.subr.bf16.mxu1 %v961_v3 }
  0x18   : > { %910 = vmatprep.mubr.bf16.mxu0 %v373_v16  ;;  %914 = vmatprep.mubr.bf16.mxu1 %v375_v17 }
  0x1a   : > { %901 = vmatpush3.bf16.msra.mxu0 %v961_v3  ;;  %929 = vmatpush3.bf16.msra.mxu1 %v961_v3 }
  0x1b   : > { %902 = vmatprep.subr.bf16.mxu0 %v962_v14  ;;  %922 = vmatprep.subr.bf16.mxu1 %v962_v14 }
  0x1e   : > { %903 = vmatpush3.bf16.msra.mxu0 %v962_v14  ;;  %930 = vmatpush3.bf16.msra.mxu1 %v962_v14 }
  0x1f   : > { %904 = vmatprep.subr.bf16.mxu0 %v963_v18  ;;  %923 = vmatprep.subr.bf16.mxu1 %v963_v18 }
  0x22   : > { %905 = vmatpush3.bf16.msra.mxu0 %v963_v18  ;;  %931 = vmatpush3.bf16.msra.mxu1 %v963_v18 }
  0x23   : > { %906 = vmatprep.subr.bf16.mxu0 %v964_v21  ;;  %924 = vmatprep.subr.bf16.mxu1 %v964_v21 }
  0x26   : > { %907 = vmatpush3.bf16.msra.mxu0 %v964_v21  ;;  %932 = vmatpush3.bf16.msra.mxu1 %v964_v21 }
  0x27   : > { %908 = vmatprep.subr.bf16.mxu0 %v965_v26  ;;  %925 = vmatprep.subr.bf16.mxu1 %v965_v26 }
  0x2a   : > { %909 = vmatpush3.bf16.msra.mxu0 %v965_v26  ;;  %933 = vmatpush3.bf16.msra.mxu1 %v965_v26 }
  0x2d   : > { %911 = vmatmul.mubr.bf16.vlgmr.msra.gmra.mxu0 %v374_v31  ;;  %915 = vmatmul.mubr.bf16.vlgmr.msra.gmra.mxu1 %v376_v32  ;;  %v851_v32 = vunpack.c.l.bf16 %v878_v22 }
  0xed   : > { %v912_v34 = vpop.f32.mrf.mxu0  ;;  %v916_v36 = vpop.f32.mrf.mxu1 }
  0xee   : > { %v515_v37 = vmul.f32 %v912_v34, %v790_v33  ;;  %v519_v38 = vmul.f32 %v916_v36, %v790_v33  ;;  %v839_v36 = vunpack.c.l.bf16 %v838_v24 }
  0xef   : > { %v475_v39 = vpop.f32.mrf.mxu0  ;;  %v491_v40 = vpop.f32.mrf.mxu1 }
  0xf0   : > { %v1120_v41 = vadd.f32 %v791_v35, %v515_v37  ;;  %v1122_v42 = vadd.f32 %v791_v35, %v519_v38  ;;  %v513_v43 = vmul.f32 %v790_v33, %v475_v39  ;;  %v517_v44 = vmul.f32 %v790_v33, %v491_v40 }
  0xf1   : > { %v913_v45 = vpop.f32.mrf.mxu0  ;;  %v917_v46 = vpop.f32.mrf.mxu1  ;;  %v840_v38 = vunpack.c.h.bf16 %v838_v24 }
  0xf2   : > { %v794_v47 = vmul.f32 -1.442695, %v1120_v41  ;;  %v798_v48 = vmul.f32 -1.442695, %v1122_v42  ;;  %v1126_v49 = vadd.f32 %v791_v35, %v513_v43  ;;  %v1128_v50 = vadd.f32 %v791_v35, %v517_v44 }
  0xf3   : > { %v516_v51 = vmul.f32 %v913_v45, %v790_v33  ;;  %v520_v52 = vmul.f32 %v917_v46, %v790_v33  ;;  %v478_v53 = vpop.f32.mrf.mxu0  ;;  %v494_v54 = vpop.f32.mrf.mxu1  ;;  %v847_v43 = vunpack.c.l.bf16 %v877_v28  ;;  %v848_v44 = vunpack.c.h.bf16 %v877_v28 }
  0xf4   : > { %966 = vpow2.f32 %v794_v47  ;;  %v792_v55 = vmul.f32 -1.442695, %v1126_v49  ;;  %v796_v56 = vmul.f32 -1.442695, %v1128_v50  ;;  %v514_v57 = vmul.f32 %v790_v33, %v478_v53 }
  0xf5   : > { %968 = vpow2.f32 %v798_v48  ;;  %v531_v58 = vadd.f32 %v791_v35, %v516_v51  ;;  %v535_v59 = vadd.f32 %v791_v35, %v520_v52  ;;  %v518_v60 = vmul.f32 %v790_v33, %v494_v54 }
  0xf6   : > { %970 = vpow2.f32 %v792_v55  ;;  %v1132_v61 = vadd.f32 %v791_v35, %v514_v57  ;;  %v852_v33 = vunpack.c.h.bf16 %v878_v22 }
  0xf7   : > { %972 = vpow2.f32 %v796_v56  ;;  %v795_v62 = vmul.f32 -1.442695, %v531_v58  ;;  %v799_v63 = vmul.f32 -1.442695, %v535_v59  ;;  %v1134_v0 = vadd.f32 %v791_v35, %v518_v60 }
  0xf8   : > { %v793_v1 = vmul.f32 -1.442695, %v1132_v61 }
  0xf9   : > { %974 = vpow2.f32 %v795_v62  ;;  %v797_v2 = vmul.f32 -1.442695, %v1134_v0 }
  0xfa   : > { %976 = vpow2.f32 %v799_v63 }
  0xfb   : > { %978 = vpow2.f32 %v793_v1 }
  0xfc   : > { %980 = vpow2.f32 %v797_v2 }
 0x101   : > { %v967_v3 = vpop.eup %966 }
 0x102   : > { %v969_v4 = vpop.eup %968  ;;  %v562_v5 = vadd.f32 1.0, %v967_v3 }
 0x103   : > { %v971_v6 = vpop.eup %970  ;;  %v566_v7 = vadd.f32 1.0, %v969_v4 }
 0x104   : > { %v973_v8 = vpop.eup %972  ;;  %v560_v9 = vadd.f32 1.0, %v971_v6  ;;  %982 = vrcp.f32 %v562_v5 }
 0x105   : > { %v564_v10 = vadd.f32 1.0, %v973_v8  ;;  %984 = vrcp.f32 %v566_v7 }
 0x106   : > { %v975_v11 = vpop.eup %974  ;;  %986 = vrcp.f32 %v560_v9 }
 0x107   : > { %v977_v12 = vpop.eup %976  ;;  %v563_v13 = vadd.f32 1.0, %v975_v11  ;;  %988 = vrcp.f32 %v564_v10 }
 0x108   : > { %v979_v14 = vpop.eup %978  ;;  %v567_v15 = vadd.f32 1.0, %v977_v12 }
 0x109   : > { %v981_v16 = vpop.eup %980  ;;  %990 = vrcp.f32 %v563_v13  ;;  %v561_v17 = vadd.f32 1.0, %v979_v14 }
 0x10a   : > { %992 = vrcp.f32 %v567_v15  ;;  %v565_v18 = vadd.f32 1.0, %v981_v16 }
 0x10b   : > { %994 = vrcp.f32 %v561_v17 }
 0x10c   : > { %996 = vrcp.f32 %v565_v18 }
 0x111   : > { %v983_v19 = vpop.eup %982 }
 0x112   : > { %v985_v21 = vpop.eup %984  ;;  %v586_v26 = vmul.f32 %v983_v19, %v1120_v41 }
 0x113   : > { %v987_v23 = vpop.eup %986  ;;  %v590_v31 = vmul.f32 %v985_v21, %v1122_v42 }
 0x114   : > { %v989_v25 = vpop.eup %988  ;;  %v584_v35 = vmul.f32 %v987_v23, %v1126_v49  ;;  %v610_v46 = vadd.f32 %v843_v27, %v586_v26 }
 0x115   : > { %v588_v40 = vmul.f32 %v989_v25, %v1128_v50  ;;  %v614_v48 = vadd.f32 %v851_v32, %v590_v31 }
 0x116   : > { %v991_v30 = vpop.eup %990  ;;  %v608_v52 = vadd.f32 %v839_v36, %v584_v35 }
 0x117   : > { %v993_v34 = vpop.eup %992  ;;  %v587_v37 = vmul.f32 %v991_v30, %v531_v58  ;;  %v612_v50 = vadd.f32 %v847_v43, %v588_v40 }
 0x118   : > { %v995_v39 = vpop.eup %994  ;;  %v591_v41 = vmul.f32 %v993_v34, %v535_v59 }
 0x119   : > { %v997_v45 = vpop.eup %996  ;;  %v611_v47 = vadd.f32 %v844_v29, %v587_v37  ;;  %v585_v42 = vmul.f32 %v995_v39, %v1132_v61 }
 0x11a   : > { %v615_v49 = vadd.f32 %v852_v33, %v591_v41  ;;  %v589_v51 = vmul.f32 %v997_v45, %v1134_v0 }
 0x11b   : > { %v861_v53 = vpack.c.bf16 %v611_v47, %v610_v46  ;;  %v609_v54 = vadd.f32 %v840_v38, %v585_v42 }
 0x11c   : > { %v871_v55 = vpack.c.bf16 %v615_v49, %v614_v48  ;;  %v613_v56 = vadd.f32 %v848_v44, %v589_v51 }
 0x11d   : > { %879 = vst [vmem:[%s339_s13 + $0x8] sm:$0xff] %v861_v53   ;;  %v856_v57 = vpack.c.bf16 %v609_v54, %v608_v52 }
 0x11e   : > { %881 = vst [vmem:[%s339_s13 + $0x18] sm:$0xff] %v871_v55   ;;  %v866_v58 = vpack.c.bf16 %v613_v56, %v612_v50 }
 0x11f   : > { %857 = vst [vmem:[%s339_s13] sm:$0xff] %v856_v57  }
 0x120   : > { %880 = vst [vmem:[%s339_s13 + $0x10] sm:$0xff] %v866_v58  }
 0x121 PF: > { %s16_s23 = sadd.s32 1, %s1020_s23   ;;  %s1168_s21 = smov %s1016_s22 }
 0x122   : > { %p13_p5 = scmp.ge.s32.totalorder %s16_s23, 4   ;;  %s1169_s22 = smov %s1171_s24 }
 0x124   :  { %15 = sbr.rel (!%p13_p5) target bundleno = 2 (0x2), region = 80 }

// kernel: efficientnet_forward.18
= control target key start
LH: loop header
LB: loop body
LE: loop exit
PB: predicated region body
PF: predicated region fallthrough
CT: control target
= control target key end

     0   :  { %s702_s18 = smov 0   ;;  %s704_s19 = smov 0   ;;  %s776_s0 = inlined_call_operand.vmem [shape: bf16[2,16,128], index: 0, kind: input, shape index: {}]   ;;  %s777_s1 = inlined_call_operand.vmem [shape: f32[2,1,128], index: 1, kind: input, shape index: {}]   ;;  %s778_s2 = inlined_call_operand.vmem [shape: bf16[128,128], index: 2, kind: input, shape index: {}]   ;;  %s779_s3 = inlined_call_operand.vmem [shape: f32[1,128], index: 3, kind: input, shape index: {}]   ;;  %s780_s4 = inlined_call_operand.vmem [shape: f32[1,128], index: 4, kind: input, shape index: {}]   ;;  %s781_s5 = inlined_call_operand.vmem [shape: bf16[2,16,128], index: 5, kind: output, shape index: {}]  }
   0x1   :  { %s706_s20 = smov 0  }
   0x2 LB: > { %s27_s21 = sadd.s32 1, %s664_s19  ;;  %p540_p0 = scmp.ge.s32.totalorder %s668_s20, 1  ;;  %s668_s20 = sphi %s706_s20, %s15_s20   ;;  %s664_s19 = sphi %s704_s19, %s783_s19   ;;  %s660_s18 = sphi %s702_s18, %s782_s18  }
   0x3   : > { %p29_p1 = scmp.ge.s32.totalorder %s27_s21, 2  ;;  %p216_p2 = scmp.lt.s32.totalorder %s668_s20, 3 }
   0x5   : > { %s785_s21 = smov (%p29_p1, %s27_s21), 0  ;;  %p217_p3 = pnand %p540_p0, %p216_p2 }
   0x6   : > { %p256_p4 = scmp.lt.s32.totalorder (!%p217_p3), %s660_s18, 1 }
   0x7   : > { %220 = sbr.rel (%p217_p3) target bundleno = 283 (0x11b), region = 40 }
   0xc   : > { %v630_v0 = vld [vmem:[%s778_s2 + $0x38] sm:$0xff]   ;;  %v670_v1 = vmov 0.0   ;;  %v631_v2 = vld [vmem:[%s778_s2 + $0x30] sm:$0xff]   ;;  %vm671_vm0 = vmmov 0   ;;  %v632_v3 = vld [vmem:[%s778_s2 + $0x28] sm:$0xff]   ;;  %s787_s18 = smov (!%p256_p4, %s660_s18), 1 }
   0xd   : > { %584 = vmatprep.subr.bf16.mxu0 %v670_v1  ;;  %600 = vmatprep.mubr.msk.bf16.mxu0 %vm671_vm0, %v670_v1  ;;  %v633_v4 = vld [vmem:[%s778_s2 + $0x20] sm:$0xff]   ;;  %s562_s30 = sshll.u32 %s787_s18, 3  ;;  %v634_v5 = vld [vmem:[%s778_s2 + $0x18] sm:$0xff]   ;;  %v635_v6 = vld [vmem:[%s778_s2 + $0x10] sm:$0xff]   ;;  %s267_s15 = scalar_lea.vmem %s777_s1, %s787_s18 }
   0xe   : > { %585 = vmatpush3.bf16.msra.mxu0 %v630_v0  ;;  %s263_s10 = scalar_lea.vmem %s776_s0, %s562_s30  ;;  %v636_v10 = vld [vmem:[%s778_s2 + $0x8] sm:$0xff]   ;;  %v545_v11 = vld [vmem:[%s267_s15] ss:$0 sm:$0xff]  ;;  %s276_s6 = scalar_lea.vmem %s781_s5, %s562_s30 }
   0xf   : > { %586 = vmatprep.subr.bf16.mxu0 %v670_v1  ;;  %v567_v7 = vld [vmem:[%s263_s10] sm:$0xff]  }
  0x10   : > { %v568_v8 = vunpack.c.l.bf16 %v567_v7  ;;  %v569_v9 = vunpack.c.h.bf16 %v567_v7  ;;  %v637_v14 = vld [vmem:[%s778_s2] sm:$0xff]  }
  0x11   : > { %v554_v16 = vld [vmem:[%s779_s3] ss:$0 sm:$0xff] }
  0x12   : > { %587 = vmatpush3.bf16.msra.mxu0 %v631_v2  ;;  %v290_v12 = vmul.f32 %v568_v8, %v545_v11  ;;  %v291_v13 = vmul.f32 %v569_v9, %v545_v11  ;;  %v555_v18 = vld [vmem:[%s780_s4] ss:$0 sm:$0xff] }
  0x13   : > { %588 = vmatprep.subr.bf16.mxu0 %v670_v1 }
  0x14   : > { %v292_v15 = vpack.c.bf16 %v291_v13, %v290_v12 }
  0x16   : > { %589 = vmatpush3.bf16.msra.mxu0 %v632_v3 }
  0x17   : > { %590 = vmatprep.subr.bf16.mxu0 %v670_v1 }
  0x1a   : > { %591 = vmatpush3.bf16.msra.mxu0 %v633_v4 }
  0x1b   : > { %592 = vmatprep.subr.bf16.mxu0 %v670_v1 }
  0x1e   : > { %593 = vmatpush3.bf16.msra.mxu0 %v634_v5 }
  0x1f   : > { %594 = vmatprep.subr.bf16.mxu0 %v670_v1 }
  0x22   : > { %595 = vmatpush3.bf16.msra.mxu0 %v635_v6 }
  0x23   : > { %596 = vmatprep.subr.bf16.mxu0 %v670_v1 }
  0x26   : > { %597 = vmatpush3.bf16.msra.mxu0 %v636_v10 }
  0x27   : > { %598 = vmatprep.subr.bf16.mxu0 %v670_v1 }
  0x2a   : > { %599 = vmatpush3.bf16.msra.mxu0 %v637_v14 }
  0x2d   : > { %601 = vmatmul.mubr.bf16.vlgmr.msra.gmra.mxu0 %v292_v15 }
  0xed   : > { %v391_v17 = vpop.f32.mrf.mxu0 }
  0xee   : > { %v405_v19 = vmul.f32 %v554_v16, %v391_v17 }
  0xef   : > { %v602_v20 = vpop.f32.mrf.mxu0 }
  0xf0   : > { %v414_v21 = vadd.f32 %v555_v18, %v405_v19 }
  0xf1   : > { %v394_v22 = vpop.f32.mrf.mxu0 }
  0xf2   : > { %v556_v23 = vmul.f32 -1.442695, %v414_v21  ;;  %v406_v24 = vmul.f32 %v554_v16, %v394_v22 }
  0xf3   : > { %v603_v25 = vpop.f32.mrf.mxu0 }
  0xf4   : > { %638 = vpow2.f32 %v556_v23  ;;  %v415_v26 = vadd.f32 %v555_v18, %v406_v24 }
  0xf6   : > { %v557_v27 = vmul.f32 -1.442695, %v415_v26 }
  0xf8   : > { %640 = vpow2.f32 %v557_v27 }
 0x101   : > { %v639_v28 = vpop.eup %638 }
 0x102   : > { %v422_v29 = vadd.f32 1.0, %v639_v28 }
 0x104   : > { %642 = vrcp.f32 %v422_v29 }
 0x105   : > { %v641_v30 = vpop.eup %640 }
 0x106   : > { %v423_v31 = vadd.f32 1.0, %v641_v30 }
 0x108   : > { %644 = vrcp.f32 %v423_v31 }
 0x111   : > { %v643_v32 = vpop.eup %642 }
 0x112   : > { %v428_v34 = vmul.f32 %v643_v32, %v414_v21 }
 0x115   : > { %v645_v33 = vpop.eup %644 }
 0x116   : > { %v429_v35 = vmul.f32 %v645_v33, %v415_v26 }
 0x118   : > { %v573_v36 = vpack.c.bf16 %v429_v35, %v428_v34 }
 0x11a   : > { %574 = vst [vmem:[%s276_s6] sm:$0xff] %v573_v36  }
 0x11b PF: > { %s15_s20 = sadd.s32 1, %s668_s20   ;;  %s782_s18 = smov %s664_s19 }
 0x11c   : > { %p12_p5 = scmp.ge.s32.totalorder %s15_s20, 4   ;;  %s783_s19 = smov %s785_s21 }
 0x11e   :  { %14 = sbr.rel (!%p12_p5) target bundleno = 2 (0x2), region = 73 }

// kernel: efficientnet_forward.19
= control target key start
LH: loop header
LB: loop body
LE: loop exit
PB: predicated region body
PF: predicated region fallthrough
CT: control target
= control target key end

     0   :  { %11 = vsyncpa [#allocation3], 0  ;;  %s990_s0 = inlined_call_operand.vmem [shape: bf16[2,16,128], index: 0, kind: input, shape index: {}]   ;;  %s991_s1 = inlined_call_operand.vmem [shape: bf16[128,128], index: 1, kind: input, shape index: {}]   ;;  %s992_s2 = inlined_call_operand.vmem [shape: f32[1,128], index: 2, kind: input, shape index: {}]   ;;  %s993_s3 = inlined_call_operand.vmem [shape: f32[1,128], index: 3, kind: input, shape index: {}]   ;;  %s994_s4 = inlined_call_operand.vmem [shape: bf16[128,128], index: 4, kind: input, shape index: {}]   ;;  %s995_s5 = inlined_call_operand.vmem [shape: f32[1,128], index: 5, kind: input, shape index: {}]   ;;  %s996_s6 = inlined_call_operand.hbm [shape: f32[2,1,128], index: 6, kind: output, shape index: {}]  }
   0x1   :  { %13 = vsyncpa [#allocation3 + $0x1], 0  ;;  %s834_s21 = smov 0   ;;  %s836_s22 = smov 0  }
   0x2   :  { %s838_s23 = smov 0   ;;  %s840_s24 = smov 0  }
   0x3 LB: > { %s855_s25 = sadd.s32 4294967295, %s794_s24   ;;  %s579_s26 = sadd.s32 4294967294, %s794_s24   ;;  %s794_s24 = sphi %s840_s24, %s1002_s24   ;;  %s790_s23 = sphi %s838_s23, %s1001_s23   ;;  %s786_s22 = sphi %s836_s22, %s1000_s22   ;;  %s782_s21 = sphi %s834_s21, %s999_s21  }
   0x4   : > { %s859_s27 = sadd.s32 1, %s794_s24   ;;  %s157_s28 = sadd.s32 1, %s790_s23 }
   0x5   : > { %s154_s29 = ssub.s32 %s794_s24, %s859_s27  ;;  %p167_p0 = scmp.ne.s32.totalorder %s790_s23, %s786_s22 }
   0x6   : > { %p155_p1 = scmp.eq.s32.totalorder %s154_s29, 0  ;;  %p168_p2 = scmp.eq.s32.totalorder %s855_s25, 1 }
   0x7   : > { %p173_p3 = scmp.ne.s32.totalorder %s786_s22, %s782_s21  ;;  %p174_p4 = scmp.eq.s32.totalorder %s579_s26, 1 }
   0x8   : > { %s870_s30 = scalar_select %p155_p1, %s790_s23, %s157_s28  }
   0x9   : > { %p872_p5 = por %p168_p2, %p167_p0  ;;  %p876_p6 = por %p174_p4, %p173_p3 }
   0xa   : > { %p582_p7 = scmp.ge.s32.totalorder %s794_s24, 1  ;;  %p215_p8 = scmp.lt.s32.totalorder %s794_s24, 3 }
   0xc   : > { %p216_p9 = pnand %p582_p7, %p215_p8 }
   0xd   : > { %p244_p10 = scmp.lt.s32.totalorder (!%p216_p9), %s855_s25, 1  ;;  %s242_s26 = sand.u32 (!%p216_p9), 1, %s786_s22  }
   0xe   : > { %219 = sbr.rel (%p216_p9) target bundleno = 514 (0x202), region = 44  ;;  %s606_s29 = sshll.u32 (!%p216_p9), %s855_s25, 4 }
   0xf   : > { %s243_s9 = scalar_lea.vmem (!%p216_p9), [#allocation2], %s242_s26  ;;  %s512_s14 = scalar_lea.sflag (!%p216_p9), [#allocation3], %s242_s26 }
  0x10   : > { %s524_s10 = sshll.u32 (!%p216_p9), %s243_s9, 4  ;;  %s951_s10 = int_to_ptr.vmem [resolvable:$true] %s524_s10 }
  0x11   : > { %s734_s15 = scalar_lea.vmem (!%p216_p9), %s951_s10, 16 }
  0x12   : > { %p735_p11 = scmp.ne.s32.totalorder (!%p216_p9), %s951_s10, %s734_s15 }
  0x13   : > { %v709_v0 = vld [vmem:[%s991_s1 + $0x38] sm:$0xff]   ;;  %v796_v1 = vmov 0.0   ;;  %v710_v2 = vld [vmem:[%s991_s1 + $0x30] sm:$0xff]   ;;  %vm797_vm0 = vmmov 0   ;;  %s245_s13 = scalar_select %p244_p10, %s855_s25, 1  ;;  %v711_v3 = vld [vmem:[%s991_s1 + $0x28] sm:$0xff]  }
  0x14   : > { %628 = vmatprep.subr.bf16.mxu0 %v796_v1  ;;  %648 = vmatprep.subr.bf16.mxu1 %v796_v1  ;;  %v712_v4 = vld [vmem:[%s991_s1 + $0x20] sm:$0xff]   ;;  %v713_v5 = vld [vmem:[%s991_s1 + $0x18] sm:$0xff]   ;;  %v714_v6 = vld [vmem:[%s991_s1 + $0x10] sm:$0xff]   ;;  %p736_p12 = pnand %p735_p11, %p872_p5  ;;  %s798_s25 = smov [#allocation2]  }
  0x15   : > { %629 = vmatpush3.bf16.msra.mxu0 %v709_v0  ;;  %644 = vmatprep.mubr.msk.bf16.mxu0 %vm797_vm0, %v796_v1  ;;  %s609_s16 = sshll.u32 %s245_s13, 3  ;;  %v715_v7 = vld [vmem:[%s991_s1 + $0x8] sm:$0xff]   ;;  %v716_v8 = vld [vmem:[%s991_s1] sm:$0xff]   ;;  %v718_v10 = vld [vmem:[%s994_s4 + $0x38] sm:$0xff]   ;;  %s949_s13 = scalar_lea.hbm %s996_s6, %s606_s29 }
  0x16   : > { %630 = vmatprep.subr.bf16.mxu0 %v796_v1  ;;  %664 = vmatprep.mubr.msk.bf16.mxu1 %vm797_vm0, %v796_v1  ;;  %s248_s19 = scalar_lea.vmem %s990_s0, %s609_s16  ;;  %v719_v11 = vld [vmem:[%s994_s4 + $0x30] sm:$0xff]   ;;  %v720_v12 = vld [vmem:[%s994_s4 + $0x28] sm:$0xff]   ;;  %v721_v13 = vld [vmem:[%s994_s4 + $0x20] sm:$0xff]   ;;  %p737_p13 = pneg %p736_p12 }
  0x17   : > { %v717_v9 = vld [vmem:[%s248_s19] sm:$0xff]   ;;  %649 = vmatpush3.bf16.msra.mxu1 %v718_v10  ;;  %v722_v14 = vld [vmem:[%s994_s4 + $0x18] sm:$0xff]   ;;  %v723_v15 = vld [vmem:[%s994_s4 + $0x10] sm:$0xff]   ;;  %s738_s16 = sshll.u32 %s798_s25, 4  ;;  %s739_s16 = int_to_ptr.vmem [resolvable:$false] %s738_s16 }
  0x18   : > { %650 = vmatprep.subr.bf16.mxu1 %v796_v1  ;;  %v724_v16 = vld [vmem:[%s994_s4 + $0x8] sm:$0xff]   ;;  %v725_v17 = vld [vmem:[%s994_s4] sm:$0xff]   ;;  %s740_s17 = scalar_lea.vmem %s739_s16, 32  ;;  %p741_p0 = scmp.lt.s32.totalorder %s951_s10, %s739_s16 }
  0x19   : > { %631 = vmatpush3.bf16.msra.mxu0 %v710_v2  ;;  %v594_v18 = vld [vmem:[%s992_s2] ss:$0 sm:$0xff]  ;;  %p742_p1 = scmp.lt.s32.totalorder %s740_s17, %s734_s15 }
  0x1a   : > { %632 = vmatprep.subr.bf16.mxu0 %v796_v1  ;;  %v595_v20 = vld [vmem:[%s993_s3] ss:$0 sm:$0xff] }
  0x1b   : > { %651 = vmatpush3.bf16.msra.mxu1 %v719_v11  ;;  %v421_v47 = vld [vmem:[%s995_s5] sm:$0x1]  ;;  %p743_p2 = por %p742_p1, %p741_p0 }
  0x1c   : > { %652 = vmatprep.subr.bf16.mxu1 %v796_v1 }
  0x1d   : > { %633 = vmatpush3.bf16.msra.mxu0 %v711_v3  ;;  %p744_p3 = pnand %p743_p2, %p737_p13 }
  0x1e   : > { %634 = vmatprep.subr.bf16.mxu0 %v796_v1 }
  0x1f   : > { %653 = vmatpush3.bf16.msra.mxu1 %v720_v12 }
  0x20   : > { %654 = vmatprep.subr.bf16.mxu1 %v796_v1 }
  0x21   : > { %635 = vmatpush3.bf16.msra.mxu0 %v712_v4 }
  0x22   : > { %636 = vmatprep.subr.bf16.mxu0 %v796_v1 }
  0x23   : > { %655 = vmatpush3.bf16.msra.mxu1 %v721_v13 }
  0x24   : > { %656 = vmatprep.subr.bf16.mxu1 %v796_v1 }
  0x25   : > { %637 = vmatpush3.bf16.msra.mxu0 %v713_v5 }
  0x26   : > { %638 = vmatprep.subr.bf16.mxu0 %v796_v1 }
  0x27   : > { %657 = vmatpush3.bf16.msra.mxu1 %v722_v14 }
  0x28   : > { %658 = vmatprep.subr.bf16.mxu1 %v796_v1 }
  0x29   : > { %639 = vmatpush3.bf16.msra.mxu0 %v714_v6 }
  0x2a   : > { %640 = vmatprep.subr.bf16.mxu0 %v796_v1 }
  0x2b   : > { %659 = vmatpush3.bf16.msra.mxu1 %v723_v15 }
  0x2c   : > { %660 = vmatprep.subr.bf16.mxu1 %v796_v1 }
  0x2d   : > { %641 = vmatpush3.bf16.msra.mxu0 %v715_v7 }
  0x2e   : > { %642 = vmatprep.subr.bf16.mxu0 %v796_v1 }
  0x2f   : > { %661 = vmatpush3.bf16.msra.mxu1 %v724_v16 }
  0x30   : > { %662 = vmatprep.subr.bf16.mxu1 %v796_v1 }
  0x31   : > { %643 = vmatpush3.bf16.msra.mxu0 %v716_v8 }
  0x33   : > { %663 = vmatpush3.bf16.msra.mxu1 %v725_v17 }
  0x34   : > { %645 = vmatmul.mubr.bf16.vlgmr.msra.gmra.mxu0 %v717_v9 }
  0xf4   : > { %v356_v19 = vpop.f32.mrf.mxu0 }
  0xf5   : > { %v370_v21 = vmul.f32 %v594_v18, %v356_v19 }
  0xf6   : > { %v646_v22 = vpop.f32.mrf.mxu0 }
  0xf7   : > { %v379_v23 = vadd.f32 %v595_v20, %v370_v21 }
  0xf8   : > { %v359_v24 = vpop.f32.mrf.mxu0 }
  0xf9   : > { %v596_v25 = vmul.f32 -1.442695, %v379_v23  ;;  %v371_v26 = vmul.f32 %v594_v18, %v359_v24 }
  0xfa   : > { %v647_v27 = vpop.f32.mrf.mxu0 }
  0xfb   : > { %726 = vpow2.f32 %v596_v25  ;;  %v380_v28 = vadd.f32 %v595_v20, %v371_v26 }
  0xfd   : > { %v597_v29 = vmul.f32 -1.442695, %v380_v28 }
  0xff   : > { %728 = vpow2.f32 %v597_v29 }
 0x108   : > { %v727_v30 = vpop.eup %726 }
 0x109   : > { %v387_v31 = vadd.f32 1.0, %v727_v30 }
 0x10b   : > { %730 = vrcp.f32 %v387_v31 }
 0x10c   : > { %v729_v32 = vpop.eup %728 }
 0x10d   : > { %v388_v33 = vadd.f32 1.0, %v729_v32 }
 0x10f   : > { %732 = vrcp.f32 %v388_v33 }
 0x118   : > { %v731_v34 = vpop.eup %730 }
 0x119   : > { %v393_v36 = vmul.f32 %v731_v34, %v379_v23 }
 0x11c   : > { %v733_v35 = vpop.eup %732 }
 0x11d   : > { %v394_v37 = vmul.f32 %v733_v35, %v380_v28 }
 0x11f   : > { %v395_v38 = vadd.f32 %v394_v37, %v393_v36 }
 0x121   : > { %v396_v39 = vrot.slane %v395_v38, 4 }
 0x123   : > { %v397_v40 = vadd.f32 %v396_v39, %v395_v38 }
 0x125   : > { %v398_v41 = vrot.slane %v397_v40, 2 }
 0x127   : > { %v399_v42 = vadd.f32 %v398_v41, %v397_v40 }
 0x129   : > { %v400_v43 = vrot.slane %v399_v42, 1 }
 0x12b   : > { %v401_v44 = vadd.f32 %v400_v43, %v399_v42 }
 0x12d   : > { %v403_v45 = vmul.f32 0.0625, %v401_v44 }
 0x12f   : > { %v404_v46 = vpack.c.bf16 %v403_v45, %v403_v45 }
 0x131   : > { %665 = vmatmul.mubr.bf16.vlgmr.msra.gmra.mxu1 %v404_v46 }
 0x1f1   : > { %v504_v48 = vpop.f32.mrf.mxu1 }
 0x1f2   : > { %v505_v49 = vadd.f32 %v504_v48, %v421_v47 }
 0x1f3   : > { %v666_v50 = vpop.f32.mrf.mxu1 }
 0x1f4   : > { %510 = vst [vmem:[%s243_s9] sm:$0x1] %v505_v49 }
 0x1f5   : > { %v507_v51 = vpop.f32.mrf.mxu1 }
 0x1f6   : > { %747 = shalt.err (!%p744_p3)
}
 0x1f7   : > { %s748_s18 = scalar_lea.hbm %s949_s13, 16  ;;  %s752_s19 = scalar_lea.hbm %s996_s6, 32 }
 0x1f8   : > { %p749_p4 = scmp.ne.s32.totalorder %s949_s13, %s748_s18  ;;  %p753_p9 = scmp.lt.s32.totalorder %s949_s13, %s996_s6 }
 0x1f9   : > { %p754_p10 = scmp.lt.s32.totalorder %s752_s19, %s748_s18 }
 0x1fa   : > { %p750_p7 = pnand %p749_p4, %p872_p5 }
 0x1fb   : > { %p755_p11 = por %p754_p10, %p753_p9 }
 0x1fc   : > { %p751_p8 = pneg %p750_p7 }
 0x1fe   : > { %p756_p12 = pnand %p755_p11, %p751_p8 }
 0x200   : > { %759 = shalt.err (!%p756_p12)
}
 0x201   : > { %668 = dma.vmem_to_hbm [thread:$0]  (%p872_p5), %s951_s10, 16, %s949_s13, %s512_s14   ;;  %v667_v52 = vpop.f32.mrf.mxu1 }
 0x202 PF: > { %p674_p13 = scmp.ge.s32.totalorder %s794_s24, 2  ;;  %s536_s9 = sand.u32 1, %s782_s21  }
 0x203   : > { %s537_s11 = scalar_lea.sflag [#allocation3], %s536_s9 }
 0x204   : > { %p671_p0 = pnand %p674_p13, %p876_p6 }
 0x206   : > { %p672_p1 = pneg %p671_p0 }
 0x208   : > { %777 = dma.done.wait (%p672_p1), %s537_s11, 16  }
 0x209   : > { %779 = vsyncadd (%p672_p1), %s537_s11, 4294967280  ;;  %p16_p2 = scmp.ge.s32.totalorder %s859_s27, 4   ;;  %s999_s21 = smov %s786_s22 }
 0x20a   : > { %s1000_s22 = smov %s790_s23  ;;  %s1001_s23 = smov %s870_s30 }
 0x20b   : > { %s1002_s24 = smov %s859_s27  ;;  %18 = sbr.rel (!%p16_p2) target bundleno = 3 (0x3), region = 79 }
 0x210   :  { %541 = vsyncpa [#allocation3], 1 }
 0x211   :  { %543 = vsyncpa [#allocation3 + $0x1], 1 }

</bundles_post_ra>
